<compile_context>
chip_gen: v7x
topology: tpu7x:2x2x1
jax: 0.10.0
libtpu: 0.0.40
codegen_flags: <defaults>
</compile_context>

<pallas_src>
import functools

import jax
import jax.numpy as jnp
from jax.experimental import pallas as pl
from jax.experimental.pallas import tpu as pltpu


def _round_up(a, m):
    return ((a + m - 1) // m) * m


def _vmem_capacity_bytes():
    try:
        cap = getattr(pltpu.get_tpu_info(), "vmem_capacity_bytes", None)
        if cap:
            return int(cap)
    except Exception:
        pass
    return 64 << 20  # conservative default (v7x)


def _hamiltonian_kernel(x_ref, z_ref, k_ref, b_ref, xo_ref, zo_ref, *, h):
    # x_ref: (tm, Fp)  z_ref: (tm, Wp)  k_ref: (Wp, Fp)  b_ref: (1, Wp) f32
    K = k_ref[...]
    mxu_dt = K.dtype                      # bf16 on the fast path, f32 otherwise
    f32 = jnp.float32
    prec = jax.lax.Precision.HIGHEST if mxu_dt == f32 else None

    x_in = x_ref[...]
    x_mxu = x_in if x_in.dtype == mxu_dt else x_in.astype(mxu_dt)

    # z_new = z + h * tanh(x @ K^T + b).  NT dot_general (contract last dims of
    # both operands) so the resident K never goes through an XLU transpose.
    a = jax.lax.dot_general(
        x_mxu, K,
        dimension_numbers=(((1,), (1,)), ((), ())),
        preferred_element_type=f32, precision=prec)
    z_new = z_ref[...].astype(f32) + h * jnp.tanh(a + b_ref[...])

    # x_new = x - h * tanh(z_new) @ K  (plain NN matmul, no transpose needed).
    # On the bf16 MXU path compute tanh directly in bf16 (bf16 EUP on v6e/v7x):
    # the result feeds the MXU as bf16 anyway, so this drops a VPU cast pass.
    if mxu_dt == jnp.bfloat16:
        s = jnp.tanh(z_new.astype(jnp.bfloat16))
    else:
        s = jnp.tanh(z_new).astype(mxu_dt)
    # TODO(synk): for compute/EUP-bound shapes (F, W >= ~512) sub-tile the row
    # block here (unrolled fori_loop over 128-row chunks) so matmul1/tanh/
    # matmul2 of independent sub-blocks overlap in the MXU/EUP slots.
    x_new = x_in.astype(f32) - h * jnp.dot(
        s, K, preferred_element_type=f32, precision=prec)

    zo_ref[...] = z_new.astype(zo_ref.dtype)
    xo_ref[...] = x_new.astype(xo_ref.dtype)


def hamiltonian_residual_layer(x, K, b=None, z=None, *, h=1.0, tm=None,
                               mxu_dtype=None):
    """Pallas implementation of HamiltonianResidualLayer.forward(x, z).

    x: (N, F); K: (W, F) (nn.Linear weight layout); b: (W,) or None;
    z: (N, W) or None.  mxu_dtype=jnp.bfloat16 uses bf16 MXU operands with f32
    accumulation (supported on v5e/v6e/v7x; VPU accumulation stays f32).
    """
    N, F = x.shape
    W, Fk = K.shape
    assert Fk == F, (K.shape, x.shape)
    x_dtype = x.dtype
    z_dtype = z.dtype if z is not None else x_dtype

    z_owned = z is None
    if z is None:
        z = jnp.zeros((N, W), dtype=z_dtype)
    if b is None:
        b = jnp.zeros((W,), dtype=jnp.float32)

    # Lane-dense padding only of the feature/width dims (zero padding is inert
    # for this update); rows are handled with a partial last grid block.
    Fp = _round_up(F, 128)
    Wp = _round_up(W, 128)

    # Row tile aligned to the packed sublane tile of the narrowest stream dtype.
    min_item = min(jnp.dtype(x_dtype).itemsize, jnp.dtype(z_dtype).itemsize)
    row_align = 8 * max(1, 4 // int(min_item))

    if tm is None:
        tm = min(512, _round_up(N, row_align))
        min_steps = 1
        if N >= 64:
            min_steps = 2       # keep both v7x TensorCores busy
        if N >= 512:
            min_steps = 4       # better megacore balance / amortized overhead
        while pl.cdiv(N, tm) < min_steps and tm > row_align:
            tm = _round_up(max(tm // 2, row_align), row_align)
    tm = max(row_align, _round_up(min(tm, _round_up(N, row_align)), row_align))

    # Generation-aware VMEM budget (v7x: 64 MiB, v5e/v6e: 128 MiB).
    vmem_cap = _vmem_capacity_bytes()
    budget = int(0.65 * vmem_cap)
    vmem_limit = int(0.85 * vmem_cap)

    x_item = jnp.dtype(x_dtype).itemsize
    z_item = jnp.dtype(z_dtype).itemsize
    k_item = jnp.dtype(mxu_dtype if mxu_dtype is not None else K.dtype).itemsize

    def _est(t):
        streams = 4 * t * (Fp * x_item + Wp * z_item)   # x/z in+out, 2x buffered
        resident = 2 * Wp * Fp * k_item + 2 * Wp * 4    # K counted 2x (safe)
        return streams + resident + (2 << 20)

    # TODO(synk): for Wp*Fp*k_item approaching the budget (large models on v7x),
    # tile the contraction dim with an accumulator instead of only shrinking tm.
    while _est(tm) > budget and tm > row_align:
        tm = _round_up(max(tm // 2, row_align), row_align)

    grid = (pl.cdiv(N, tm),)

    # Pad only the lane dims; rows are never padded.
    xp = x if Fp == F else jnp.pad(x, ((0, 0), (0, Fp - F)))
    zp = z if Wp == W else jnp.pad(z, ((0, 0), (0, Wp - W)))
    Kp = K if (Wp, Fp) == (W, F) else jnp.pad(K, ((0, Wp - W), (0, Fp - F)))
    if mxu_dtype is not None:
        Kp = Kp.astype(mxu_dtype)
    bp = jnp.asarray(b, dtype=jnp.float32).reshape(-1)
    if Wp != W:
        bp = jnp.pad(bp, (0, Wp - W))
    b2d = bp.reshape(1, Wp)

    # Alias x/z HBM buffers into the outputs only when they are temporaries we
    # own (padded copies or a synthesized z) -> no donation hazard for callers.
    aliases = {}
    if xp is not x:
        aliases[0] = 0
    if z_owned or zp is not z:
        aliases[1] = 1

    kernel = functools.partial(_hamiltonian_kernel, h=float(h))
    out_shape = (jax.ShapeDtypeStruct((N, Fp), x_dtype),
                 jax.ShapeDtypeStruct((N, Wp), z_dtype))

    def _call(single_buffer_const):
        if single_buffer_const:
            def const_spec(shape):
                return pl.BlockSpec(shape, lambda i: (0,) * len(shape),
                                    pipeline_mode=pl.Buffered(1))
        else:
            def const_spec(shape):
                return pl.BlockSpec(shape, lambda i: (0,) * len(shape))
        return pl.pallas_call(
            kernel,
            out_shape=out_shape,
            grid_spec=pltpu.PrefetchScalarGridSpec(
                num_scalar_prefetch=0,
                grid=grid,
                in_specs=[
                    pl.BlockSpec((tm, Fp), lambda i: (i, 0)),  # x rows
                    pl.BlockSpec((tm, Wp), lambda i: (i, 0)),  # z rows
                    const_spec((Wp, Fp)),                      # K (resident)
                    const_spec((1, Wp)),                       # bias (resident)
                ],
                out_specs=[
                    pl.BlockSpec((tm, Fp), lambda i: (i, 0)),
                    pl.BlockSpec((tm, Wp), lambda i: (i, 0)),
                ],
            ),
            input_output_aliases=aliases,
            compiler_params=pltpu.CompilerParams(
                dimension_semantics=("parallel",),
                vmem_limit_bytes=vmem_limit,
            ),
        )(xp, zp, Kp, b2d)

    try:
        x_new, z_new = _call(True)
    except Exception:
        # pipeline_mode / pl.Buffered(1) not supported on this JAX version:
        # fall back to default (double-buffered) resident specs.
        x_new, z_new = _call(False)

    if Fp != F:
        x_new = x_new[:, :F]
    if Wp != W:
        z_new = z_new[:, :W]
    return x_new, z_new


def _reference(x, K, b, z, h):
    x = x.astype(jnp.float32)
    K = K.astype(jnp.float32)
    b = (jnp.zeros((K.shape[0],), jnp.float32) if b is None
         else b.astype(jnp.float32))
    if z is None:
        z = jnp.zeros((x.shape[0], K.shape[0]), dtype=jnp.float32)
    else:
        z = z.astype(jnp.float32)
    hp = jax.lax.Precision.HIGHEST
    z_new = z + h * jnp.tanh(jnp.dot(x, K.T, precision=hp) + b[None, :])
    x_new = x - h * jnp.dot(jnp.tanh(z_new), K, precision=hp)
    return x_new, z_new


if __name__ == "__main__":
    key = jax.random.PRNGKey(0)
    k1, k2, k3, k4 = jax.random.split(key, 4)

    # --- Config 1: ragged / non-128-aligned F, W (lane-pad path, single step) --
    N, F, W, h = 48, 96, 160, 0.5
    x = jax.random.normal(k1, (N, F), dtype=jnp.float32)
    K = jax.random.normal(k2, (W, F), dtype=jnp.float32) / jnp.sqrt(float(F))
    b = jax.random.normal(k3, (W,), dtype=jnp.float32) * 0.01

    x_ref, z_ref = _reference(x, K, b, None, h)
    x_new, z_new = hamiltonian_residual_layer(x, K, b, z=None, h=h)
    jax.block_until_ready((x_new, z_new))
    assert x_new.shape == (N, F) and z_new.shape == (N, W)
    assert jnp.allclose(x_new, x_ref, atol=2e-4, rtol=2e-4)
    assert jnp.allclose(z_new, z_ref, atol=2e-4, rtol=2e-4)

    # --- Config 2: aligned shapes, multi-step grid, caller-provided z ---------
    N2, F2, W2, h2 = 256, 128, 128, 0.25
    x2 = jax.random.normal(k4, (N2, F2), dtype=jnp.float32)
    K2 = jax.random.normal(k2, (W2, F2), dtype=jnp.float32) / jnp.sqrt(float(F2))
    b2 = jax.random.normal(k3, (W2,), dtype=jnp.float32) * 0.01
    z2 = jax.random.normal(k1, (N2, W2), dtype=jnp.float32) * 0.1

    x2_ref, z2_ref = _reference(x2, K2, b2, z2, h2)
    x2_new, z2_new = hamiltonian_residual_layer(x2, K2, b2, z=z2, h=h2, tm=128)
    jax.block_until_ready((x2_new, z2_new))
    assert jnp.allclose(x2_new, x2_ref, atol=2e-4, rtol=2e-4)
    assert jnp.allclose(z2_new, z2_ref, atol=2e-4, rtol=2e-4)

    # --- Config 3: bf16 streams + bf16 MXU operands, f32 accumulation ---------
    x3 = x2.astype(jnp.bfloat16)
    z3 = z2.astype(jnp.bfloat16)
    x3_ref, z3_ref = _reference(x3, K2, b2, z3, h2)
    x3_new, z3_new = hamiltonian_residual_layer(
        x3, K2, b2, z=z3, h=h2, mxu_dtype=jnp.bfloat16)
    jax.block_until_ready((x3_new, z3_new))
    assert x3_new.dtype == jnp.bfloat16 and z3_new.dtype == jnp.bfloat16
    assert jnp.allclose(x3_new.astype(jnp.float32), x3_ref, atol=1e-1, rtol=1e-1)
    assert jnp.allclose(z3_new.astype(jnp.float32), z3_ref, atol=1e-1, rtol=1e-1)

    print("KERNEL_OK")
</pallas_src>

<mosaic_0001>
module attributes {stable_mosaic.version = 11 : i64} {
  func.func @_hamiltonian_kernel(%arg0: i32, %arg1: memref<48x128xf32, #tpu.memory_space<vmem>>, %arg2: memref<48x256xf32, #tpu.memory_space<vmem>>, %arg3: memref<256x128xf32, #tpu.memory_space<vmem>>, %arg4: memref<1x256xf32, #tpu.memory_space<vmem>>, %arg5: memref<48x128xf32, #tpu.memory_space<vmem>>, %arg6: memref<48x256xf32, #tpu.memory_space<vmem>>) attributes {dimension_semantics = [#tpu.dimension_semantics<parallel>], iteration_bounds = array<i64: 1>, scalar_prefetch = 0 : i64, scratch_operands = 0 : i64, tpu.core_type = #tpu.core_type<tc>, window_params = [{transform_indices = @transform_0, window_bounds = array<i64: 48, 128>}, {transform_indices = @transform_1, window_bounds = array<i64: 48, 256>}, {pipeline_mode = #tpu.pipeline_mode<synchronous>, transform_indices = @transform_2, window_bounds = array<i64: 256, 128>}, {pipeline_mode = #tpu.pipeline_mode<synchronous>, transform_indices = @transform_3, window_bounds = array<i64: 1, 256>}, {transform_indices = @transform_4, window_bounds = array<i64: 48, 128>}, {transform_indices = @transform_5, window_bounds = array<i64: 48, 256>}]} {
    %c0 = arith.constant 0 : index
    %c0_0 = arith.constant 0 : index
    %0 = vector.load %arg3[%c0, %c0_0] : memref<256x128xf32, #tpu.memory_space<vmem>>, vector<256x128xf32>
    %c0_1 = arith.constant 0 : index
    %c0_2 = arith.constant 0 : index
    %1 = vector.load %arg1[%c0_1, %c0_2] : memref<48x128xf32, #tpu.memory_space<vmem>>, vector<48x128xf32>
    %cst = arith.constant dense<0.000000e+00> : vector<48x256xf32>
    %2 = tpu.matmul %1, %0, %cst {dimension_numbers = #tpu.dot_dimension_numbers<[1], [1], [0], [0], [0, 0, 1, 0], [], []>, precision = #tpu.contract_precision<fp32>} : vector<48x128xf32>, vector<256x128xf32>, vector<48x256xf32> -> vector<48x256xf32>
    %c0_3 = arith.constant 0 : index
    %c0_4 = arith.constant 0 : index
    %3 = vector.load %arg2[%c0_3, %c0_4] : memref<48x256xf32, #tpu.memory_space<vmem>>, vector<48x256xf32>
    %c0_5 = arith.constant 0 : index
    %c0_6 = arith.constant 0 : index
    %4 = vector.load %arg4[%c0_5, %c0_6] : memref<1x256xf32, #tpu.memory_space<vmem>>, vector<1x256xf32>
    %5 = vector.broadcast %4 : vector<1x256xf32> to vector<48x256xf32>
    %6 = arith.addf %2, %5 : vector<48x256xf32>
    %7 = math.tanh %6 : vector<48x256xf32>
    %cst_7 = arith.constant 5.000000e-01 : f32
    %8 = vector.broadcast %cst_7 : f32 to vector<48x256xf32>
    %9 = arith.mulf %8, %7 : vector<48x256xf32>
    %10 = arith.addf %3, %9 : vector<48x256xf32>
    %11 = math.tanh %10 : vector<48x256xf32>
    %cst_8 = arith.constant dense<0.000000e+00> : vector<48x128xf32>
    %12 = tpu.matmul %11, %0, %cst_8 {dimension_numbers = #tpu.dot_dimension_numbers<[1], [0], [0], [1], [0, 0, 1, 1], [], []>, precision = #tpu.contract_precision<fp32>} : vector<48x256xf32>, vector<256x128xf32>, vector<48x128xf32> -> vector<48x128xf32>
    %cst_9 = arith.constant 5.000000e-01 : f32
    %13 = vector.broadcast %cst_9 : f32 to vector<48x128xf32>
    %14 = arith.mulf %13, %12 : vector<48x128xf32>
    %15 = arith.subf %1, %14 : vector<48x128xf32>
    %c0_10 = arith.constant 0 : index
    %c0_11 = arith.constant 0 : index
    %16 = vector.load %arg6[%c0_10, %c0_11] : memref<48x256xf32, #tpu.memory_space<vmem>>, vector<48x256xf32>
    tpu.vector_store %arg6[%c0_10, %c0_11], %10 {strides = array<i32>} : memref<48x256xf32, #tpu.memory_space<vmem>>, vector<48x256xf32>,
    %c0_12 = arith.constant 0 : index
    %c0_13 = arith.constant 0 : index
    %17 = vector.load %arg5[%c0_12, %c0_13] : memref<48x128xf32, #tpu.memory_space<vmem>>, vector<48x128xf32>
    tpu.vector_store %arg5[%c0_12, %c0_13], %15 {strides = array<i32>} : memref<48x128xf32, #tpu.memory_space<vmem>>, vector<48x128xf32>,
    return
  }
  func.func @transform_0(%arg0: i32) -> (i32, i32) {
    %c0_i32 = arith.constant 0 : i32
    %c0_i32_0 = arith.constant 0 : i32
    return %arg0, %c0_i32 : i32, i32
  }
  func.func @transform_1(%arg0: i32) -> (i32, i32) {
    %c0_i32 = arith.constant 0 : i32
    %c0_i32_0 = arith.constant 0 : i32
    return %arg0, %c0_i32 : i32, i32
  }
  func.func @transform_2(%arg0: i32) -> (i32, i32) {
    %c0_i32 = arith.constant 0 : i32
    %c0_i32_0 = arith.constant 0 : i32
    %c0_i32_1 = arith.constant 0 : i32
    return %c0_i32, %c0_i32_0 : i32, i32
  }
  func.func @transform_3(%arg0: i32) -> (i32, i32) {
    %c0_i32 = arith.constant 0 : i32
    %c0_i32_0 = arith.constant 0 : i32
    %c0_i32_1 = arith.constant 0 : i32
    return %c0_i32, %c0_i32_0 : i32, i32
  }
  func.func @transform_4(%arg0: i32) -> (i32, i32) {
    %c0_i32 = arith.constant 0 : i32
    %c0_i32_0 = arith.constant 0 : i32
    return %arg0, %c0_i32 : i32, i32
  }
  func.func @transform_5(%arg0: i32) -> (i32, i32) {
    %c0_i32 = arith.constant 0 : i32
    %c0_i32_0 = arith.constant 0 : i32
    return %arg0, %c0_i32 : i32, i32
  }
}

module attributes {stable_mosaic.version = 11 : i64} {
  func.func @_hamiltonian_kernel(%arg0: i32, %arg1: memref<48x128xf32, #tpu.memory_space<vmem>>, %arg2: memref<48x256xf32, #tpu.memory_space<vmem>>, %arg3: memref<256x128xf32, #tpu.memory_space<vmem>>, %arg4: memref<1x256xf32, #tpu.memory_space<vmem>>, %arg5: memref<48x128xf32, #tpu.memory_space<vmem>>, %arg6: memref<48x256xf32, #tpu.memory_space<vmem>>) attributes {dimension_semantics = [#tpu.dimension_semantics<parallel>], iteration_bounds = array<i64: 1>, scalar_prefetch = 0 : i64, scratch_operands = 0 : i64, tpu.core_type = #tpu.core_type<tc>, window_params = [{transform_indices = @transform_0, window_bounds = array<i64: 48, 128>}, {transform_indices = @transform_1, window_bounds = array<i64: 48, 256>}, {pipeline_mode = #tpu.pipeline_mode<synchronous>, transform_indices = @transform_2, window_bounds = array<i64: 256, 128>}, {pipeline_mode = #tpu.pipeline_mode<synchronous>, transform_indices = @transform_3, window_bounds = array<i64: 1, 256>}, {transform_indices = @transform_4, window_bounds = array<i64: 48, 128>}, {transform_indices = @transform_5, window_bounds = array<i64: 48, 256>}]} {
    %c0 = arith.constant 0 : index
    %c0_0 = arith.constant 0 : index
    %0 = vector.load %arg3[%c0, %c0_0] : memref<256x128xf32, #tpu.memory_space<vmem>>, vector<256x128xf32>
    %c0_1 = arith.constant 0 : index
    %c0_2 = arith.constant 0 : index
    %1 = vector.load %arg1[%c0_1, %c0_2] : memref<48x128xf32, #tpu.memory_space<vmem>>, vector<48x128xf32>
    %cst = arith.constant dense<0.000000e+00> : vector<48x256xf32>
    %2 = tpu.matmul %1, %0, %cst {dimension_numbers = #tpu.dot_dimension_numbers<[1], [1], [0], [0], [0, 0, 1, 0], [], []>, precision = #tpu.contract_precision<fp32>} : vector<48x128xf32>, vector<256x128xf32>, vector<48x256xf32> -> vector<48x256xf32>
    %c0_3 = arith.constant 0 : index
    %c0_4 = arith.constant 0 : index
    %3 = vector.load %arg2[%c0_3, %c0_4] : memref<48x256xf32, #tpu.memory_space<vmem>>, vector<48x256xf32>
    %c0_5 = arith.constant 0 : index
    %c0_6 = arith.constant 0 : index
    %4 = vector.load %arg4[%c0_5, %c0_6] : memref<1x256xf32, #tpu.memory_space<vmem>>, vector<1x256xf32>
    %5 = vector.broadcast %4 : vector<1x256xf32> to vector<48x256xf32>
    %6 = arith.addf %2, %5 : vector<48x256xf32>
    %7 = math.tanh %6 : vector<48x256xf32>
    %cst_7 = arith.constant 5.000000e-01 : f32
    %8 = vector.broadcast %cst_7 : f32 to vector<48x256xf32>
    %9 = arith.mulf %8, %7 : vector<48x256xf32>
    %10 = arith.addf %3, %9 : vector<48x256xf32>
    %11 = math.tanh %10 : vector<48x256xf32>
    %cst_8 = arith.constant dense<0.000000e+00> : vector<48x128xf32>
    %12 = tpu.matmul %11, %0, %cst_8 {dimension_numbers = #tpu.dot_dimension_numbers<[1], [0], [0], [1], [0, 0, 1, 1], [], []>, precision = #tpu.contract_precision<fp32>} : vector<48x256xf32>, vector<256x128xf32>, vector<48x128xf32> -> vector<48x128xf32>
    %cst_9 = arith.constant 5.000000e-01 : f32
    %13 = vector.broadcast %cst_9 : f32 to vector<48x128xf32>
    %14 = arith.mulf %13, %12 : vector<48x128xf32>
    %15 = arith.subf %1, %14 : vector<48x128xf32>
    %c0_10 = arith.constant 0 : index
    %c0_11 = arith.constant 0 : index
    %16 = vector.load %arg6[%c0_10, %c0_11] : memref<48x256xf32, #tpu.memory_space<vmem>>, vector<48x256xf32>
    tpu.vector_store %arg6[%c0_10, %c0_11], %10 {strides = array<i32>} : memref<48x256xf32, #tpu.memory_space<vmem>>, vector<48x256xf32>,
    %c0_12 = arith.constant 0 : index
    %c0_13 = arith.constant 0 : index
    %17 = vector.load %arg5[%c0_12, %c0_13] : memref<48x128xf32, #tpu.memory_space<vmem>>, vector<48x128xf32>
    tpu.vector_store %arg5[%c0_12, %c0_13], %15 {strides = array<i32>} : memref<48x128xf32, #tpu.memory_space<vmem>>, vector<48x128xf32>,
    return
  }
  func.func @transform_0(%arg0: i32) -> (i32, i32) {
    %c0_i32 = arith.constant 0 : i32
    %c0_i32_0 = arith.constant 0 : i32
    return %arg0, %c0_i32 : i32, i32
  }
  func.func @transform_1(%arg0: i32) -> (i32, i32) {
    %c0_i32 = arith.constant 0 : i32
    %c0_i32_0 = arith.constant 0 : i32
    return %arg0, %c0_i32 : i32, i32
  }
  func.func @transform_2(%arg0: i32) -> (i32, i32) {
    %c0_i32 = arith.constant 0 : i32
    %c0_i32_0 = arith.constant 0 : i32
    %c0_i32_1 = arith.constant 0 : i32
    return %c0_i32, %c0_i32_0 : i32, i32
  }
  func.func @transform_3(%arg0: i32) -> (i32, i32) {
    %c0_i32 = arith.constant 0 : i32
    %c0_i32_0 = arith.constant 0 : i32
    %c0_i32_1 = arith.constant 0 : i32
    return %c0_i32, %c0_i32_0 : i32, i32
  }
  func.func @transform_4(%arg0: i32) -> (i32, i32) {
    %c0_i32 = arith.constant 0 : i32
    %c0_i32_0 = arith.constant 0 : i32
    return %arg0, %c0_i32 : i32, i32
  }
  func.func @transform_5(%arg0: i32) -> (i32, i32) {
    %c0_i32 = arith.constant 0 : i32
    %c0_i32_0 = arith.constant 0 : i32
    return %arg0, %c0_i32 : i32, i32
  }
}

</mosaic_0001>

<bundles_post_ra>
// kernel: tpu_custom_call.1
= control target key start
LH: loop header
LB: loop body
LE: loop exit
PB: predicated region body
PF: predicated region fallthrough
CT: control target
= control target key end

     0   :  { %11 = vsyncpa [#allocation3], 0  ;;  %s4734_s0 = inlined_call_operand.hbm [shape: f32[48,128], index: 0, kind: input, shape index: {}, may-alias: {0,4}]   ;;  %s4735_s1 = inlined_call_operand.hbm [shape: f32[48,256], index: 1, kind: input, shape index: {}, may-alias: {1,5}]   ;;  %s4736_s2 = inlined_call_operand.vmem [shape: f32[256,128], index: 2, kind: input, shape index: {}]   ;;  %s4737_s3 = inlined_call_operand.vmem [shape: f32[1,256], index: 3, kind: input, shape index: {}]   ;;  %s4738_s4 = inlined_call_operand.hbm [shape: f32[48,128], index: 4, kind: output, shape index: {0}, may-alias: {0,4}]   ;;  %s4739_s5 = inlined_call_operand.hbm [shape: f32[48,256], index: 5, kind: output, shape index: {1}, may-alias: {1,5}]  }
   0x1   :  { %12 = vsyncpa [#allocation6], 0 }
   0x2   :  { %13 = vsyncpa [#allocation4], 0 }
   0x3   :  { %14 = vsyncpa [#allocation9], 0  ;;  %s3643_s18 = smov [#allocation2]   ;;  %s3547_s22 = scalar_lea.hbm %s4734_s0, 768 }
   0x4   :  { %s20_s19 = sshll.u32 %s3643_s18, 4  ;;  %p3548_p0 = scmp.ne.s32.totalorder %s4734_s0, %s3547_s22  ;;  %s21_s19 = int_to_ptr.vmem [resolvable:$true] %s20_s19 }
   0x5   :  { %p3551_p1 = scmp.lt.u32.totalorder %s3547_s22, %s4734_s0 }
   0x7   :  { %p3553_p2 = pnand %p3551_p1, %p3548_p0 }
   0x9   :  { %3556 = shalt.err (!%p3553_p2)
}
   0xa   :  { %s3557_s27 = scalar_lea.vmem %s21_s19, 768  ;;  %p3562_p4 = scmp.lt.s32.totalorder %s21_s19, %s21_s19 }
   0xb   :  { %p3558_p3 = scmp.ne.s32.totalorder %s21_s19, %s3557_s27  ;;  %p3563_p5 = scmp.lt.s32.totalorder %s3557_s27, %s3557_s27 }
   0xd   :  { %p3564_p6 = por %p3563_p5, %p3562_p4 }
   0xf   :  { %p3565_p7 = pnand %p3564_p6, %p3558_p3 }
  0x11   :  { %3568 = shalt.err (!%p3565_p7)
}
  0x12   :  { %s3644_s28 = smov 128   ;;  %s3645_s29 = smov 8  }
  0x13   :  { %26 = dma.hbm_to_vmem [thread:$0]  %s4734_s0, 768, %s21_s19, [#allocation3], %s3644_s28, %s3644_s28, %s3645_s29  }
  0x14   :  { %s3646_s7 = smov [#allocation5]   ;;  %s3569_s11 = scalar_lea.hbm %s4735_s1, 1536 }
  0x15   :  { %s32_s8 = sshll.u32 %s3646_s7, 4  ;;  %p3570_p8 = scmp.ne.s32.totalorder %s4735_s1, %s3569_s11  ;;  %s33_s8 = int_to_ptr.vmem [resolvable:$true] %s32_s8 }
  0x16   :  { %p3573_p9 = scmp.lt.u32.totalorder %s3569_s11, %s4735_s1 }
  0x18   :  { %p3575_p10 = pnand %p3573_p9, %p3570_p8 }
  0x1a   :  { %3578 = shalt.err (!%p3575_p10)
}
  0x1b   :  { %s3579_s16 = scalar_lea.vmem %s33_s8, 1536  ;;  %p3584_p12 = scmp.lt.s32.totalorder %s33_s8, %s33_s8 }
  0x1c   :  { %p3580_p11 = scmp.ne.s32.totalorder %s33_s8, %s3579_s16  ;;  %p3585_p13 = scmp.lt.s32.totalorder %s3579_s16, %s3579_s16 }
  0x1e   :  { %p3586_p0 = por %p3585_p13, %p3584_p12 }
  0x20   :  { %p3587_p1 = pnand %p3586_p0, %p3580_p11 }
  0x22   :  { %3590 = shalt.err (!%p3587_p1)
}
  0x23   :  { %s3647_s0 = smov 256   ;;  %s3648_s17 = smov 16  }
  0x24   :  { %38 = dma.hbm_to_vmem [thread:$0]  %s4735_s1, 1536, %s33_s8, [#allocation6], %s3647_s0, %s3647_s0, %s3648_s17  }
  0x25   :  { %3635 = dma.done.wait [#allocation3], 768  }
  0x26   :  { %3636 = vsyncadd [#allocation3], 4294966528 }
  0x27   :  { %3637 = dma.done.wait [#allocation6], 1536  }
  0x28   :  { %3638 = vsyncadd [#allocation6], 4294965760  ;;  %v65_v0 = vld [vmem:[%s4736_s2 + $0x80] sm:$0xff]  ;;  %v66_v1 = vld [vmem:[%s4736_s2 + $0x88] sm:$0xff] }
  0x29   :  { %v49_v2 = vld [vmem:[%s4736_s2] sm:$0xff]  ;;  %v160_v3 = vand.u32 4294901760, %v65_v0  ;;  %v163_v4 = vand.u32 4294901760, %v66_v1  ;;  %v50_v5 = vld [vmem:[%s4736_s2 + $0x8] sm:$0xff]  ;;  %v67_v7 = vld [vmem:[%s4736_s2 + $0x90] sm:$0xff] }
  0x2a   :  { %v112_v6 = vand.u32 4294901760, %v49_v2  ;;  %v68_v8 = vld [vmem:[%s4736_s2 + $0x98] sm:$0xff]  ;;  %v115_v9 = vand.u32 4294901760, %v50_v5  ;;  %v166_v10 = vand.u32 4294901760, %v67_v7  ;;  %v51_v16 = vld [vmem:[%s4736_s2 + $0x10] sm:$0xff]  ;;  %v69_v38 = vld [vmem:[%s4736_s2 + $0xa0] sm:$0xff] }
  0x2b   :  { %v169_v11 = vand.u32 4294901760, %v68_v8  ;;  %v3729_v12 = vpack.c.bf16 %v163_v4, %v160_v3  ;;  %v3731_v13 = vsub.f32 %v65_v0, %v160_v3  ;;  %v3733_v14 = vsub.f32 %v66_v1, %v163_v4  ;;  %v52_v17 = vld [vmem:[%s4736_s2 + $0x18] sm:$0xff]  ;;  %v70_v39 = vld [vmem:[%s4736_s2 + $0xa8] sm:$0xff]  ;;  %v53_v44 = vld [vmem:[%s4736_s2 + $0x20] sm:$0xff] }
  0x2c   :  { %v3735_v15 = vsub.f32 %v49_v2, %v112_v6  ;;  %v3743_v18 = vpack.c.bf16 %v115_v9, %v112_v6  ;;  %v3745_v19 = vsub.f32 %v50_v5, %v115_v9  ;;  %v3749_v21 = vsub.f32 %v67_v7, %v166_v10  ;;  %v54_v53 = vld [vmem:[%s4736_s2 + $0x28] sm:$0xff]  ;;  %v71_v58 = vld [vmem:[%s4736_s2 + $0xb0] sm:$0xff]  ;;  %v72_v59 = vld [vmem:[%s4736_s2 + $0xb8] sm:$0xff] }
  0x2d   :  { %v3747_v20 = vpack.c.bf16 %v169_v11, %v166_v10  ;;  %v4758_v22 = vand.u32 4294901760, %v3731_v13  ;;  %v4757_v23 = vand.u32 4294901760, %v3733_v14  ;;  %v3754_v25 = vsub.f32 %v68_v8, %v169_v11  ;;  %3030 = vmatprep.subr.bf16.mxu1 %v3729_v12  ;;  %v55_v11 = vld [vmem:[%s4736_s2 + $0x30] sm:$0xff] }
  0x2e   :  { %v4756_v24 = vand.u32 4294901760, %v3735_v15  ;;  %v4754_v26 = vand.u32 4294901760, %v3745_v19  ;;  %v4753_v27 = vand.u32 4294901760, %v3749_v21  ;;  %v118_v28 = vand.u32 4294901760, %v51_v16  ;;  %3032 = vmatpush3.bf16.xpose.msra.mxu1 %v3743_v18 }
  0x2f   :  { %v121_v29 = vand.u32 4294901760, %v52_v17  ;;  %v390_v30 = vsub.f32 %v3731_v13, %v4758_v22  ;;  %v397_v31 = vsub.f32 %v3733_v14, %v4757_v23  ;;  %v4752_v33 = vand.u32 4294901760, %v3754_v25  ;;  %3034 = vmatprep.subr.bf16.mxu1 %v3747_v20 }
  0x30   :  { %v278_v32 = vsub.f32 %v3735_v15, %v4756_v24  ;;  %v285_v34 = vsub.f32 %v3745_v19, %v4754_v26  ;;  %v404_v35 = vsub.f32 %v3749_v21, %v4753_v27  ;;  %v3779_v37 = vsub.f32 %v51_v16, %v118_v28  ;;  %v3981_v26 = vld [vmem:[%s4736_s2 + $0x60] sm:$0xff] }
  0x31   :  { %v3777_v36 = vpack.c.bf16 %v121_v29, %v118_v28  ;;  %v391_v40 = vand.u32 4294901760, %v390_v30  ;;  %v398_v41 = vand.u32 4294901760, %v397_v31  ;;  %v411_v43 = vsub.f32 %v3754_v25, %v4752_v33  ;;  %v56_v30 = vld [vmem:[%s4736_s2 + $0x38] sm:$0xff]  ;;  %v78_v33 = vld [vmem:[%s4736_s2 + $0xe8] sm:$0xff] }
  0x32   :  { %v279_v42 = vand.u32 4294901760, %v278_v32  ;;  %v286_v45 = vand.u32 4294901760, %v285_v34  ;;  %v405_v46 = vand.u32 4294901760, %v404_v35  ;;  %v4751_v47 = vand.u32 4294901760, %v3779_v37 }
  0x33   :  { %v3794_v48 = vsub.f32 %v52_v17, %v121_v29  ;;  %v3796_v49 = vpack.c.bf16 %v398_v41, %v391_v40  ;;  %v412_v50 = vand.u32 4294901760, %v411_v43  ;;  %v172_v51 = vand.u32 4294901760, %v69_v38 }
  0x34   :  { %v175_v52 = vand.u32 4294901760, %v70_v39  ;;  %v3801_v54 = vpack.c.bf16 %v286_v45, %v279_v42  ;;  %v292_v55 = vsub.f32 %v3779_v37, %v4751_v47  ;;  %v124_v57 = vand.u32 4294901760, %v53_v44 }
  0x35   :  { %4835 = vst [vmem:[#allocation14_spill] sm:$0xff] %v3796_v49  ;;  %v4750_v56 = vand.u32 4294901760, %v3794_v48  ;;  %3062 = vmatprep.subr.bf16.mxu0 %v3796_v49  ;;  %v3814_v60 = vpack.c.bf16 %v412_v50, %v405_v46  ;;  %v3818_v62 = vsub.f32 %v69_v38, %v172_v51  ;;  %v127_v2 = vand.u32 4294901760, %v54_v53  ;;  %v73_v38 = vld [vmem:[%s4736_s2 + $0xc0] sm:$0xff]  ;;  %v74_v50 = vld [vmem:[%s4736_s2 + $0xc8] sm:$0xff] }
  0x36   :  { %4836 = vst [vmem:[#allocation15_spill] sm:$0xff] %v3801_v54  ;;  %v3816_v61 = vpack.c.bf16 %v175_v52, %v172_v51  ;;  %v3820_v63 = vsub.f32 %v70_v39, %v175_v52  ;;  %3064 = vmatpush3.bf16.xpose.msra.mxu0 %v3801_v54  ;;  %v293_v0 = vand.u32 4294901760, %v292_v55  ;;  %v3826_v3 = vsub.f32 %v53_v44, %v124_v57 }
  0x37   :  { %4837 = vst [vmem:[#allocation16_spill] sm:$0xff] %v3814_v60  ;;  %v299_v1 = vsub.f32 %v3794_v48, %v4750_v56  ;;  %3036 = vmatpush3.bf16.xpose.msra.mxu1 %v3777_v36  ;;  %3066 = vmatprep.subr.bf16.mxu0 %v3814_v60  ;;  %v4748_v4 = vand.u32 4294901760, %v3818_v62  ;;  %v178_v6 = vand.u32 4294901760, %v71_v58  ;;  %v181_v7 = vand.u32 4294901760, %v72_v59  ;;  %v4053_v60 = vld [vmem:[%s4736_s2 + $0x70] sm:$0xff] }
  0x38   :  { %4838 = vst [vmem:[#allocation17_spill] sm:$0xff] %v3820_v63  ;;  %v4747_v5 = vand.u32 4294901760, %v3820_v63  ;;  %3038 = vmatprep.subr.bf16.mxu1 %v3816_v61  ;;  %v4745_v9 = vand.u32 4294901760, %v3826_v3  ;;  %v3834_v10 = vsub.f32 %v54_v53, %v127_v2  ;;  %v3845_v28 = vpack.c.bf16 %v127_v2, %v124_v57  ;;  %v3883_v57 = vld [vmem:[%s4736_s2 + $0x40] sm:$0xff] }
  0x39   :  { %v300_v8 = vand.u32 4294901760, %v299_v1  ;;  %v418_v16 = vsub.f32 %v3818_v62, %v4748_v4  ;;  %v3847_v29 = vsub.f32 %v71_v58, %v178_v6  ;;  %v3858_v35 = vsub.f32 %v72_v59, %v181_v7  ;;  %v3948_v4 = vld [vmem:[%s4736_s2 + $0x58] sm:$0xff] }
  0x3a   :  { %4839 = vst [vmem:[#allocation18_spill] sm:$0xff] %v3834_v10  ;;  %v425_v17 = vsub.f32 %v3820_v63, %v4747_v5  ;;  %v306_v32 = vsub.f32 %v3826_v3, %v4745_v9  ;;  %v4744_v34 = vand.u32 4294901760, %v3834_v10  ;;  %v130_v42 = vand.u32 4294901760, %v55_v11 }
  0x3b   :  { %v3852_v31 = vpack.c.bf16 %v300_v8, %v293_v0  ;;  %4841 = vst [vmem:[#allocation20_spill] sm:$0xff] %v3858_v35  ;;  %v419_v39 = vand.u32 4294901760, %v418_v16  ;;  %v4741_v41 = vand.u32 4294901760, %v3847_v29  ;;  %v3867_v44 = vpack.c.bf16 %v181_v7, %v178_v6 }
  0x3c   :  { %v426_v40 = vand.u32 4294901760, %v425_v17  ;;  %v313_v43 = vsub.f32 %v3834_v10, %v4744_v34  ;;  %v4740_v45 = vand.u32 4294901760, %v3858_v35  ;;  %v133_v46 = vand.u32 4294901760, %v56_v30 }
  0x3d   :  { %4840 = vst [vmem:[#allocation19_spill] sm:$0xff] %v3852_v31  ;;  %4842 = vst [vmem:[#allocation21_spill] sm:$0xff] %v3867_v44  ;;  %v432_v52 = vsub.f32 %v3847_v29, %v4741_v41  ;;  %v3878_v53 = vsub.f32 %v55_v11, %v130_v42  ;;  %v184_v55 = vand.u32 4294901760, %v73_v38  ;;  %v307_v58 = vand.u32 4294901760, %v306_v32  ;;  %v58_v11 = vld [vmem:[%s4736_s2 + $0x48] sm:$0xff]  ;;  %v75_v32 = vld [vmem:[%s4736_s2 + $0xd0] sm:$0xff] }
  0x3e   :  { %v3873_v51 = vpack.c.bf16 %v426_v40, %v419_v39  ;;  %3068 = vmatpush3.bf16.xpose.msra.mxu0 %v3852_v31  ;;  %v314_v59 = vand.u32 4294901760, %v313_v43  ;;  %v439_v0 = vsub.f32 %v3858_v35, %v4740_v45  ;;  %v3889_v1 = vsub.f32 %v56_v30, %v133_v46 }
  0x3f   :  { %4844 = vst [vmem:[#allocation23_spill] sm:$0xff] %v3878_v53  ;;  %3040 = vmatpush3.bf16.xpose.msra.mxu1 %v3845_v28  ;;  %v433_v2 = vand.u32 4294901760, %v432_v52  ;;  %v4743_v6 = vand.u32 4294901760, %v3878_v53  ;;  %v187_v7 = vand.u32 4294901760, %v74_v50  ;;  %v3894_v8 = vsub.f32 %v73_v38, %v184_v55 }
  0x40   :  { %4843 = vst [vmem:[#allocation22_spill] sm:$0xff] %v3873_v51  ;;  %4845 = vst [vmem:[#allocation24_spill] sm:$0xff] %v3889_v1  ;;  %3070 = vmatprep.subr.bf16.mxu0 %v3873_v51  ;;  %3042 = vmatprep.subr.bf16.mxu1 %v3867_v44  ;;  %v440_v16 = vand.u32 4294901760, %v439_v0  ;;  %v4742_v17 = vand.u32 4294901760, %v3889_v1  ;;  %v136_v30 = vand.u32 4294901760, %v3883_v57  ;;  %v3905_v39 = vpack.c.bf16 %v133_v46, %v130_v42  ;;  %v76_v42 = vld [vmem:[%s4736_s2 + $0xd8] sm:$0xff] }
  0x41   :  { %4846 = vst [vmem:[#allocation25_spill] sm:$0xff] %v3894_v8  ;;  %v320_v38 = vsub.f32 %v3878_v53, %v4743_v6  ;;  %v4746_v40 = vand.u32 4294901760, %v3894_v8  ;;  %v3911_v43 = vsub.f32 %v74_v50, %v187_v7  ;;  %v3913_v52 = vpack.c.bf16 %v314_v59, %v307_v58 }
  0x42   :  { %4847 = vst [vmem:[#allocation26_spill] sm:$0xff] %v3905_v39  ;;  %v327_v0 = vsub.f32 %v3889_v1, %v4742_v17  ;;  %v139_v45 = vand.u32 4294901760, %v58_v11  ;;  %v3919_v41 = vsub.f32 %v3883_v57, %v136_v30  ;;  %v3924_v46 = vpack.c.bf16 %v440_v16, %v433_v2  ;;  %v3933_v17 = vld [vmem:[%s4736_s2 + $0x50] sm:$0xff] }
  0x43   :  { %4848 = vst [vmem:[#allocation27_spill] sm:$0xff] %v3911_v43  ;;  %4849 = vst [vmem:[#allocation28_spill] sm:$0xff] %v3913_v52  ;;  %v446_v50 = vsub.f32 %v3894_v8, %v4746_v40  ;;  %v4749_v58 = vand.u32 4294901760, %v3911_v43  ;;  %v190_v59 = vand.u32 4294901760, %v75_v32  ;;  %v321_v57 = vand.u32 4294901760, %v320_v38 }
  0x44   :  { %4850 = vst [vmem:[#allocation29_spill] sm:$0xff] %v3924_v46  ;;  %v328_v6 = vand.u32 4294901760, %v327_v0  ;;  %v3935_v34 = vpack.c.bf16 %v187_v7, %v184_v55  ;;  %v3937_v9 = vsub.f32 %v58_v11, %v139_v45  ;;  %v4755_v16 = vand.u32 4294901760, %v3919_v41  ;;  %v3956_v11 = vld [vmem:[%s4736_s2 + $0xe0] sm:$0xff] }
  0x45   :  { %v453_v2 = vsub.f32 %v3911_v43, %v4749_v58  ;;  %v193_v40 = vand.u32 4294901760, %v76_v42  ;;  %v3943_v5 = vsub.f32 %v75_v32, %v190_v59  ;;  %v142_v7 = vand.u32 4294901760, %v3933_v17 }
  0x46   :  { %4851 = vst [vmem:[#allocation30_spill] sm:$0xff] %v3935_v34  ;;  %4852 = vst [vmem:[#allocation31_spill] sm:$0xff] %v3937_v9  ;;  %3072 = vmatpush3.bf16.xpose.msra.mxu0 %v3913_v52  ;;  %v4760_v55 = vand.u32 4294901760, %v3937_v9  ;;  %v447_v32 = vand.u32 4294901760, %v446_v50  ;;  %v145_v56 = vand.u32 4294901760, %v3948_v4  ;;  %v3971_v27 = vpack.c.bf16 %v328_v6, %v321_v57 }
  0x47   :  { %3044 = vmatpush3.bf16.xpose.msra.mxu1 %v3905_v39  ;;  %3074 = vmatprep.subr.bf16.mxu0 %v3924_v46  ;;  %v454_v38 = vand.u32 4294901760, %v453_v2  ;;  %v4761_v0 = vand.u32 4294901760, %v3943_v5  ;;  %v3961_v58 = vsub.f32 %v76_v42, %v193_v40  ;;  %v3966_v47 = vsub.f32 %v3933_v17, %v142_v7 }
  0x48   :  { %3046 = vmatprep.subr.bf16.mxu1 %v3935_v34  ;;  %4854 = vst [vmem:[#allocation33_spill] sm:$0xff] %v3971_v27  ;;  %v334_v50 = vsub.f32 %v3919_v41, %v4755_v16  ;;  %v196_v2 = vand.u32 4294901760, %v3956_v11  ;;  %v341_v17 = vsub.f32 %v3937_v9, %v4760_v55  ;;  %v3991_v16 = vsub.f32 %v3948_v4, %v145_v56  ;;  %v4004_v55 = vld [vmem:[%s4736_s2 + $0x68] sm:$0xff] }
  0x49   :  { %4853 = vst [vmem:[#allocation32_spill] sm:$0xff] %v3961_v58  ;;  %v4762_v42 = vand.u32 4294901760, %v3961_v58  ;;  %v460_v6 = vsub.f32 %v3943_v5, %v4761_v0  ;;  %v3993_v24 = vpack.c.bf16 %v454_v38, %v447_v32  ;;  %v199_v22 = vand.u32 4294901760, %v78_v33  ;;  %v4013_v38 = vld [vmem:[%s4736_s2 + $0xf0] sm:$0xff] }
  0x4a   :  { %v3999_v46 = vsub.f32 %v3956_v11, %v196_v2  ;;  %v4006_v0 = vpack.c.bf16 %v139_v45, %v136_v30  ;;  %v4015_v57 = vpack.c.bf16 %v193_v40, %v190_v59  ;;  %v342_v45 = vand.u32 4294901760, %v341_v17 }
  0x4b   :  { %4855 = vst [vmem:[#allocation34_spill] sm:$0xff] %v3993_v24  ;;  %v467_v23 = vsub.f32 %v3961_v58, %v4762_v42  ;;  %v335_v42 = vand.u32 4294901760, %v334_v50  ;;  %v4018_v52 = vsub.f32 %v78_v33, %v199_v22  ;;  %v461_v30 = vand.u32 4294901760, %v460_v6  ;;  %v80_v50 = vld [vmem:[%s4736_s2 + $0xf8] sm:$0xff] }
  0x4c   :  { %4856 = vst [vmem:[#allocation35_spill] sm:$0xff] %v4006_v0  ;;  %4857 = vst [vmem:[#allocation36_spill] sm:$0xff] %v4015_v57  ;;  %v4858_v4 = vand.u32 4294901760, %v3966_v47  ;;  %v151_v51 = vand.u32 4294901760, %v4004_v55  ;;  %v4859_v40 = vand.u32 4294901760, %v3991_v16  ;;  %v202_v6 = vand.u32 4294901760, %v4013_v38 }
  0x4d   :  { %v468_v33 = vand.u32 4294901760, %v467_v23  ;;  %v4775_v17 = vand.u32 4294901760, %v4018_v52  ;;  %v4862_v23 = vand.u32 4294901760, %v3999_v46  ;;  %v205_v31 = vand.u32 4294901760, %v80_v50 }
  0x4e   :  { %3076 = vmatpush3.bf16.xpose.msra.mxu0 %v3971_v27  ;;  %v348_v32 = vsub.f32 %v3966_v47, %v4858_v4  ;;  %v355_v59 = vsub.f32 %v3991_v16, %v4859_v40  ;;  %v4860_v4 = vand.u32 4294901760, %v3981_v26  ;;  %v4042_v27 = vsub.f32 %v4004_v55, %v151_v51  ;;  %v4060_v55 = vld [vmem:[#allocation2] sm:$0xff] }
  0x4f   :  { %3048 = vmatpush3.bf16.xpose.msra.mxu1 %v4006_v0  ;;  %3078 = vmatprep.subr.bf16.mxu0 %v3993_v24  ;;  %v474_v24 = vsub.f32 %v3999_v46, %v4862_v23  ;;  %v481_v40 = vsub.f32 %v4018_v52, %v4775_v17  ;;  %v4055_v54 = vpack.c.bf16 %v342_v45, %v335_v42  ;;  %v64_v17 = vld [vmem:[%s4736_s2 + $0x78] sm:$0xff] }
  0x50   :  { %3050 = vmatprep.subr.bf16.mxu1 %v4015_v57  ;;  %v4039_v11 = vsub.f32 %v3981_v26, %v4860_v4  ;;  %4861 = vst [vmem:[#allocation37_spill] sm:$0xff] %v4042_v27  ;;  %v4058_v4 = vsub.f32 %v4013_v38, %v202_v6  ;;  %v4062_v49 = vpack.c.bf16 %v468_v33, %v461_v30  ;;  %v349_v23 = vand.u32 4294901760, %v348_v32 }
  0x51   :  { %4863 = vst [vmem:[#allocation38_spill] sm:$0xff] %v4055_v54  ;;  %v356_v57 = vand.u32 4294901760, %v355_v59  ;;  %v4064_v0 = vsub.f32 %v80_v50, %v205_v31  ;;  %v4069_v34 = vpack.c.bf16 %v145_v56, %v142_v7  ;;  %v4783_v45 = vand.u32 4294901760, %v4042_v27 }
  0x52   :  { %4864 = vst [vmem:[#allocation39_spill] sm:$0xff] %v4058_v4  ;;  %4865 = vst [vmem:[#allocation40_spill] sm:$0xff] %v4062_v49  ;;  %v4782_v42 = vand.u32 4294901760, %v4039_v11  ;;  %v154_v38 = vand.u32 4294901760, %v4053_v60  ;;  %v475_v39 = vand.u32 4294901760, %v474_v24  ;;  %v482_v44 = vand.u32 4294901760, %v481_v40 }
  0x53   :  { %4866 = vst [vmem:[#allocation41_spill] sm:$0xff] %v4064_v0  ;;  %v4075_v30 = vand.u32 4294901760, %v4060_v55  ;;  %v4078_v32 = vpack.c.bf16 %v199_v22, %v196_v2  ;;  %v4788_v50 = vand.u32 4294901760, %v4058_v4  ;;  %v157_v33 = vand.u32 4294901760, %v64_v17 }
  0x54   :  { %v4083_v56 = vpack.c.bf16 %v356_v57, %v349_v23  ;;  %v4089_v24 = vpack.c.bf16 %v3733_v14, %v3731_v13  ;;  %v4093_v22 = vpack.c.bf16 %v3745_v19, %v3735_v15  ;;  %v362_v2 = vsub.f32 %v4039_v11, %v4782_v42 }
  0x55   :  { %2541 = vmatprep.mubr.f32.mxu0 %v4075_v30  ;;  %v369_v57 = vsub.f32 %v4042_v27, %v4783_v45  ;;  %v4102_v59 = vsub.f32 %v4053_v60, %v154_v38  ;;  %v4106_v40 = vpack.c.bf16 %v3754_v25, %v3749_v21  ;;  %v4109_v23 = vpack.c.bf16 %v482_v44, %v475_v39 }
  0x56   :  { %3080 = vmatpush3.bf16.xpose.msra.mxu0 %v4055_v54  ;;  %4867 = vst [vmem:[#allocation42_spill] sm:$0xff] %v4083_v56  ;;  %v4113_v7 = vpack.c.bf16 %v3794_v48, %v3779_v37  ;;  %v4117_v42 = vpack.c.bf16 %v3820_v63, %v3818_v62  ;;  %v4121_v60 = vpack.c.bf16 %v3834_v10, %v3826_v3  ;;  %v4873_v54 = vand.u32 4294901760, %v4064_v0 }
  0x57   :  { %3052 = vmatpush3.bf16.xpose.msra.mxu1 %v4069_v34  ;;  %3082 = vmatprep.subr.bf16.mxu0 %v4062_v49  ;;  %v488_v45 = vsub.f32 %v4058_v4, %v4788_v50  ;;  %v4126_v49 = vsub.f32 %v64_v17, %v157_v33  ;;  %v4130_v44 = vpack.c.bf16 %v3858_v35, %v3847_v29  ;;  %v4877_v35 = vand.u32 4294901760, %v3981_v26 }
  0x58   :  { %3054 = vmatprep.subr.bf16.mxu1 %v4078_v32  ;;  %4868 = vst [vmem:[#allocation43_spill] sm:$0xff] %v4113_v7  ;;  %4869 = vst [vmem:[#allocation44_spill] sm:$0xff] %v4117_v42  ;;  %v4134_v39 = vpack.c.bf16 %v3889_v1, %v3878_v53  ;;  %v495_v63 = vsub.f32 %v4064_v0, %v4873_v54  ;;  %v4141_v10 = vpack.c.bf16 %v3911_v43, %v3894_v8 }
  0x59   :  { %4870 = vst [vmem:[#allocation45_spill] sm:$0xff] %v4121_v60  ;;  %4871 = vst [vmem:[#allocation46_spill] sm:$0xff] %v4130_v44  ;;  %v4145_v17 = vpack.c.bf16 %v3937_v9, %v3919_v41  ;;  %v4149_v50 = vpack.c.bf16 %v3961_v58, %v3943_v5  ;;  %v4153_v1 = vpack.c.bf16 %v151_v51, %v4877_v35  ;;  %v363_v43 = vand.u32 4294901760, %v362_v2 }
  0x5a   :  { %4872 = vst [vmem:[#allocation47_spill] sm:$0xff] %v4134_v39  ;;  %4874 = vst [vmem:[#allocation48_spill] sm:$0xff] %v4141_v10  ;;  %v4155_v53 = vpack.c.bf16 %v205_v31, %v202_v6  ;;  %v4159_v54 = vpack.c.bf16 %v3991_v16, %v3966_v47  ;;  %v370_v8 = vand.u32 4294901760, %v369_v57  ;;  %v4163_v9 = vpack.c.bf16 %v4018_v52, %v3999_v46 }
  0x5b   :  { %4875 = vst [vmem:[#allocation49_spill] sm:$0xff] %v4145_v17  ;;  %4876 = vst [vmem:[#allocation50_spill] sm:$0xff] %v4149_v50  ;;  %v4167_v58 = vpack.c.bf16 %v4042_v27, %v4039_v11  ;;  %v4800_v26 = vand.u32 4294901760, %v4102_v59  ;;  %v4174_v35 = vpack.c.bf16 %v4064_v0, %v4058_v4  ;;  %v4178_v51 = vpack.c.bf16 %v4126_v49, %v4102_v59 }
  0x5c   :  { %4878 = vst [vmem:[#allocation51_spill] sm:$0xff] %v4159_v54  ;;  %4879 = vst [vmem:[#allocation52_spill] sm:$0xff] %v4163_v9  ;;  %v489_v6 = vand.u32 4294901760, %v488_v45  ;;  %v496_v2 = vand.u32 4294901760, %v495_v63  ;;  %v4183_v57 = vpack.c.bf16 %v370_v8, %v363_v43  ;;  %v4193_v27 = vpack.c.bf16 %v157_v33, %v154_v38  ;;  %v82_v33 = vld [vmem:[#allocation2 + $0x8] sm:$0xff] }
  0x5d   :  { %4880 = vst [vmem:[#allocation53_spill] sm:$0xff] %v4167_v58  ;;  %4881 = vst [vmem:[#allocation54_spill] sm:$0xff] %v4174_v35  ;;  %v376_v31 = vsub.f32 %v4102_v59, %v4800_v26  ;;  %v4884_v43 = vand.u32 4294901760, %v3731_v13  ;;  %v84_v13 = vld [vmem:[#allocation2 + $0x18] sm:$0xff] }
  0x5e   :  { %3084 = vmatpush3.bf16.xpose.msra.mxu0 %v4083_v56  ;;  %4882 = vst [vmem:[#allocation55_spill] sm:$0xff] %v4178_v51  ;;  %v4883_v56 = vand.u32 4294901760, %v4126_v49  ;;  %v4191_v4 = vpack.c.bf16 %v496_v2, %v489_v6  ;;  %v85_v2 = vld [vmem:[#allocation2 + $0x20] sm:$0xff] }
  0x5f   :  { %3056 = vmatpush3.bf16.xpose.msra.mxu1 %v4153_v1  ;;  %3086 = vmatprep.subr.bf16.mxu0 %v4109_v23  ;;  %v377_v45 = vand.u32 4294901760, %v376_v31  ;;  %v83_v31 = vld [vmem:[#allocation2 + $0x10] sm:$0xff] }
  0x60   :  { %3058 = vmatprep.subr.bf16.mxu1 %v4155_v53  ;;  %v383_v0 = vsub.f32 %v4126_v49, %v4883_v56  ;;  %v4885_v56 = vand.u32 4294901760, %v3733_v14  ;;  %v4214_v6 = vand.u32 4294901760, %v83_v31  ;;  %v4219_v14 = vand.u32 4294901760, %v84_v13 }
  0x62   :  { %v384_v63 = vand.u32 4294901760, %v383_v0  ;;  %v4206_v38 = vpack.c.bf16 %v4885_v56, %v4884_v43  ;;  %v4209_v0 = vand.u32 4294901760, %v82_v33  ;;  %v209_v56 = vsub.f32 %v4060_v55, %v4075_v30 }
  0x63   :  { %v231_v26 = vsub.f32 %v83_v31, %v4214_v6 }
  0x64   :  { %v4199_v8 = vpack.c.bf16 %v384_v63, %v377_v45  ;;  %4886 = vst [vmem:[#allocation56_spill] sm:$0xff] %v4206_v38  ;;  %v4224_v45 = vand.u32 4294901760, %v85_v2  ;;  %v86_v63 = vld [vmem:[#allocation2 + $0x28] sm:$0xff]  ;;  %v220_v55 = vsub.f32 %v82_v33, %v4209_v0  ;;  %v210_v31 = vand.u32 4294901760, %v209_v56 }
  0x65   :  { %v4229_v43 = vand.u32 4294901760, %v86_v63 }
  0x66   :  { %3088 = vmatpush3.bf16.xpose.msra.mxu0 %v4183_v57 }
  0x67   :  { %3060 = vmatpush3.bf16.xpose.msra.mxu1 %v4193_v27  ;;  %3090 = vmatprep.subr.bf16.mxu0 %v4191_v4  ;;  %v4260_v33 = vsub.f32 %v86_v63, %v4229_v43  ;;  %v4891_v63 = vld [vmem:[#allocation36_spill] sm:$0xff] }
  0x68   :  { %3222 = vmatprep.subr.bf16.mxu1 %v3729_v12 }
  0x6e   :  { %3092 = vmatpush3.bf16.xpose.msra.mxu0 %v4199_v8 }
  0x6f   :  { %3094 = vmatprep.subr.bf16.mxu0 %v4089_v24 }
  0x75   :  { %2542 = vmatmul.mubr.f32.vlgmr.msra.gmra.mrb[0].mxu0 %v4075_v30 }
  0x76   :  { %3096 = vmatpush3.bf16.xpose.msra.mxu0 %v4093_v22  ;;  %2543 = vmatprep.mubr.f32.mxu0 %v4209_v0 }
  0x77   :  { %3098 = vmatprep.subr.bf16.mxu0 %v4106_v40 }
  0x79   :  { %2544 = vmatmul.mubr.f32.gmra.mrb[2].mxu0 %v4209_v0 }
  0x7a   :  { %2545 = vmatprep.mubr.f32.mxu0 %v4214_v6 }
  0x7d   :  { %2546 = vmatmul.mubr.f32.gmra.mrb[4].mxu0 %v4214_v6 }
  0x7e   :  { %3100 = vmatpush3.bf16.xpose.msra.mxu0 %v4113_v7  ;;  %2547 = vmatprep.mubr.f32.mxu0 %v4219_v14  ;;  %v4895_v7 = vand.u32 4294901760, %v3754_v25  ;;  %v4896_v25 = vand.u32 4294901760, %v3779_v37 }
  0x7f   :  { %3102 = vmatprep.subr.bf16.mxu0 %v4117_v42  ;;  %v4894_v42 = vand.u32 4294901760, %v3749_v21 }
  0x81   :  { %2548 = vmatmul.mubr.f32.gmra.mrb[6].mxu0 %v4219_v14 }
  0x82   :  { %2549 = vmatprep.mubr.f32.mxu0 %v4224_v45 }
  0x85   :  { %2550 = vmatmul.mubr.f32.gmra.mrb[8].mxu0 %v4224_v45 }
  0x86   :  { %3104 = vmatpush3.bf16.xpose.msra.mxu0 %v4121_v60  ;;  %2551 = vmatprep.mubr.f32.mxu0 %v4229_v43 }
  0x87   :  { %3106 = vmatprep.subr.bf16.mxu0 %v4130_v44 }
  0x89   :  { %2552 = vmatmul.mubr.f32.gmra.mrb[10].mxu0 %v4229_v43 }
  0x8a   :  { %2585 = vmatprep.mubr.f32.mxu0 %v209_v56 }
  0x8e   :  { %3108 = vmatpush3.bf16.xpose.msra.mxu0 %v4134_v39  ;;  %v4893_v39 = vand.u32 4294901760, %v3745_v19 }
  0x8f   :  { %3110 = vmatprep.subr.bf16.mxu0 %v4141_v10  ;;  %v4892_v10 = vand.u32 4294901760, %v3735_v15 }
  0x91   :  { %v4281_v44 = vpack.c.bf16 %v4893_v39, %v4892_v10  ;;  %v4897_v10 = vand.u32 4294901760, %v3794_v48  ;;  %v265_v48 = vand.u32 4294901760, %v4260_v33 }
  0x96   :  { %3112 = vmatpush3.bf16.xpose.msra.mxu0 %v4145_v17  ;;  %v221_v17 = vand.u32 4294901760, %v220_v55 }
  0x97   :  { %3114 = vmatprep.subr.bf16.mxu0 %v4149_v50 }
  0x98   :  { %v222_v60 = vsub.f32 %v220_v55, %v221_v17 }
  0x9e   :  { %3116 = vmatpush3.bf16.xpose.msra.mxu0 %v4159_v54  ;;  %v211_v54 = vsub.f32 %v209_v56, %v210_v31 }
  0x9f   :  { %3118 = vmatprep.subr.bf16.mxu0 %v4163_v9  ;;  %v4890_v9 = vld [vmem:[#allocation35_spill] sm:$0xff] }
  0xa0   :  { %v212_v50 = vand.u32 4294901760, %v211_v54  ;;  %v223_v54 = vand.u32 4294901760, %v222_v60  ;;  %v4899_v60 = vld [vmem:[#allocation17_spill] sm:$0xff] }
  0xa1   :  { %v4900_v39 = vand.u32 4294901760, %v4899_v60  ;;  %v4913_v60 = vld [vmem:[#allocation25_spill] sm:$0xff] }
  0xa2   :  { %2497 = vmatprep.mubr.f32.mxu1 %v212_v50 }
  0xa3   :  { %2498 = vmatmul.mubr.f32.vlgmr.msra.gmra.mrb[0].mxu1 %v212_v50 }
  0xa4   :  { %3224 = vmatpush3.bf16.msra.mxu1 %v3743_v18  ;;  %2499 = vmatprep.mubr.f32.mxu1 %v223_v54 }
  0xa5   :  { %3226 = vmatprep.subr.bf16.mxu1 %v3747_v20 }
  0xa6   :  { %3120 = vmatpush3.bf16.xpose.msra.mxu0 %v4167_v58  ;;  %v242_v58 = vsub.f32 %v84_v13, %v4219_v14  ;;  %v4887_v13 = vld [vmem:[#allocation21_spill] sm:$0xff] }
  0xa7   :  { %3122 = vmatprep.subr.bf16.mxu0 %v4174_v35  ;;  %v4889_v35 = vld [vmem:[#allocation30_spill] sm:$0xff]  ;;  %2500 = vmatmul.mubr.f32.gmra.mrb[2].mxu1 %v223_v54 }
  0xa8   :  { %v243_v19 = vand.u32 4294901760, %v242_v58  ;;  %3228 = vmatpush3.bf16.msra.mxu1 %v3777_v36 }
  0xa9   :  { %3230 = vmatprep.subr.bf16.mxu1 %v3816_v61 }
  0xaa   :  { %v244_v50 = vsub.f32 %v242_v58, %v243_v19 }
  0xac   :  { %3232 = vmatpush3.bf16.msra.mxu1 %v3845_v28 }
  0xad   :  { %3234 = vmatprep.subr.bf16.mxu1 %v4887_v13 }
  0xae   :  { %3124 = vmatpush3.bf16.xpose.msra.mxu0 %v4178_v51  ;;  %v4255_v51 = vsub.f32 %v85_v2, %v4224_v45  ;;  %v4888_v2 = vld [vmem:[#allocation26_spill] sm:$0xff] }
  0xaf   :  { %3126 = vmatprep.subr.bf16.mxu0 %v3729_v12 }
  0xb0   :  { %3236 = vmatpush3.bf16.msra.mxu1 %v4888_v2 }
  0xb1   :  { %3238 = vmatprep.subr.bf16.mxu1 %v4889_v35 }
  0xb4   :  { %3240 = vmatpush3.bf16.msra.mxu1 %v4890_v9 }
  0xb5   :  { %2586 = vmatmul.mubr.f32.vlgmr.msra.gmra.mrb[0].mxu0 %v209_v56  ;;  %v4287_v56 = vpack.c.bf16 %v4895_v7, %v4894_v42  ;;  %v4298_v42 = vpack.c.bf16 %v4897_v10, %v4896_v25  ;;  %v4898_v7 = vand.u32 4294901760, %v3818_v62  ;;  %3242 = vmatprep.subr.bf16.mxu1 %v4891_v63 }
  0xb6   :  { %3128 = vmatpush3.bf16.xpose.msra.mxu0 %v3743_v18  ;;  %2587 = vmatprep.mubr.f32.mxu0 %v220_v55 }
  0xb7   :  { %3130 = vmatprep.subr.bf16.mxu0 %v3747_v20 }
  0xb8   :  { %3244 = vmatpush3.bf16.msra.mxu1 %v4069_v34 }
  0xb9   :  { %2588 = vmatmul.mubr.f32.gmra.mrb[2].mxu0 %v220_v55  ;;  %v245_v55 = vand.u32 4294901760, %v244_v50  ;;  %3246 = vmatprep.subr.bf16.mxu1 %v4078_v32 }
  0xba   :  { %2589 = vmatprep.mubr.f32.mxu0 %v231_v26 }
  0xbc   :  { %3248 = vmatpush3.bf16.msra.mxu1 %v4153_v1 }
  0xbd   :  { %2590 = vmatmul.mubr.f32.gmra.mrb[4].mxu0 %v231_v26  ;;  %3250 = vmatprep.subr.bf16.mxu1 %v4155_v53 }
  0xbe   :  { %3132 = vmatpush3.bf16.xpose.msra.mxu0 %v3777_v36  ;;  %2591 = vmatprep.mubr.f32.mxu0 %v242_v58 }
  0xbf   :  { %3134 = vmatprep.subr.bf16.mxu0 %v3816_v61 }
  0xc0   :  { %3252 = vmatpush3.bf16.msra.mxu1 %v4193_v27 }
  0xc1   :  { %2592 = vmatmul.mubr.f32.gmra.mrb[6].mxu0 %v242_v58  ;;  %v4901_v58 = vand.u32 4294901760, %v3826_v3  ;;  %v4908_v3 = vld [vmem:[#allocation23_spill] sm:$0xff] }
  0xc2   :  { %2593 = vmatprep.mubr.f32.mxu0 %v4255_v51 }
  0xc5   :  { %2594 = vmatmul.mubr.f32.gmra.mrb[8].mxu0 %v4255_v51 }
  0xc6   :  { %3136 = vmatpush3.bf16.xpose.msra.mxu0 %v3845_v28  ;;  %2595 = vmatprep.mubr.f32.mxu0 %v4260_v33 }
  0xc7   :  { %3138 = vmatprep.subr.bf16.mxu0 %v4887_v13 }
  0xc9   :  { %2596 = vmatmul.mubr.f32.gmra.mrb[10].mxu0 %v4260_v33 }
  0xca   :  { %2629 = vmatprep.mubr.f32.mxu0 %v210_v31 }
  0xce   :  { %3140 = vmatpush3.bf16.xpose.msra.mxu0 %v4888_v2 }
  0xcf   :  { %3142 = vmatprep.subr.bf16.mxu0 %v4889_v35 }
  0xd6   :  { %3144 = vmatpush3.bf16.xpose.msra.mxu0 %v4890_v9 }
  0xd7   :  { %3146 = vmatprep.subr.bf16.mxu0 %v4891_v63 }
  0xde   :  { %3148 = vmatpush3.bf16.xpose.msra.mxu0 %v4069_v34 }
  0xdf   :  { %3150 = vmatprep.subr.bf16.mxu0 %v4078_v32 }
  0xe6   :  { %3152 = vmatpush3.bf16.xpose.msra.mxu0 %v4153_v1 }
  0xe7   :  { %3154 = vmatprep.subr.bf16.mxu0 %v4155_v53 }
  0xee   :  { %3156 = vmatpush3.bf16.xpose.msra.mxu0 %v4193_v27 }
  0xef   :  { %3158 = vmatprep.subr.bf16.mxu0 %v4206_v38  ;;  %v232_v38 = vand.u32 4294901760, %v231_v26 }
  0xf1   :  { %v233_v15 = vsub.f32 %v231_v26, %v232_v38  ;;  %v4304_v26 = vpack.c.bf16 %v4900_v39, %v4898_v7  ;;  %v4914_v39 = vand.u32 4294901760, %v4913_v60  ;;  %v4934_v60 = vld [vmem:[#allocation37_spill] sm:$0xff] }
  0xf3   :  { %v234_v21 = vand.u32 4294901760, %v233_v15  ;;  %v4904_v15 = vand.u32 4294901760, %v3847_v29  ;;  %v4909_v29 = vand.u32 4294901760, %v4908_v3 }
  0xf5   :  { %2630 = vmatmul.mubr.f32.vlgmr.msra.gmra.mrb[0].mxu0 %v210_v31  ;;  %2501 = vmatprep.mubr.f32.mxu1 %v234_v21 }
  0xf6   :  { %3160 = vmatpush3.bf16.xpose.msra.mxu0 %v4281_v44  ;;  %2631 = vmatprep.mubr.f32.mxu0 %v221_v17 }
  0xf7   :  { %3162 = vmatprep.subr.bf16.mxu0 %v4287_v56  ;;  %2502 = vmatmul.mubr.f32.gmra.mrb[4].mxu1 %v234_v21  ;;  %v4905_v21 = vld [vmem:[#allocation20_spill] sm:$0xff] }
  0xf8   :  { %2503 = vmatprep.mubr.f32.mxu1 %v245_v55  ;;  %v4906_v25 = vand.u32 4294901760, %v4905_v21 }
  0xf9   :  { %2632 = vmatmul.mubr.f32.gmra.mrb[2].mxu0 %v221_v17  ;;  %v254_v17 = vand.u32 4294901760, %v4255_v51 }
  0xfa   :  { %2633 = vmatprep.mubr.f32.mxu0 %v232_v38  ;;  %v4326_v10 = vpack.c.bf16 %v4906_v25, %v4904_v15  ;;  %v4924_v15 = vld [vmem:[#allocation32_spill] sm:$0xff] }
  0xfb   :  { %v255_v37 = vsub.f32 %v4255_v51, %v254_v17  ;;  %2504 = vmatmul.mubr.f32.gmra.mrb[6].mxu1 %v245_v55  ;;  %v266_v51 = vsub.f32 %v4260_v33, %v265_v48  ;;  %v4910_v33 = vld [vmem:[#allocation24_spill] sm:$0xff]  ;;  %v4925_v21 = vand.u32 4294901760, %v4924_v15 }
  0xfc   :  { %4907 = vst [vmem:[#allocation21_spill] sm:$0xff] %v4326_v10  ;;  %v4911_v50 = vand.u32 4294901760, %v4910_v33  ;;  %v4931_v33 = vand.u32 4294901760, %v4018_v52  ;;  %v4942_v52 = vand.u32 4294901760, %v4102_v59 }
  0xfd   :  { %2634 = vmatmul.mubr.f32.gmra.mrb[4].mxu0 %v232_v38  ;;  %v256_v62 = vand.u32 4294901760, %v255_v37  ;;  %v4902_v38 = vld [vmem:[#allocation18_spill] sm:$0xff] }
  0xfe   :  { %3164 = vmatpush3.bf16.xpose.msra.mxu0 %v4298_v42  ;;  %2635 = vmatprep.mubr.f32.mxu0 %v243_v19  ;;  %v4903_v31 = vand.u32 4294901760, %v4902_v38  ;;  %v4338_v7 = vpack.c.bf16 %v4911_v50, %v4909_v29  ;;  %v4930_v29 = vand.u32 4294901760, %v3999_v46  ;;  %v4943_v46 = vand.u32 4294901760, %v4126_v49 }
  0xff   :  { %3166 = vmatprep.subr.bf16.mxu0 %v4304_v26  ;;  %2505 = vmatprep.mubr.f32.mxu1 %v256_v62 }
 0x100   :  { %v4319_v54 = vpack.c.bf16 %v4903_v31, %v4901_v58  ;;  %2506 = vmatmul.mubr.f32.gmra.mrb[8].mxu1 %v256_v62  ;;  %4912 = vst [vmem:[#allocation26_spill] sm:$0xff] %v4338_v7  ;;  %v4919_v62 = vld [vmem:[#allocation31_spill] sm:$0xff]  ;;  %v4922_v31 = vld [vmem:[#allocation14_spill] sm:$0xff]  ;;  %v4378_v50 = vpack.c.bf16 %v4931_v33, %v4930_v29 }
 0x101   :  { %2636 = vmatmul.mubr.f32.gmra.mrb[6].mxu0 %v243_v19  ;;  %v267_v19 = vand.u32 4294901760, %v266_v51  ;;  %v4920_v58 = vand.u32 4294901760, %v4919_v62  ;;  %3254 = vmatprep.subr.bf16.mxu1 %v4922_v31  ;;  %v4923_v51 = vand.u32 4294901760, %v3943_v5  ;;  %v4933_v5 = vand.u32 4294901760, %v4039_v11 }
 0x102   :  { %2637 = vmatprep.mubr.f32.mxu0 %v254_v17  ;;  %4932 = vst [vmem:[#allocation18_spill] sm:$0xff] %v4378_v50 }
 0x103   :  { %2507 = vmatprep.mubr.f32.mxu1 %v267_v19  ;;  %v4364_v25 = vpack.c.bf16 %v4925_v21, %v4923_v51 }
 0x104   :  { %2508 = vmatmul.mubr.f32.gmra.mrb[10].mxu1 %v267_v19  ;;  %v4927_v19 = vand.u32 4294901760, %v3966_v47  ;;  %v4937_v47 = vld [vmem:[#allocation39_spill] sm:$0xff] }
 0x105   :  { %2638 = vmatmul.mubr.f32.gmra.mrb[8].mxu0 %v254_v17  ;;  %v4915_v17 = vld [vmem:[#allocation27_spill] sm:$0xff]  ;;  %4926 = vst [vmem:[#allocation36_spill] sm:$0xff] %v4364_v25 }
 0x106   :  { %3168 = vmatpush3.bf16.xpose.msra.mxu0 %v4319_v54  ;;  %2639 = vmatprep.mubr.f32.mxu0 %v265_v48  ;;  %v4916_v55 = vand.u32 4294901760, %v4915_v17 }
 0x107   :  { %3170 = vmatprep.subr.bf16.mxu0 %v4326_v10 }
 0x108   :  { %v4346_v37 = vpack.c.bf16 %v4916_v55, %v4914_v39  ;;  %v4935_v39 = vand.u32 4294901760, %v4934_v60  ;;  %v4939_v55 = vld [vmem:[#allocation41_spill] sm:$0xff] }
 0x109   :  { %2640 = vmatmul.mubr.f32.gmra.mrb[10].mxu0 %v265_v48  ;;  %v4918_v48 = vand.u32 4294901760, %v3919_v41  ;;  %v4928_v41 = vand.u32 4294901760, %v3991_v16  ;;  %v4938_v16 = vand.u32 4294901760, %v4937_v47 }
 0x10a   :  { %2673 = vmatprep.mubr.f32.mxu0 %v4075_v30  ;;  %4917 = vst [vmem:[#allocation30_spill] sm:$0xff] %v4346_v37  ;;  %v4386_v17 = vpack.c.bf16 %v4935_v39, %v4933_v5 }
 0x10b   :  { %v4357_v38 = vpack.c.bf16 %v4920_v58, %v4918_v48  ;;  %v4372_v3 = vpack.c.bf16 %v4928_v41, %v4927_v19  ;;  %v4940_v48 = vand.u32 4294901760, %v4939_v55  ;;  %v4400_v58 = vpack.c.bf16 %v4943_v46, %v4942_v52 }
 0x10c   :  { %4936 = vst [vmem:[#allocation20_spill] sm:$0xff] %v4386_v17  ;;  %v101_v41 = vlaneseq }
 0x10d   :  { %4921 = vst [vmem:[#allocation35_spill] sm:$0xff] %v4357_v38  ;;  %4929 = vst [vmem:[#allocation17_spill] sm:$0xff] %v4372_v3  ;;  %v4392_v62 = vpack.c.bf16 %v4940_v48, %v4938_v16 }
 0x10e   :  { %3172 = vmatpush3.bf16.xpose.msra.mxu0 %v4338_v7  ;;  %4944 = vst [vmem:[#allocation24_spill] sm:$0xff] %v4400_v58  ;;  %v102_v29 = vshrl.u32 %v101_v41, 7  ;;  %v4952_v7 = vld [vmem:[#allocation34_spill] sm:$0xff] }
 0x10f   :  { %3174 = vmatprep.subr.bf16.mxu0 %v4346_v37  ;;  %4941 = vst [vmem:[#allocation23_spill] sm:$0xff] %v4392_v62 }
 0x110   :  { %v103_v33 = vsub.s32 0, %v102_v29 }
 0x116   :  { %3176 = vmatpush3.bf16.xpose.msra.mxu0 %v4357_v38 }
 0x117   :  { %3178 = vmatprep.subr.bf16.mxu0 %v4364_v25 }
 0x11e   :  { %3180 = vmatpush3.bf16.xpose.msra.mxu0 %v4372_v3 }
 0x11f   :  { %3182 = vmatprep.subr.bf16.mxu0 %v4378_v50 }
 0x126   :  { %3184 = vmatpush3.bf16.xpose.msra.mxu0 %v4386_v17 }
 0x127   :  { %3186 = vmatprep.subr.bf16.mxu0 %v4392_v62 }
 0x12e   :  { %3188 = vmatpush3.bf16.xpose.msra.mxu0 %v4400_v58 }
 0x12f   :  { %3190 = vmatprep.subr.bf16.mxu0 %v3729_v12 }
 0x135   :  { %2674 = vmatmul.mubr.f32.vlgmr.msra.gmra.mrb[0].mxu0 %v4075_v30 }
 0x136   :  { %3192 = vmatpush3.bf16.xpose.msra.mxu0 %v3743_v18  ;;  %2675 = vmatprep.mubr.f32.mxu0 %v4209_v0 }
 0x137   :  { %3194 = vmatprep.subr.bf16.mxu0 %v3747_v20 }
 0x139   :  { %2676 = vmatmul.mubr.f32.gmra.mrb[2].mxu0 %v4209_v0 }
 0x13a   :  { %2677 = vmatprep.mubr.f32.mxu0 %v4214_v6 }
 0x13d   :  { %2678 = vmatmul.mubr.f32.gmra.mrb[4].mxu0 %v4214_v6 }
 0x13e   :  { %3196 = vmatpush3.bf16.xpose.msra.mxu0 %v3777_v36  ;;  %2679 = vmatprep.mubr.f32.mxu0 %v4219_v14 }
 0x13f   :  { %3198 = vmatprep.subr.bf16.mxu0 %v3816_v61 }
 0x141   :  { %2680 = vmatmul.mubr.f32.gmra.mrb[6].mxu0 %v4219_v14 }
 0x142   :  { %2681 = vmatprep.mubr.f32.mxu0 %v4224_v45 }
 0x145   :  { %2682 = vmatmul.mubr.f32.gmra.mrb[8].mxu0 %v4224_v45 }
 0x146   :  { %3200 = vmatpush3.bf16.xpose.msra.mxu0 %v3845_v28  ;;  %2683 = vmatprep.mubr.f32.mxu0 %v4229_v43 }
 0x147   :  { %3202 = vmatprep.subr.bf16.mxu0 %v4887_v13 }
 0x149   :  { %2684 = vmatmul.mubr.f32.gmra.mrb[10].mxu0 %v4229_v43 }
 0x14a   :  { %2717 = vmatprep.mubr.f32.mxu0 %v4075_v30 }
 0x14e   :  { %3204 = vmatpush3.bf16.xpose.msra.mxu0 %v4888_v2 }
 0x14f   :  { %3206 = vmatprep.subr.bf16.mxu0 %v4889_v35 }
 0x156   :  { %3208 = vmatpush3.bf16.xpose.msra.mxu0 %v4890_v9 }
 0x157   :  { %3210 = vmatprep.subr.bf16.mxu0 %v4891_v63 }
 0x15e   :  { %3212 = vmatpush3.bf16.xpose.msra.mxu0 %v4069_v34 }
 0x15f   :  { %3214 = vmatprep.subr.bf16.mxu0 %v4078_v32 }
 0x166   :  { %3216 = vmatpush3.bf16.xpose.msra.mxu0 %v4153_v1 }
 0x167   :  { %3218 = vmatprep.subr.bf16.mxu0 %v4155_v53 }
 0x16e   :  { %3220 = vmatpush3.bf16.xpose.msra.mxu0 %v4193_v27 }
 0x175   :  { %2718 = vmatmul.mubr.f32.vlgmr.msra.gmra.mrb[0].mxu0 %v4075_v30 }
 0x176   :  { %2719 = vmatprep.mubr.f32.mxu0 %v4209_v0  ;;  %v214_v49 = vpop.f32.mrb[0].mxu1 }
 0x177   :  { %v216_v11 = vpop.f32.mrb[1].mxu1 }
 0x179   :  { %2720 = vmatmul.mubr.f32.gmra.mrb[2].mxu0 %v4209_v0 }
 0x17a   :  { %2721 = vmatprep.mubr.f32.mxu0 %v4214_v6  ;;  %v225_v30 = vpop.f32.mrb[2].mxu1 }
 0x17b   :  { %v227_v59 = vpop.f32.mrb[3].mxu1 }
 0x17d   :  { %2722 = vmatmul.mubr.f32.gmra.mrb[4].mxu0 %v4214_v6 }
 0x17e   :  { %2723 = vmatprep.mubr.f32.mxu0 %v4219_v14 }
 0x181   :  { %2724 = vmatmul.mubr.f32.gmra.mrb[6].mxu0 %v4219_v14 }
 0x182   :  { %2725 = vmatprep.mubr.f32.mxu0 %v4224_v45 }
 0x185   :  { %2726 = vmatmul.mubr.f32.gmra.mrb[8].mxu0 %v4224_v45  ;;  %v99_v45 = vld [vmem:[%s4737_s3] sm:$0x3]  ;;  %s3649_s3 = smov [#allocation8]  }
 0x186   :  { %2727 = vmatprep.mubr.f32.mxu0 %v4229_v43  ;;  %v104_v5 = vrot.slane %v99_v45, %v103_v33  ;;  %s2448_s15 = sshll.u32 %s3649_s3, 4  ;;  %s2449_s15 = int_to_ptr.vmem [resolvable:$true] %s2448_s15 }
 0x187   :  { %s3591_s16 = scalar_lea.vmem %s2449_s15, 1536  ;;  %p3596_p3 = scmp.lt.s32.totalorder %s2449_s15, %s2449_s15 }
 0x188   :  { %v215_v39 = vadd.f32 %v214_v49, %v104_v5  ;;  %v226_v52 = vadd.f32 %v225_v30, %v104_v5  ;;  %p3592_p2 = scmp.ne.s32.totalorder %s2449_s15, %s3591_s16  ;;  %p3597_p4 = scmp.lt.s32.totalorder %s3591_s16, %s3591_s16 }
 0x189   :  { %2728 = vmatmul.mubr.f32.gmra.mrb[10].mxu0 %v4229_v43  ;;  %v107_v43 = vsub.s32 1, %v102_v29 }
 0x18a   :  { %p3598_p5 = por %p3597_p4, %p3596_p3 }
 0x18b   :  { %v108_v60 = vrot.slane %v99_v45, %v107_v43 }
 0x18c   :  { %p3599_p6 = pnand %p3598_p5, %p3592_p2 }
 0x18d   :  { %v217_v47 = vadd.f32 %v216_v11, %v108_v60  ;;  %v228_v58 = vadd.f32 %v227_v59, %v108_v60 }
 0x1ca   :  { %v236_v0 = vpop.f32.mrb[4].mxu1 }
 0x1cb   :  { %v238_v31 = vpop.f32.mrb[5].mxu1  ;;  %v237_v50 = vadd.f32 %v236_v0, %v104_v5 }
 0x1cc   :  { %v239_v25 = vadd.f32 %v238_v31, %v108_v60 }
 0x1ce   :  { %v247_v51 = vpop.f32.mrb[6].mxu1 }
 0x1cf   :  { %v249_v6 = vpop.f32.mrb[7].mxu1  ;;  %v248_v11 = vadd.f32 %v247_v51, %v104_v5 }
 0x1d0   :  { %v250_v43 = vadd.f32 %v249_v6, %v108_v60 }
 0x1d3   :  { %v258_v15 = vpop.f32.mrb[8].mxu1 }
 0x1d4   :  { %v260_v21 = vpop.f32.mrb[9].mxu1 }
 0x1d5   :  { %v261_v31 = vadd.f32 %v260_v21, %v108_v60 }
 0x1d7   :  { %v269_v19 = vpop.f32.mrb[10].mxu1 }
 0x1d8   :  { %v271_v14 = vpop.f32.mrb[11].mxu1 }
 0x248   :  { %v1171_v16 = vpop.f32.mrb[0].mxu0 }
 0x249   :  { %v3414_v55 = vadd.f32 %v1171_v16, %v215_v39  ;;  %v1173_v48 = vpop.f32.mrb[1].mxu0  ;;  %v87_v39 = vld [vmem:[#allocation5] sm:$0xff] }
 0x24a   :  { %v3416_v46 = vadd.f32 %v1173_v48, %v217_v47  ;;  %v89_v48 = vld [vmem:[#allocation5 + $0x10] sm:$0xff] }
 0x24b   :  { %3493 = vtanh.f32 %v3414_v55 }
 0x24c   :  { %3495 = vtanh.f32 %v3416_v46  ;;  %v1178_v62 = vpop.f32.mrb[2].mxu0 }
 0x24d   :  { %v3418_v41 = vadd.f32 %v1178_v62, %v226_v52  ;;  %v1180_v17 = vpop.f32.mrb[3].mxu0  ;;  %v259_v62 = vadd.f32 %v258_v15, %v104_v5 }
 0x24e   :  { %v3420_v3 = vadd.f32 %v1180_v17, %v228_v58  ;;  %v88_v17 = vld [vmem:[#allocation5 + $0x8] sm:$0xff] }
 0x24f   :  { %3497 = vtanh.f32 %v3418_v41  ;;  %v270_v41 = vadd.f32 %v269_v19, %v104_v5 }
 0x250   :  { %3499 = vtanh.f32 %v3420_v3  ;;  %v1185_v29 = vpop.f32.mrb[4].mxu0 }
 0x251   :  { %v3422_v33 = vadd.f32 %v1185_v29, %v237_v50  ;;  %v1187_v49 = vpop.f32.mrb[5].mxu0 }
 0x252   :  { %v3424_v45 = vadd.f32 %v1187_v49, %v239_v25 }
 0x253   :  { %3501 = vtanh.f32 %v3422_v33  ;;  %v90_v33 = vld [vmem:[#allocation5 + $0x18] sm:$0xff] }
 0x254   :  { %3503 = vtanh.f32 %v3424_v45  ;;  %v1192_v30 = vpop.f32.mrb[6].mxu0 }
 0x255   :  { %v3494_v59 = vpop.eup %3493  ;;  %v3426_v47 = vadd.f32 %v1192_v30, %v248_v11  ;;  %v1194_v16 = vpop.f32.mrb[7].mxu0  ;;  %v272_v11 = vadd.f32 %v271_v14, %v108_v60 }
 0x256   :  { %v3496_v55 = vpop.eup %3495  ;;  %v1223_v0 = vmul.f32 0.5, %v3494_v59  ;;  %v3428_v58 = vadd.f32 %v1194_v16, %v250_v43 }
 0x257   :  { %v1224_v3 = vmul.f32 0.5, %v3496_v55  ;;  %3505 = vtanh.f32 %v3426_v47 }
 0x258   :  { %v1235_v50 = vadd.f32 %v1223_v0, %v87_v39  ;;  %3507 = vtanh.f32 %v3428_v58  ;;  %v1199_v51 = vpop.f32.mrb[8].mxu0  ;;  %v91_v39 = vld [vmem:[#allocation5 + $0x20] sm:$0xff]  ;;  %v93_v58 = vld [vmem:[#allocation5 + $0x30] sm:$0xff] }
 0x259   :  { %v3498_v25 = vpop.eup %3497  ;;  %v1236_v6 = vadd.f32 %v1224_v3, %v88_v17  ;;  %v3430_v52 = vadd.f32 %v1199_v51, %v259_v62  ;;  %v1201_v46 = vpop.f32.mrb[9].mxu0  ;;  %v92_v62 = vld [vmem:[#allocation5 + $0x28] sm:$0xff] }
 0x25a   :  { %v3500_v29 = vpop.eup %3499  ;;  %3509 = vtanh.f32 %v1235_v50  ;;  %2413 = vst [vmem:[#allocation8] sm:$0xff] %v1235_v50  ;;  %v1225_v15 = vmul.f32 0.5, %v3498_v25  ;;  %v3432_v49 = vadd.f32 %v1201_v46, %v261_v31  ;;  %v94_v50 = vld [vmem:[#allocation5 + $0x38] sm:$0xff] }
 0x25b   :  { %3511 = vtanh.f32 %v1236_v6  ;;  %2414 = vst [vmem:[#allocation8 + $0x8] sm:$0xff] %v1236_v6  ;;  %v1226_v21 = vmul.f32 0.5, %v3500_v29  ;;  %v95_v29 = vld [vmem:[#allocation5 + $0x40] sm:$0xff] }
 0x25c   :  { %v1237_v45 = vadd.f32 %v1225_v15, %v89_v48  ;;  %3513 = vtanh.f32 %v3430_v52  ;;  %v1206_v43 = vpop.f32.mrb[10].mxu0 }
 0x25d   :  { %v3502_v30 = vpop.eup %3501  ;;  %v1238_v59 = vadd.f32 %v1226_v21, %v90_v33  ;;  %3515 = vtanh.f32 %v3432_v49  ;;  %v3434_v47 = vadd.f32 %v1206_v43, %v270_v41  ;;  %v1208_v16 = vpop.f32.mrb[11].mxu0 }
 0x25e   :  { %v3504_v19 = vpop.eup %3503  ;;  %3517 = vtanh.f32 %v1237_v45  ;;  %2415 = vst [vmem:[#allocation8 + $0x10] sm:$0xff] %v1237_v45  ;;  %v1227_v5 = vmul.f32 0.5, %v3502_v30  ;;  %v3436_v55 = vadd.f32 %v1208_v16, %v272_v11  ;;  %v96_v11 = vld [vmem:[#allocation5 + $0x48] sm:$0xff] }
 0x25f   :  { %3519 = vtanh.f32 %v1238_v59  ;;  %2416 = vst [vmem:[#allocation8 + $0x18] sm:$0xff] %v1238_v59  ;;  %v1228_v14 = vmul.f32 0.5, %v3504_v19 }
 0x260   :  { %v1239_v60 = vadd.f32 %v1227_v5, %v91_v39  ;;  %3521 = vtanh.f32 %v3434_v47 }
 0x261   :  { %v3506_v0 = vpop.eup %3505  ;;  %v1240_v17 = vadd.f32 %v1228_v14, %v92_v62  ;;  %3523 = vtanh.f32 %v3436_v55  ;;  %v97_v62 = vld [vmem:[#allocation5 + $0x50] sm:$0xff] }
 0x262   :  { %v3508_v31 = vpop.eup %3507  ;;  %3525 = vtanh.f32 %v1239_v60  ;;  %2417 = vst [vmem:[#allocation8 + $0x20] sm:$0xff] %v1239_v60  ;;  %v1229_v3 = vmul.f32 0.5, %v3506_v0 }
 0x263   :  { %3527 = vtanh.f32 %v1240_v17  ;;  %2418 = vst [vmem:[#allocation8 + $0x28] sm:$0xff] %v1240_v17  ;;  %v1230_v51 = vmul.f32 0.5, %v3508_v31  ;;  %v98_v17 = vld [vmem:[#allocation5 + $0x58] sm:$0xff] }
 0x264   :  { %v3510_v25 = vpop.eup %3509  ;;  %v1241_v6 = vadd.f32 %v1229_v3, %v93_v58 }
 0x265   :  { %v3512_v48 = vpop.eup %3511  ;;  %v4445_v52 = vand.u32 4294901760, %v3510_v25  ;;  %v1242_v46 = vadd.f32 %v1230_v51, %v94_v50 }
 0x266   :  { %v3514_v41 = vpop.eup %3513  ;;  %3529 = vtanh.f32 %v1241_v6  ;;  %2419 = vst [vmem:[#allocation8 + $0x30] sm:$0xff] %v1241_v6  ;;  %v4447_v15 = vand.u32 4294901760, %v3512_v48 }
 0x267   :  { %v3516_v33 = vpop.eup %3515  ;;  %3531 = vtanh.f32 %v1242_v46  ;;  %2420 = vst [vmem:[#allocation8 + $0x38] sm:$0xff] %v1242_v46  ;;  %v1231_v49 = vmul.f32 0.5, %v3514_v41  ;;  %v4450_v21 = vsub.f32 %v3510_v25, %v4445_v52 }
 0x268   :  { %v3518_v45 = vpop.eup %3517  ;;  %v1232_v43 = vmul.f32 0.5, %v3516_v33  ;;  %v4453_v30 = vsub.f32 %v3512_v48, %v4447_v15 }
 0x269   :  { %v3520_v59 = vpop.eup %3519  ;;  %v1243_v39 = vadd.f32 %v1231_v49, %v95_v29  ;;  %v4825_v47 = vand.u32 4294901760, %v4450_v21  ;;  %v4456_v16 = vand.u32 4294901760, %v3518_v45 }
 0x26a   :  { %v3522_v19 = vpop.eup %3521  ;;  %v1244_v5 = vadd.f32 %v1232_v43, %v96_v11  ;;  %v4826_v55 = vand.u32 4294901760, %v4453_v30  ;;  %v4459_v14 = vand.u32 4294901760, %v3520_v59 }
 0x26b   :  { %v3524_v60 = vpop.eup %3523  ;;  %3533 = vtanh.f32 %v1243_v39  ;;  %2421 = vst [vmem:[#allocation8 + $0x40] sm:$0xff] %v1243_v39  ;;  %v1233_v0 = vmul.f32 0.5, %v3522_v19  ;;  %v1364_v58 = vsub.f32 %v4450_v21, %v4825_v47  ;;  %v4465_v31 = vsub.f32 %v3518_v45, %v4456_v16 }
 0x26c   :  { %v3526_v3 = vpop.eup %3525  ;;  %3535 = vtanh.f32 %v1244_v5  ;;  %2422 = vst [vmem:[#allocation8 + $0x48] sm:$0xff] %v1244_v5  ;;  %v1234_v50 = vmul.f32 0.5, %v3524_v60  ;;  %v1358_v51 = vsub.f32 %v4453_v30, %v4826_v55  ;;  %v4471_v25 = vsub.f32 %v3520_v59, %v4459_v14 }
 0x26d   :  { %v3528_v6 = vpop.eup %3527  ;;  %v1245_v48 = vadd.f32 %v1233_v0, %v97_v62  ;;  %v4821_v46 = vand.u32 4294901760, %v4465_v31  ;;  %v4474_v41 = vand.u32 4294901760, %v3526_v3  ;;  %v1365_v45 = vand.u32 4294901760, %v1364_v58 }
 0x26e   :  { %v1246_v29 = vadd.f32 %v1234_v50, %v98_v17  ;;  %v1359_v33 = vand.u32 4294901760, %v1358_v51  ;;  %v4823_v49 = vand.u32 4294901760, %v4471_v25  ;;  %v4477_v11 = vand.u32 4294901760, %v3528_v6  ;;  %v4945_v17 = vld [vmem:[#allocation15_spill] sm:$0xff]  ;;  %v4946_v51 = vld [vmem:[#allocation16_spill] sm:$0xff] }
 0x26f   :  { %3537 = vtanh.f32 %v1245_v48  ;;  %2423 = vst [vmem:[#allocation8 + $0x50] sm:$0xff] %v1245_v48  ;;  %v1379_v43 = vsub.f32 %v4465_v31, %v4821_v46  ;;  %v4483_v59 = vsub.f32 %v3526_v3, %v4474_v41 }
 0x270   :  { %v3530_v39 = vpop.eup %3529  ;;  %3539 = vtanh.f32 %v1246_v29  ;;  %2424 = vst [vmem:[#allocation8 + $0x58] sm:$0xff] %v1246_v29  ;;  %1360 = vmatprep.mubr.f32.mxu1 %v1359_v33  ;;  %v1373_v19 = vsub.f32 %v4471_v25, %v4823_v49  ;;  %v4489_v5 = vsub.f32 %v3528_v6, %v4477_v11 }
 0x271   :  { %v3532_v62 = vpop.eup %3531  ;;  %1366 = vmatmul.mubr.f32.vlgmr.msra.gmra.mrb[12].mxu1 %v1365_v45  ;;  %v4822_v60 = vand.u32 4294901760, %v4483_v59  ;;  %v4492_v0 = vand.u32 4294901760, %v3530_v39  ;;  %v1380_v48 = vand.u32 4294901760, %v1379_v43 }
 0x272   :  { %3256 = vmatpush3.bf16.msra.mxu1 %v4945_v17  ;;  %v1374_v58 = vand.u32 4294901760, %v1373_v19  ;;  %v4824_v3 = vand.u32 4294901760, %v4489_v5  ;;  %v4496_v50 = vand.u32 4294901760, %v3532_v62 }
 0x273   :  { %3258 = vmatprep.subr.bf16.mxu1 %v4946_v51  ;;  %v1394_v6 = vsub.f32 %v4483_v59, %v4822_v60  ;;  %v4503_v29 = vsub.f32 %v3530_v39, %v4492_v0  ;;  %v4947_v51 = vld [vmem:[#allocation19_spill] sm:$0xff] }
 0x274   :  { %1375 = vmatprep.mubr.f32.mxu1 %v1374_v58  ;;  %v1388_v33 = vsub.f32 %v4489_v5, %v4824_v3  ;;  %v4509_v45 = vsub.f32 %v3532_v62, %v4496_v50  ;;  %v4948_v58 = vld [vmem:[#allocation22_spill] sm:$0xff] }
 0x275   :  { %v3534_v19 = vpop.eup %3533  ;;  %1381 = vmatmul.mubr.f32.gmra.mrb[14].mxu1 %v1380_v48  ;;  %v4827_v17 = vand.u32 4294901760, %v4503_v29  ;;  %v1395_v49 = vand.u32 4294901760, %v1394_v6 }
 0x276   :  { %v3536_v43 = vpop.eup %3535  ;;  %3260 = vmatpush3.bf16.msra.mxu1 %v4947_v51  ;;  %v1389_v46 = vand.u32 4294901760, %v1388_v33  ;;  %v4830_v60 = vand.u32 4294901760, %v4509_v45  ;;  %v4514_v39 = vand.u32 4294901760, %v3534_v19 }
 0x277   :  { %3262 = vmatprep.subr.bf16.mxu1 %v4948_v58  ;;  %v1409_v62 = vsub.f32 %v4503_v29, %v4827_v17  ;;  %v4520_v3 = vand.u32 4294901760, %v3536_v43  ;;  %v4949_v58 = vld [vmem:[#allocation28_spill] sm:$0xff] }
 0x278   :  { %1390 = vmatprep.mubr.f32.mxu1 %v1389_v46  ;;  %v1403_v48 = vsub.f32 %v4509_v45, %v4830_v60  ;;  %v4526_v33 = vsub.f32 %v3534_v19, %v4514_v39  ;;  %v4950_v46 = vld [vmem:[#allocation29_spill] sm:$0xff] }
 0x279   :  { %v3538_v51 = vpop.eup %3537  ;;  %1396 = vmatmul.mubr.f32.gmra.mrb[16].mxu1 %v1395_v49  ;;  %v4529_v47 = vsub.f32 %v3536_v43, %v4520_v3  ;;  %v1410_v37 = vand.u32 4294901760, %v1409_v62  ;;  %v4951_v62 = vld [vmem:[#allocation33_spill] sm:$0xff] }
 0x27a   :  { %v3540_v6 = vpop.eup %3539  ;;  %3264 = vmatpush3.bf16.msra.mxu1 %v4949_v58  ;;  %v1404_v55 = vand.u32 4294901760, %v1403_v48  ;;  %v4832_v17 = vand.u32 4294901760, %v4526_v33  ;;  %v4533_v38 = vand.u32 4294901760, %v3538_v51 }
 0x27b   :  { %3266 = vmatprep.subr.bf16.mxu1 %v4950_v46  ;;  %v4834_v60 = vand.u32 4294901760, %v4529_v47  ;;  %v4537_v19 = vand.u32 4294901760, %v3540_v6 }
 0x27c   :  { %1405 = vmatprep.mubr.f32.mxu1 %v1404_v55  ;;  %v1424_v49 = vsub.f32 %v4526_v33, %v4832_v17  ;;  %v4543_v43 = vsub.f32 %v3538_v51, %v4533_v38 }
 0x27d   :  { %1411 = vmatmul.mubr.f32.gmra.mrb[18].mxu1 %v1410_v37  ;;  %v1418_v48 = vsub.f32 %v4529_v47, %v4834_v60  ;;  %v4549_v58 = vsub.f32 %v3540_v6, %v4537_v19  ;;  %v4953_v6 = vld [vmem:[#allocation38_spill] sm:$0xff]  ;;  %v4954_v60 = vld [vmem:[#allocation40_spill] sm:$0xff] }
 0x27e   :  { %3268 = vmatpush3.bf16.msra.mxu1 %v4951_v62  ;;  %v1438_v46 = vand.u32 4294901760, %v4543_v43  ;;  %v1425_v10 = vand.u32 4294901760, %v1424_v49  ;;  %v4965_v49 = vld [vmem:[#allocation52_spill] sm:$0xff] }
 0x27f   :  { %v1419_v55 = vand.u32 4294901760, %v1418_v48  ;;  %3270 = vmatprep.subr.bf16.mxu1 %v4952_v7  ;;  %v1432_v17 = vand.u32 4294901760, %v4549_v58  ;;  %v4955_v7 = vld [vmem:[#allocation42_spill] sm:$0xff] }
 0x280   :  { %v1439_v37 = vsub.f32 %v4543_v43, %v1438_v46 }
 0x281   :  { %1420 = vmatprep.mubr.f32.mxu1 %v1419_v55  ;;  %v1433_v51 = vsub.f32 %v4549_v58, %v1432_v17  ;;  %v4966_v55 = vld [vmem:[#allocation53_spill] sm:$0xff] }
 0x282   :  { %1426 = vmatmul.mubr.f32.gmra.mrb[20].mxu1 %v1425_v10  ;;  %v1440_v48 = vand.u32 4294901760, %v1439_v37  ;;  %v4963_v10 = vld [vmem:[#allocation50_spill] sm:$0xff] }
 0x283   :  { %3272 = vmatpush3.bf16.msra.mxu1 %v4953_v6  ;;  %v1434_v62 = vand.u32 4294901760, %v1433_v51  ;;  %v4967_v37 = vld [vmem:[#allocation54_spill] sm:$0xff]  ;;  %v4968_v51 = vld [vmem:[#allocation55_spill] sm:$0xff]  ;;  %v4969_v6 = vand.u32 4294901760, %v4453_v30 }
 0x284   :  { %3274 = vmatprep.subr.bf16.mxu1 %v4954_v60  ;;  %v4964_v60 = vld [vmem:[#allocation51_spill] sm:$0xff] }
 0x285   :  { %1435 = vmatprep.mubr.f32.mxu1 %v1434_v62  ;;  %v4970_v62 = vld [vmem:[#allocation56_spill] sm:$0xff] }
 0x286   :  { %1441 = vmatmul.mubr.f32.gmra.mrb[22].mxu1 %v1440_v48  ;;  %v4971_v48 = vand.u32 4294901760, %v4450_v21 }
 0x287   :  { %3276 = vmatpush3.bf16.msra.mxu1 %v4955_v7  ;;  %1671 = vmatprep.mubr.f32.mxu1 %v4447_v15  ;;  %v4972_v7 = vand.u32 4294901760, %v4471_v25 }
 0x288   :  { %3278 = vmatprep.subr.bf16.mxu1 %v4109_v23  ;;  %v4956_v23 = vld [vmem:[#allocation43_spill] sm:$0xff] }
 0x28b   :  { %3280 = vmatpush3.bf16.msra.mxu1 %v4183_v57  ;;  %v4957_v57 = vld [vmem:[#allocation44_spill] sm:$0xff] }
 0x28c   :  { %3282 = vmatprep.subr.bf16.mxu1 %v4191_v4  ;;  %v4958_v4 = vld [vmem:[#allocation45_spill] sm:$0xff] }
 0x28f   :  { %3284 = vmatpush3.bf16.msra.mxu1 %v4199_v8  ;;  %v4962_v8 = vld [vmem:[#allocation49_spill] sm:$0xff] }
 0x290   :  { %3286 = vmatprep.subr.bf16.mxu1 %v4089_v24  ;;  %v4959_v24 = vld [vmem:[#allocation46_spill] sm:$0xff] }
 0x292   :  { %1673 = vmatmul.mubr.f32.vlgmr.msra.gmra.mrb[24].mxu1 %v4445_v52 }
 0x293   :  { %1678 = vmatprep.mubr.f32.mxu1 %v4459_v14  ;;  %3288 = vmatpush3.bf16.msra.mxu1 %v4093_v22  ;;  %v4960_v22 = vld [vmem:[#allocation47_spill] sm:$0xff] }
 0x294   :  { %3290 = vmatprep.subr.bf16.mxu1 %v4106_v40  ;;  %v4961_v40 = vld [vmem:[#allocation48_spill] sm:$0xff] }
 0x296   :  { %1680 = vmatmul.mubr.f32.gmra.mrb[26].mxu1 %v4456_v16 }
 0x297   :  { %1685 = vmatprep.mubr.f32.mxu1 %v4477_v11  ;;  %3292 = vmatpush3.bf16.msra.mxu1 %v4956_v23  ;;  %v4974_v23 = vand.u32 4294901760, %v4489_v5 }
 0x298   :  { %3294 = vmatprep.subr.bf16.mxu1 %v4957_v57  ;;  %v4989_v57 = vld [vmem:[#allocation24_spill] sm:$0xff] }
 0x29a   :  { %1687 = vmatmul.mubr.f32.gmra.mrb[28].mxu1 %v4474_v41 }
 0x29b   :  { %1692 = vmatprep.mubr.f32.mxu1 %v4496_v50  ;;  %3296 = vmatpush3.bf16.msra.mxu1 %v4958_v4 }
 0x29c   :  { %3298 = vmatprep.subr.bf16.mxu1 %v4959_v24 }
 0x29e   :  { %1694 = vmatmul.mubr.f32.gmra.mrb[30].mxu1 %v4492_v0 }
 0x29f   :  { %1699 = vmatprep.mubr.f32.mxu1 %v4520_v3  ;;  %3300 = vmatpush3.bf16.msra.mxu1 %v4960_v22 }
 0x2a0   :  { %3302 = vmatprep.subr.bf16.mxu1 %v4961_v40 }
 0x2a2   :  { %1701 = vmatmul.mubr.f32.gmra.mrb[32].mxu1 %v4514_v39 }
 0x2a3   :  { %1706 = vmatprep.mubr.f32.mxu1 %v4537_v19  ;;  %3304 = vmatpush3.bf16.msra.mxu1 %v4962_v8 }
 0x2a4   :  { %3306 = vmatprep.subr.bf16.mxu1 %v4963_v10 }
 0x2a6   :  { %1708 = vmatmul.mubr.f32.gmra.mrb[34].mxu1 %v4533_v38 }
 0x2a7   :  { %3308 = vmatpush3.bf16.msra.mxu1 %v4964_v60  ;;  %1843 = vmatprep.mubr.f32.mxu1 %v4453_v30  ;;  %v4973_v30 = vand.u32 4294901760, %v4465_v31 }
 0x2a8   :  { %3310 = vmatprep.subr.bf16.mxu1 %v4965_v49 }
 0x2ab   :  { %3312 = vmatpush3.bf16.msra.mxu1 %v4966_v55 }
 0x2ac   :  { %3314 = vmatprep.subr.bf16.mxu1 %v4967_v37 }
 0x2af   :  { %3316 = vmatpush3.bf16.msra.mxu1 %v4968_v51 }
 0x2b0   :  { %3318 = vmatprep.subr.bf16.mxu1 %v3729_v12 }
 0x2b2   :  { %1846 = vmatmul.mubr.f32.vlgmr.msra.gmra.mrb[36].mxu1 %v4450_v21  ;;  %v4975_v21 = vand.u32 4294901760, %v4483_v59 }
 0x2b3   :  { %1852 = vmatprep.mubr.f32.mxu1 %v4471_v25  ;;  %3320 = vmatpush3.bf16.msra.mxu1 %v3743_v18  ;;  %v4976_v25 = vand.u32 4294901760, %v4509_v45 }
 0x2b4   :  { %3322 = vmatprep.subr.bf16.mxu1 %v3747_v20 }
 0x2b6   :  { %1855 = vmatmul.mubr.f32.gmra.mrb[38].mxu1 %v4465_v31  ;;  %v4979_v31 = vand.u32 4294901760, %v4529_v47 }
 0x2b7   :  { %1861 = vmatprep.mubr.f32.mxu1 %v4489_v5  ;;  %3324 = vmatpush3.bf16.msra.mxu1 %v3777_v36  ;;  %v4980_v5 = vld [vmem:[#allocation26_spill] sm:$0xff] }
 0x2b8   :  { %3326 = vmatprep.subr.bf16.mxu1 %v3816_v61 }
 0x2ba   :  { %1864 = vmatmul.mubr.f32.gmra.mrb[40].mxu1 %v4483_v59  ;;  %v4983_v59 = vld [vmem:[#allocation35_spill] sm:$0xff] }
 0x2bb   :  { %1870 = vmatprep.mubr.f32.mxu1 %v4509_v45  ;;  %3328 = vmatpush3.bf16.msra.mxu1 %v3845_v28  ;;  %v4987_v45 = vld [vmem:[#allocation20_spill] sm:$0xff] }
 0x2bc   :  { %3330 = vmatprep.subr.bf16.mxu1 %v4887_v13 }
 0x2be   :  { %1873 = vmatmul.mubr.f32.gmra.mrb[42].mxu1 %v4503_v29 }
 0x2bf   :  { %1879 = vmatprep.mubr.f32.mxu1 %v4529_v47  ;;  %3332 = vmatpush3.bf16.msra.mxu1 %v4888_v2  ;;  %v4986_v47 = vld [vmem:[#allocation18_spill] sm:$0xff] }
 0x2c0   :  { %3334 = vmatprep.subr.bf16.mxu1 %v4889_v35 }
 0x2c2   :  { %1882 = vmatmul.mubr.f32.gmra.mrb[44].mxu1 %v4526_v33 }
 0x2c3   :  { %1888 = vmatprep.mubr.f32.mxu1 %v4549_v58  ;;  %3336 = vmatpush3.bf16.msra.mxu1 %v4890_v9 }
 0x2c4   :  { %3338 = vmatprep.subr.bf16.mxu1 %v4891_v63 }
 0x2c6   :  { %1891 = vmatmul.mubr.f32.gmra.mrb[46].mxu1 %v4543_v43 }
 0x2c7   :  { %3340 = vmatpush3.bf16.msra.mxu1 %v4069_v34  ;;  %1995 = vmatprep.mubr.f32.mxu1 %v4969_v6 }
 0x2c8   :  { %3342 = vmatprep.subr.bf16.mxu1 %v4078_v32 }
 0x2cb   :  { %3344 = vmatpush3.bf16.msra.mxu1 %v4153_v1 }
 0x2cc   :  { %3346 = vmatprep.subr.bf16.mxu1 %v4155_v53 }
 0x2cf   :  { %3348 = vmatpush3.bf16.msra.mxu1 %v4193_v27 }
 0x2d0   :  { %3350 = vmatprep.subr.bf16.mxu1 %v4970_v62 }
 0x2d2   :  { %1999 = vmatmul.mubr.f32.vlgmr.msra.gmra.mrb[48].mxu1 %v4971_v48 }
 0x2d3   :  { %2006 = vmatprep.mubr.f32.mxu1 %v4972_v7  ;;  %3352 = vmatpush3.bf16.msra.mxu1 %v4281_v44  ;;  %v4977_v44 = vld [vmem:[#allocation21_spill] sm:$0xff] }
 0x2d4   :  { %3354 = vmatprep.subr.bf16.mxu1 %v4287_v56  ;;  %v4978_v56 = vand.u32 4294901760, %v4503_v29  ;;  %v4985_v29 = vld [vmem:[#allocation17_spill] sm:$0xff] }
 0x2d6   :  { %2010 = vmatmul.mubr.f32.gmra.mrb[50].mxu1 %v4973_v30 }
 0x2d7   :  { %2017 = vmatprep.mubr.f32.mxu1 %v4974_v23  ;;  %3356 = vmatpush3.bf16.msra.mxu1 %v4298_v42  ;;  %v4981_v42 = vld [vmem:[#allocation30_spill] sm:$0xff] }
 0x2d8   :  { %3358 = vmatprep.subr.bf16.mxu1 %v4304_v26  ;;  %v4982_v26 = vand.u32 4294901760, %v4526_v33  ;;  %v4988_v33 = vld [vmem:[#allocation23_spill] sm:$0xff] }
 0x2da   :  { %2021 = vmatmul.mubr.f32.gmra.mrb[52].mxu1 %v4975_v21 }
 0x2db   :  { %2028 = vmatprep.mubr.f32.mxu1 %v4976_v25  ;;  %3360 = vmatpush3.bf16.msra.mxu1 %v4319_v54  ;;  %v4984_v54 = vld [vmem:[#allocation36_spill] sm:$0xff] }
 0x2dc   :  { %3362 = vmatprep.subr.bf16.mxu1 %v4977_v44 }
 0x2de   :  { %2032 = vmatmul.mubr.f32.gmra.mrb[54].mxu1 %v4978_v56 }
 0x2df   :  { %2039 = vmatprep.mubr.f32.mxu1 %v4979_v31  ;;  %3364 = vmatpush3.bf16.msra.mxu1 %v4980_v5 }
 0x2e0   :  { %3366 = vmatprep.subr.bf16.mxu1 %v4981_v42 }
 0x2e2   :  { %2043 = vmatmul.mubr.f32.gmra.mrb[56].mxu1 %v4982_v26 }
 0x2e3   :  { %2050 = vmatprep.mubr.f32.mxu1 %v1432_v17  ;;  %3368 = vmatpush3.bf16.msra.mxu1 %v4983_v59 }
 0x2e4   :  { %3370 = vmatprep.subr.bf16.mxu1 %v4984_v54 }
 0x2e6   :  { %2054 = vmatmul.mubr.f32.gmra.mrb[58].mxu1 %v1438_v46 }
 0x2e7   :  { %3372 = vmatpush3.bf16.msra.mxu1 %v4985_v29  ;;  %2220 = vmatprep.mubr.f32.mxu1 %v4447_v15 }
 0x2e8   :  { %3374 = vmatprep.subr.bf16.mxu1 %v4986_v47 }
 0x2eb   :  { %3376 = vmatpush3.bf16.msra.mxu1 %v4987_v45 }
 0x2ec   :  { %3378 = vmatprep.subr.bf16.mxu1 %v4988_v33 }
 0x2ef   :  { %3380 = vmatpush3.bf16.msra.mxu1 %v4989_v57 }
 0x2f0   :  { %3382 = vmatprep.subr.bf16.mxu1 %v3729_v12 }
 0x2f2   :  { %2222 = vmatmul.mubr.f32.vlgmr.msra.gmra.mrb[60].mxu1 %v4445_v52 }
 0x2f3   :  { %2227 = vmatprep.mubr.f32.mxu1 %v4459_v14  ;;  %3384 = vmatpush3.bf16.msra.mxu1 %v3743_v18 }
 0x2f4   :  { %3386 = vmatprep.subr.bf16.mxu1 %v3747_v20 }
 0x2f6   :  { %2229 = vmatmul.mubr.f32.gmra.mrb[62].mxu1 %v4456_v16 }
 0x2f7   :  { %2234 = vmatprep.mubr.f32.mxu1 %v4477_v11  ;;  %3388 = vmatpush3.bf16.msra.mxu1 %v3777_v36 }
 0x2f8   :  { %3390 = vmatprep.subr.bf16.mxu1 %v3816_v61 }
 0x2fa   :  { %2236 = vmatmul.mubr.f32.gmra.mrb[64].mxu1 %v4474_v41 }
 0x2fb   :  { %2241 = vmatprep.mubr.f32.mxu1 %v4496_v50  ;;  %3392 = vmatpush3.bf16.msra.mxu1 %v3845_v28 }
 0x2fc   :  { %3394 = vmatprep.subr.bf16.mxu1 %v4887_v13 }
 0x2fe   :  { %2243 = vmatmul.mubr.f32.gmra.mrb[66].mxu1 %v4492_v0 }
 0x2ff   :  { %2248 = vmatprep.mubr.f32.mxu1 %v4520_v3  ;;  %3396 = vmatpush3.bf16.msra.mxu1 %v4888_v2 }
 0x300   :  { %3398 = vmatprep.subr.bf16.mxu1 %v4889_v35 }
 0x302   :  { %2250 = vmatmul.mubr.f32.gmra.mrb[68].mxu1 %v4514_v39 }
 0x303   :  { %2255 = vmatprep.mubr.f32.mxu1 %v4537_v19  ;;  %3400 = vmatpush3.bf16.msra.mxu1 %v4890_v9 }
 0x304   :  { %3402 = vmatprep.subr.bf16.mxu1 %v4891_v63 }
 0x306   :  { %2257 = vmatmul.mubr.f32.gmra.mrb[70].mxu1 %v4533_v38 }
 0x307   :  { %3404 = vmatpush3.bf16.msra.mxu1 %v4069_v34  ;;  %2359 = vmatprep.mubr.f32.mxu1 %v4447_v15 }
 0x308   :  { %3406 = vmatprep.subr.bf16.mxu1 %v4078_v32 }
 0x30b   :  { %3408 = vmatpush3.bf16.msra.mxu1 %v4153_v1 }
 0x30c   :  { %3410 = vmatprep.subr.bf16.mxu1 %v4155_v53 }
 0x30f   :  { %3412 = vmatpush3.bf16.msra.mxu1 %v4193_v27 }
 0x312   :  { %2361 = vmatmul.mubr.f32.vlgmr.msra.gmra.mrb[72].mxu1 %v4445_v52 }
 0x313   :  { %2366 = vmatprep.mubr.f32.mxu1 %v4459_v14 }
 0x316   :  { %2368 = vmatmul.mubr.f32.gmra.mrb[74].mxu1 %v4456_v16 }
 0x317   :  { %2373 = vmatprep.mubr.f32.mxu1 %v4477_v11 }
 0x31a   :  { %2375 = vmatmul.mubr.f32.gmra.mrb[76].mxu1 %v4474_v41 }
 0x31b   :  { %2380 = vmatprep.mubr.f32.mxu1 %v4496_v50 }
 0x31e   :  { %2382 = vmatmul.mubr.f32.gmra.mrb[78].mxu1 %v4492_v0 }
 0x31f   :  { %2387 = vmatprep.mubr.f32.mxu1 %v4520_v3 }
 0x322   :  { %2389 = vmatmul.mubr.f32.gmra.mrb[80].mxu1 %v4514_v39 }
 0x323   :  { %2394 = vmatprep.mubr.f32.mxu1 %v4537_v19 }
 0x326   :  { %2396 = vmatmul.mubr.f32.gmra.mrb[82].mxu1 %v4533_v38 }
 0x344   :  { %v2761_v12 = vpop.f32.mrb[12].mxu1 }
 0x345   :  { %v2762_v18 = vpop.f32.mrb[13].mxu1 }
 0x346   :  { %v2763_v20 = vadd.f32 %v2762_v18, %v2761_v12 }
 0x348   :  { %v2764_v27 = vpop.f32.mrb[14].mxu1 }
 0x349   :  { %v2765_v36 = vpop.f32.mrb[15].mxu1 }
 0x34a   :  { %v2766_v61 = vadd.f32 %v2765_v36, %v2764_v27 }
 0x34c   :  { %v2767_v9 = vpop.f32.mrb[16].mxu1 }
 0x34d   :  { %v2768_v28 = vpop.f32.mrb[17].mxu1 }
 0x34e   :  { %v2769_v34 = vadd.f32 %v2768_v28, %v2767_v9 }
 0x350   :  { %v2770_v53 = vpop.f32.mrb[18].mxu1 }
 0x351   :  { %v2771_v1 = vpop.f32.mrb[19].mxu1 }
 0x352   :  { %v2772_v32 = vadd.f32 %v2771_v1, %v2770_v53 }
 0x355   :  { %v2773_v35 = vpop.f32.mrb[20].mxu1 }
 0x356   :  { %v2774_v13 = vpop.f32.mrb[21].mxu1 }
 0x357   :  { %v2775_v2 = vadd.f32 %v2774_v13, %v2773_v35 }
 0x359   :  { %v2776_v63 = vpop.f32.mrb[22].mxu1 }
 0x35a   :  { %v2777_v52 = vpop.f32.mrb[23].mxu1 }
 0x35b   :  { %v2778_v15 = vadd.f32 %v2777_v52, %v2776_v63 }
 0x365   :  { %v2811_v16 = vpop.f32.mrb[24].mxu1 }
 0x366   :  { %v2812_v38 = vpop.f32.mrb[25].mxu1 }
 0x367   :  { %v2813_v14 = vadd.f32 %v2812_v38, %v2811_v16 }
 0x369   :  { %v1675_v41 = vadd.f32 %v2813_v14, %v2763_v20  ;;  %v2814_v11 = vpop.f32.mrb[26].mxu1 }
 0x36a   :  { %v2815_v0 = vpop.f32.mrb[27].mxu1 }
 0x36b   :  { %v2816_v3 = vadd.f32 %v2815_v0, %v2814_v11 }
 0x36d   :  { %v1682_v50 = vadd.f32 %v2816_v3, %v2766_v61  ;;  %v2817_v17 = vpop.f32.mrb[28].mxu1 }
 0x36e   :  { %v2818_v39 = vpop.f32.mrb[29].mxu1 }
 0x36f   :  { %v2819_v19 = vadd.f32 %v2818_v39, %v2817_v17 }
 0x371   :  { %v1689_v43 = vadd.f32 %v2819_v19, %v2769_v34  ;;  %v2820_v58 = vpop.f32.mrb[30].mxu1 }
 0x372   :  { %v2821_v46 = vpop.f32.mrb[31].mxu1 }
 0x373   :  { %v2822_v4 = vadd.f32 %v2821_v46, %v2820_v58 }
 0x375   :  { %v1696_v24 = vadd.f32 %v2822_v4, %v2772_v32  ;;  %v2823_v22 = vpop.f32.mrb[32].mxu1 }
 0x376   :  { %v2824_v40 = vpop.f32.mrb[33].mxu1 }
 0x377   :  { %v2825_v8 = vadd.f32 %v2824_v40, %v2823_v22 }
 0x379   :  { %v1703_v10 = vadd.f32 %v2825_v8, %v2775_v2  ;;  %v2826_v60 = vpop.f32.mrb[34].mxu1 }
 0x37a   :  { %v2827_v49 = vpop.f32.mrb[35].mxu1 }
 0x37b   :  { %v2828_v55 = vadd.f32 %v2827_v49, %v2826_v60 }
 0x37d   :  { %v1710_v37 = vadd.f32 %v2828_v55, %v2778_v15 }
 0x37e   :  { %3602 = shalt.err (!%p3599_p6)
}
 0x37f   :  { %s3603_s20 = scalar_lea.hbm %s4739_s5, 1536 }
 0x380   :  { %p3604_p7 = scmp.ne.s32.totalorder %s4739_s5, %s3603_s20  ;;  %p3607_p8 = scmp.lt.u32.totalorder %s3603_s20, %s4739_s5 }
 0x382   :  { %p3609_p9 = pnand %p3607_p8, %p3604_p7 }
 0x384   :  { %3612 = shalt.err (!%p3609_p9)
}
 0x385   :  { %2454 = dma.vmem_to_hbm [thread:$0]  %s2449_s15, 1536, %s4739_s5, [#allocation9], %s3647_s0, %s3647_s0, %s3648_s17   ;;  %v2861_v51 = vpop.f32.mrb[36].mxu1 }
 0x386   :  { %v2862_v6 = vpop.f32.mrb[37].mxu1  ;;  %s3650_s5 = smov [#allocation7]  }
 0x387   :  { %v2863_v62 = vadd.f32 %v2862_v6, %v2861_v51  ;;  %s2436_s0 = sshll.u32 %s3650_s5, 4  ;;  %s2437_s0 = int_to_ptr.vmem [resolvable:$true] %s2436_s0 }
 0x388   :  { %s3613_s17 = scalar_lea.vmem %s2437_s0, 768  ;;  %p3618_p11 = scmp.lt.s32.totalorder %s2437_s0, %s2437_s0 }
 0x389   :  { %v1848_v48 = vadd.f32 %v2863_v62, %v1675_v41  ;;  %v2864_v7 = vpop.f32.mrb[38].mxu1  ;;  %p3614_p10 = scmp.ne.s32.totalorder %s2437_s0, %s3613_s17  ;;  %p3619_p12 = scmp.lt.s32.totalorder %s3613_s17, %s3613_s17 }
 0x38a   :  { %v2865_v30 = vpop.f32.mrb[39].mxu1 }
 0x38b   :  { %v2866_v23 = vadd.f32 %v2865_v30, %v2864_v7  ;;  %p3620_p13 = por %p3619_p12, %p3618_p11 }
 0x38d   :  { %v1857_v21 = vadd.f32 %v2866_v23, %v1682_v50  ;;  %v2867_v25 = vpop.f32.mrb[40].mxu1  ;;  %p3621_p0 = pnand %p3620_p13, %p3614_p10 }
 0x38e   :  { %v2868_v44 = vpop.f32.mrb[41].mxu1 }
 0x38f   :  { %v2869_v56 = vadd.f32 %v2868_v44, %v2867_v25 }
 0x391   :  { %v1866_v31 = vadd.f32 %v2869_v56, %v1689_v43  ;;  %v2870_v5 = vpop.f32.mrb[42].mxu1 }
 0x392   :  { %v2871_v42 = vpop.f32.mrb[43].mxu1 }
 0x393   :  { %v2872_v26 = vadd.f32 %v2871_v42, %v2870_v5 }
 0x395   :  { %v1875_v59 = vadd.f32 %v2872_v26, %v1696_v24  ;;  %v2873_v54 = vpop.f32.mrb[44].mxu1 }
 0x396   :  { %v2874_v29 = vpop.f32.mrb[45].mxu1 }
 0x397   :  { %v2875_v47 = vadd.f32 %v2874_v29, %v2873_v54  ;;  %v3541_v54 = vld [vmem:[#allocation2] sm:$0xff] }
 0x399   :  { %v1884_v45 = vadd.f32 %v2875_v47, %v1703_v10  ;;  %v2876_v33 = vpop.f32.mrb[46].mxu1 }
 0x39a   :  { %v2877_v57 = vpop.f32.mrb[47].mxu1 }
 0x39b   :  { %v2878_v12 = vadd.f32 %v2877_v57, %v2876_v33 }
 0x39d   :  { %v1893_v18 = vadd.f32 %v2878_v12, %v1710_v37 }
 0x3a5   :  { %v2911_v20 = vpop.f32.mrb[48].mxu1 }
 0x3a6   :  { %v2912_v27 = vpop.f32.mrb[49].mxu1 }
 0x3a7   :  { %v2913_v36 = vadd.f32 %v2912_v27, %v2911_v20 }
 0x3a9   :  { %v2001_v61 = vadd.f32 %v2913_v36, %v1848_v48  ;;  %v2914_v9 = vpop.f32.mrb[50].mxu1 }
 0x3aa   :  { %v2915_v28 = vpop.f32.mrb[51].mxu1 }
 0x3ab   :  { %v2916_v34 = vadd.f32 %v2915_v28, %v2914_v9 }
 0x3ad   :  { %v2012_v53 = vadd.f32 %v2916_v34, %v1857_v21  ;;  %v2917_v1 = vpop.f32.mrb[52].mxu1  ;;  %v3543_v34 = vld [vmem:[#allocation2 + $0x10] sm:$0xff] }
 0x3ae   :  { %v2918_v32 = vpop.f32.mrb[53].mxu1 }
 0x3af   :  { %v2919_v35 = vadd.f32 %v2918_v32, %v2917_v1 }
 0x3b1   :  { %v2023_v13 = vadd.f32 %v2919_v35, %v1866_v31  ;;  %v2920_v2 = vpop.f32.mrb[54].mxu1 }
 0x3b2   :  { %v2921_v63 = vpop.f32.mrb[55].mxu1 }
 0x3b3   :  { %v2922_v52 = vadd.f32 %v2921_v63, %v2920_v2  ;;  %v3544_v63 = vld [vmem:[#allocation2 + $0x18] sm:$0xff] }
 0x3b5   :  { %v2034_v15 = vadd.f32 %v2922_v52, %v1875_v59  ;;  %v2923_v16 = vpop.f32.mrb[56].mxu1 }
 0x3b6   :  { %v2924_v38 = vpop.f32.mrb[57].mxu1 }
 0x3b7   :  { %v2925_v14 = vadd.f32 %v2924_v38, %v2923_v16 }
 0x3b9   :  { %v2045_v41 = vadd.f32 %v2925_v14, %v1884_v45  ;;  %v2926_v11 = vpop.f32.mrb[58].mxu1 }
 0x3ba   :  { %v2927_v0 = vpop.f32.mrb[59].mxu1 }
 0x3bb   :  { %v2928_v3 = vadd.f32 %v2927_v0, %v2926_v11  ;;  %v3545_v11 = vld [vmem:[#allocation2 + $0x20] sm:$0xff] }
 0x3bd   :  { %v2056_v50 = vadd.f32 %v2928_v3, %v1893_v18  ;;  %v3542_v18 = vld [vmem:[#allocation2 + $0x8] sm:$0xff] }
 0x3c5   :  { %v2961_v17 = vpop.f32.mrb[60].mxu1 }
 0x3c6   :  { %v2962_v39 = vpop.f32.mrb[61].mxu1 }
 0x3c7   :  { %v2963_v19 = vadd.f32 %v2962_v39, %v2961_v17  ;;  %v3546_v17 = vld [vmem:[#allocation2 + $0x28] sm:$0xff] }
 0x3c9   :  { %v2224_v43 = vadd.f32 %v2963_v19, %v2001_v61  ;;  %v2964_v58 = vpop.f32.mrb[62].mxu1 }
 0x3ca   :  { %v2965_v46 = vpop.f32.mrb[63].mxu1 }
 0x3cb   :  { %v2966_v4 = vadd.f32 %v2965_v46, %v2964_v58 }
 0x3cd   :  { %v2231_v24 = vadd.f32 %v2966_v4, %v2012_v53  ;;  %v2967_v22 = vpop.f32.mrb[64].mxu1 }
 0x3ce   :  { %v2968_v40 = vpop.f32.mrb[65].mxu1 }
 0x3cf   :  { %v2969_v8 = vadd.f32 %v2968_v40, %v2967_v22 }
 0x3d1   :  { %v2238_v10 = vadd.f32 %v2969_v8, %v2023_v13  ;;  %v2970_v60 = vpop.f32.mrb[66].mxu1 }
 0x3d2   :  { %v2971_v49 = vpop.f32.mrb[67].mxu1 }
 0x3d3   :  { %v2972_v55 = vadd.f32 %v2971_v49, %v2970_v60 }
 0x3d5   :  { %v2245_v37 = vadd.f32 %v2972_v55, %v2034_v15  ;;  %v2973_v51 = vpop.f32.mrb[68].mxu1 }
 0x3d6   :  { %v2974_v6 = vpop.f32.mrb[69].mxu1 }
 0x3d7   :  { %v2975_v62 = vadd.f32 %v2974_v6, %v2973_v51 }
 0x3d9   :  { %v2252_v48 = vadd.f32 %v2975_v62, %v2045_v41  ;;  %v2976_v7 = vpop.f32.mrb[70].mxu1 }
 0x3da   :  { %v2977_v30 = vpop.f32.mrb[71].mxu1 }
 0x3db   :  { %v2978_v23 = vadd.f32 %v2977_v30, %v2976_v7 }
 0x3dd   :  { %v2259_v21 = vadd.f32 %v2978_v23, %v2056_v50 }
 0x3e5   :  { %v3011_v25 = vpop.f32.mrb[72].mxu1 }
 0x3e6   :  { %v3012_v44 = vpop.f32.mrb[73].mxu1 }
 0x3e7   :  { %v3013_v56 = vadd.f32 %v3012_v44, %v3011_v25 }
 0x3e9   :  { %v2363_v31 = vadd.f32 %v3013_v56, %v2224_v43  ;;  %v3014_v5 = vpop.f32.mrb[74].mxu1 }
 0x3ea   :  { %v3015_v42 = vpop.f32.mrb[75].mxu1 }
 0x3eb   :  { %v2401_v26 = vmul.f32 0.5, %v2363_v31  ;;  %v3016_v59 = vadd.f32 %v3015_v42, %v3014_v5 }
 0x3ed   :  { %v2407_v29 = vsub.f32 %v3541_v54, %v2401_v26  ;;  %v2370_v47 = vadd.f32 %v3016_v59, %v2231_v24  ;;  %v3017_v45 = vpop.f32.mrb[76].mxu1 }
 0x3ee   :  { %v3018_v33 = vpop.f32.mrb[77].mxu1 }
 0x3ef   :  { %2425 = vst [vmem:[#allocation7] sm:$0xff] %v2407_v29  ;;  %v2402_v57 = vmul.f32 0.5, %v2370_v47  ;;  %v3019_v12 = vadd.f32 %v3018_v33, %v3017_v45 }
 0x3f1   :  { %v2408_v20 = vsub.f32 %v3542_v18, %v2402_v57  ;;  %v2377_v27 = vadd.f32 %v3019_v12, %v2238_v10  ;;  %v3020_v36 = vpop.f32.mrb[78].mxu1 }
 0x3f2   :  { %v3021_v61 = vpop.f32.mrb[79].mxu1 }
 0x3f3   :  { %2426 = vst [vmem:[#allocation7 + $0x8] sm:$0xff] %v2408_v20  ;;  %v2403_v9 = vmul.f32 0.5, %v2377_v27  ;;  %v3022_v28 = vadd.f32 %v3021_v61, %v3020_v36 }
 0x3f5   :  { %v2409_v53 = vsub.f32 %v3543_v34, %v2403_v9  ;;  %v2384_v1 = vadd.f32 %v3022_v28, %v2245_v37  ;;  %v3023_v32 = vpop.f32.mrb[80].mxu1 }
 0x3f6   :  { %v3024_v35 = vpop.f32.mrb[81].mxu1 }
 0x3f7   :  { %2427 = vst [vmem:[#allocation7 + $0x10] sm:$0xff] %v2409_v53  ;;  %v2404_v13 = vmul.f32 0.5, %v2384_v1  ;;  %v3025_v2 = vadd.f32 %v3024_v35, %v3023_v32 }
 0x3f9   :  { %v2410_v52 = vsub.f32 %v3544_v63, %v2404_v13  ;;  %v2391_v15 = vadd.f32 %v3025_v2, %v2252_v48  ;;  %v3026_v16 = vpop.f32.mrb[82].mxu1 }
 0x3fa   :  { %v3027_v38 = vpop.f32.mrb[83].mxu1 }
 0x3fb   :  { %2428 = vst [vmem:[#allocation7 + $0x18] sm:$0xff] %v2410_v52  ;;  %v2405_v14 = vmul.f32 0.5, %v2391_v15  ;;  %v3028_v41 = vadd.f32 %v3027_v38, %v3026_v16 }
 0x3fd   :  { %v2411_v0 = vsub.f32 %v3545_v11, %v2405_v14  ;;  %v2398_v3 = vadd.f32 %v3028_v41, %v2259_v21 }
 0x3ff   :  { %2429 = vst [vmem:[#allocation7 + $0x20] sm:$0xff] %v2411_v0  ;;  %v2406_v50 = vmul.f32 0.5, %v2398_v3 }
 0x401   :  { %v2412_v39 = vsub.f32 %v3546_v17, %v2406_v50 }
 0x403   :  { %2430 = vst [vmem:[#allocation7 + $0x28] sm:$0xff] %v2412_v39 }
 0x404   :  { %3624 = shalt.err (!%p3621_p0)
}
 0x405   :  { %s3625_s30 = scalar_lea.hbm %s4738_s4, 768 }
 0x406   :  { %p3626_p1 = scmp.ne.s32.totalorder %s4738_s4, %s3625_s30  ;;  %p3629_p2 = scmp.lt.u32.totalorder %s3625_s30, %s4738_s4 }
 0x408   :  { %p3631_p3 = pnand %p3629_p2, %p3626_p1 }
 0x40a   :  { %3634 = shalt.err (!%p3631_p3)
}
 0x40b   :  { %2442 = dma.vmem_to_hbm [thread:$0]  %s2437_s0, 768, %s4738_s4, [#allocation4], %s3644_s28, %s3644_s28, %s3645_s29  }
 0x40c   :  { %3639 = dma.done.wait [#allocation4], 768  }
 0x40d   :  { %3640 = vsyncadd [#allocation4], 4294966528 }
 0x40e   :  { %3641 = dma.done.wait [#allocation9], 1536  }
 0x40f   :  { %3642 = vsyncadd [#allocation9], 4294965760 }
 0x410   :  { %2461 = vsyncpa [#allocation3], 1 }
 0x411   :  { %2462 = vsyncpa [#allocation6], 1 }
 0x412   :  { %2463 = vsyncpa [#allocation4], 1 }
 0x413   :  { %2464 = vsyncpa [#allocation9], 1 }

// kernel: tpu_custom_call.1
= control target key start
LH: loop header
LB: loop body
LE: loop exit
PB: predicated region body
PF: predicated region fallthrough
CT: control target
= control target key end

     0   :  { %11 = vsyncpa [#allocation3], 0  ;;  %s4734_s0 = inlined_call_operand.hbm [shape: f32[48,128], index: 0, kind: input, shape index: {}, may-alias: {0,4}]   ;;  %s4735_s1 = inlined_call_operand.hbm [shape: f32[48,256], index: 1, kind: input, shape index: {}, may-alias: {1,5}]   ;;  %s4736_s2 = inlined_call_operand.vmem [shape: f32[256,128], index: 2, kind: input, shape index: {}]   ;;  %s4737_s3 = inlined_call_operand.vmem [shape: f32[1,256], index: 3, kind: input, shape index: {}]   ;;  %s4738_s4 = inlined_call_operand.hbm [shape: f32[48,128], index: 4, kind: output, shape index: {0}, may-alias: {0,4}]   ;;  %s4739_s5 = inlined_call_operand.hbm [shape: f32[48,256], index: 5, kind: output, shape index: {1}, may-alias: {1,5}]  }
   0x1   :  { %12 = vsyncpa [#allocation6], 0 }
   0x2   :  { %13 = vsyncpa [#allocation4], 0 }
   0x3   :  { %14 = vsyncpa [#allocation9], 0  ;;  %s3643_s18 = smov [#allocation2]   ;;  %s3547_s22 = scalar_lea.hbm %s4734_s0, 768 }
   0x4   :  { %s20_s19 = sshll.u32 %s3643_s18, 4  ;;  %p3548_p0 = scmp.ne.s32.totalorder %s4734_s0, %s3547_s22  ;;  %s21_s19 = int_to_ptr.vmem [resolvable:$true] %s20_s19 }
   0x5   :  { %p3551_p1 = scmp.lt.u32.totalorder %s3547_s22, %s4734_s0 }
   0x7   :  { %p3553_p2 = pnand %p3551_p1, %p3548_p0 }
   0x9   :  { %3556 = shalt.err (!%p3553_p2)
}
   0xa   :  { %s3557_s27 = scalar_lea.vmem %s21_s19, 768  ;;  %p3562_p4 = scmp.lt.s32.totalorder %s21_s19, %s21_s19 }
   0xb   :  { %p3558_p3 = scmp.ne.s32.totalorder %s21_s19, %s3557_s27  ;;  %p3563_p5 = scmp.lt.s32.totalorder %s3557_s27, %s3557_s27 }
   0xd   :  { %p3564_p6 = por %p3563_p5, %p3562_p4 }
   0xf   :  { %p3565_p7 = pnand %p3564_p6, %p3558_p3 }
  0x11   :  { %3568 = shalt.err (!%p3565_p7)
}
  0x12   :  { %s3644_s28 = smov 128   ;;  %s3645_s29 = smov 8  }
  0x13   :  { %26 = dma.hbm_to_vmem [thread:$0]  %s4734_s0, 768, %s21_s19, [#allocation3], %s3644_s28, %s3644_s28, %s3645_s29  }
  0x14   :  { %s3646_s7 = smov [#allocation5]   ;;  %s3569_s11 = scalar_lea.hbm %s4735_s1, 1536 }
  0x15   :  { %s32_s8 = sshll.u32 %s3646_s7, 4  ;;  %p3570_p8 = scmp.ne.s32.totalorder %s4735_s1, %s3569_s11  ;;  %s33_s8 = int_to_ptr.vmem [resolvable:$true] %s32_s8 }
  0x16   :  { %p3573_p9 = scmp.lt.u32.totalorder %s3569_s11, %s4735_s1 }
  0x18   :  { %p3575_p10 = pnand %p3573_p9, %p3570_p8 }
  0x1a   :  { %3578 = shalt.err (!%p3575_p10)
}
  0x1b   :  { %s3579_s16 = scalar_lea.vmem %s33_s8, 1536  ;;  %p3584_p12 = scmp.lt.s32.totalorder %s33_s8, %s33_s8 }
  0x1c   :  { %p3580_p11 = scmp.ne.s32.totalorder %s33_s8, %s3579_s16  ;;  %p3585_p13 = scmp.lt.s32.totalorder %s3579_s16, %s3579_s16 }
  0x1e   :  { %p3586_p0 = por %p3585_p13, %p3584_p12 }
  0x20   :  { %p3587_p1 = pnand %p3586_p0, %p3580_p11 }
  0x22   :  { %3590 = shalt.err (!%p3587_p1)
}
  0x23   :  { %s3647_s0 = smov 256   ;;  %s3648_s17 = smov 16  }
  0x24   :  { %38 = dma.hbm_to_vmem [thread:$0]  %s4735_s1, 1536, %s33_s8, [#allocation6], %s3647_s0, %s3647_s0, %s3648_s17  }
  0x25   :  { %3635 = dma.done.wait [#allocation3], 768  }
  0x26   :  { %3636 = vsyncadd [#allocation3], 4294966528 }
  0x27   :  { %3637 = dma.done.wait [#allocation6], 1536  }
  0x28   :  { %3638 = vsyncadd [#allocation6], 4294965760  ;;  %v65_v0 = vld [vmem:[%s4736_s2 + $0x80] sm:$0xff]  ;;  %v66_v1 = vld [vmem:[%s4736_s2 + $0x88] sm:$0xff] }
  0x29   :  { %v49_v2 = vld [vmem:[%s4736_s2] sm:$0xff]  ;;  %v160_v3 = vand.u32 4294901760, %v65_v0  ;;  %v163_v4 = vand.u32 4294901760, %v66_v1  ;;  %v50_v5 = vld [vmem:[%s4736_s2 + $0x8] sm:$0xff]  ;;  %v67_v7 = vld [vmem:[%s4736_s2 + $0x90] sm:$0xff] }
  0x2a   :  { %v112_v6 = vand.u32 4294901760, %v49_v2  ;;  %v68_v8 = vld [vmem:[%s4736_s2 + $0x98] sm:$0xff]  ;;  %v115_v9 = vand.u32 4294901760, %v50_v5  ;;  %v166_v10 = vand.u32 4294901760, %v67_v7  ;;  %v51_v16 = vld [vmem:[%s4736_s2 + $0x10] sm:$0xff]  ;;  %v69_v38 = vld [vmem:[%s4736_s2 + $0xa0] sm:$0xff] }
  0x2b   :  { %v169_v11 = vand.u32 4294901760, %v68_v8  ;;  %v3729_v12 = vpack.c.bf16 %v163_v4, %v160_v3  ;;  %v3731_v13 = vsub.f32 %v65_v0, %v160_v3  ;;  %v3733_v14 = vsub.f32 %v66_v1, %v163_v4  ;;  %v52_v17 = vld [vmem:[%s4736_s2 + $0x18] sm:$0xff]  ;;  %v70_v39 = vld [vmem:[%s4736_s2 + $0xa8] sm:$0xff]  ;;  %v53_v44 = vld [vmem:[%s4736_s2 + $0x20] sm:$0xff] }
  0x2c   :  { %v3735_v15 = vsub.f32 %v49_v2, %v112_v6  ;;  %v3743_v18 = vpack.c.bf16 %v115_v9, %v112_v6  ;;  %v3745_v19 = vsub.f32 %v50_v5, %v115_v9  ;;  %v3749_v21 = vsub.f32 %v67_v7, %v166_v10  ;;  %v54_v53 = vld [vmem:[%s4736_s2 + $0x28] sm:$0xff]  ;;  %v71_v58 = vld [vmem:[%s4736_s2 + $0xb0] sm:$0xff]  ;;  %v72_v59 = vld [vmem:[%s4736_s2 + $0xb8] sm:$0xff] }
  0x2d   :  { %v3747_v20 = vpack.c.bf16 %v169_v11, %v166_v10  ;;  %v4758_v22 = vand.u32 4294901760, %v3731_v13  ;;  %v4757_v23 = vand.u32 4294901760, %v3733_v14  ;;  %v3754_v25 = vsub.f32 %v68_v8, %v169_v11  ;;  %3030 = vmatprep.subr.bf16.mxu1 %v3729_v12  ;;  %v55_v11 = vld [vmem:[%s4736_s2 + $0x30] sm:$0xff] }
  0x2e   :  { %v4756_v24 = vand.u32 4294901760, %v3735_v15  ;;  %v4754_v26 = vand.u32 4294901760, %v3745_v19  ;;  %v4753_v27 = vand.u32 4294901760, %v3749_v21  ;;  %v118_v28 = vand.u32 4294901760, %v51_v16  ;;  %3032 = vmatpush3.bf16.xpose.msra.mxu1 %v3743_v18 }
  0x2f   :  { %v121_v29 = vand.u32 4294901760, %v52_v17  ;;  %v390_v30 = vsub.f32 %v3731_v13, %v4758_v22  ;;  %v397_v31 = vsub.f32 %v3733_v14, %v4757_v23  ;;  %v4752_v33 = vand.u32 4294901760, %v3754_v25  ;;  %3034 = vmatprep.subr.bf16.mxu1 %v3747_v20 }
  0x30   :  { %v278_v32 = vsub.f32 %v3735_v15, %v4756_v24  ;;  %v285_v34 = vsub.f32 %v3745_v19, %v4754_v26  ;;  %v404_v35 = vsub.f32 %v3749_v21, %v4753_v27  ;;  %v3779_v37 = vsub.f32 %v51_v16, %v118_v28  ;;  %v3981_v26 = vld [vmem:[%s4736_s2 + $0x60] sm:$0xff] }
  0x31   :  { %v3777_v36 = vpack.c.bf16 %v121_v29, %v118_v28  ;;  %v391_v40 = vand.u32 4294901760, %v390_v30  ;;  %v398_v41 = vand.u32 4294901760, %v397_v31  ;;  %v411_v43 = vsub.f32 %v3754_v25, %v4752_v33  ;;  %v56_v30 = vld [vmem:[%s4736_s2 + $0x38] sm:$0xff]  ;;  %v78_v33 = vld [vmem:[%s4736_s2 + $0xe8] sm:$0xff] }
  0x32   :  { %v279_v42 = vand.u32 4294901760, %v278_v32  ;;  %v286_v45 = vand.u32 4294901760, %v285_v34  ;;  %v405_v46 = vand.u32 4294901760, %v404_v35  ;;  %v4751_v47 = vand.u32 4294901760, %v3779_v37 }
  0x33   :  { %v3794_v48 = vsub.f32 %v52_v17, %v121_v29  ;;  %v3796_v49 = vpack.c.bf16 %v398_v41, %v391_v40  ;;  %v412_v50 = vand.u32 4294901760, %v411_v43  ;;  %v172_v51 = vand.u32 4294901760, %v69_v38 }
  0x34   :  { %v175_v52 = vand.u32 4294901760, %v70_v39  ;;  %v3801_v54 = vpack.c.bf16 %v286_v45, %v279_v42  ;;  %v292_v55 = vsub.f32 %v3779_v37, %v4751_v47  ;;  %v124_v57 = vand.u32 4294901760, %v53_v44 }
  0x35   :  { %4835 = vst [vmem:[#allocation14_spill] sm:$0xff] %v3796_v49  ;;  %v4750_v56 = vand.u32 4294901760, %v3794_v48  ;;  %3062 = vmatprep.subr.bf16.mxu0 %v3796_v49  ;;  %v3814_v60 = vpack.c.bf16 %v412_v50, %v405_v46  ;;  %v3818_v62 = vsub.f32 %v69_v38, %v172_v51  ;;  %v127_v2 = vand.u32 4294901760, %v54_v53  ;;  %v73_v38 = vld [vmem:[%s4736_s2 + $0xc0] sm:$0xff]  ;;  %v74_v50 = vld [vmem:[%s4736_s2 + $0xc8] sm:$0xff] }
  0x36   :  { %4836 = vst [vmem:[#allocation15_spill] sm:$0xff] %v3801_v54  ;;  %v3816_v61 = vpack.c.bf16 %v175_v52, %v172_v51  ;;  %v3820_v63 = vsub.f32 %v70_v39, %v175_v52  ;;  %3064 = vmatpush3.bf16.xpose.msra.mxu0 %v3801_v54  ;;  %v293_v0 = vand.u32 4294901760, %v292_v55  ;;  %v3826_v3 = vsub.f32 %v53_v44, %v124_v57 }
  0x37   :  { %4837 = vst [vmem:[#allocation16_spill] sm:$0xff] %v3814_v60  ;;  %v299_v1 = vsub.f32 %v3794_v48, %v4750_v56  ;;  %3036 = vmatpush3.bf16.xpose.msra.mxu1 %v3777_v36  ;;  %3066 = vmatprep.subr.bf16.mxu0 %v3814_v60  ;;  %v4748_v4 = vand.u32 4294901760, %v3818_v62  ;;  %v178_v6 = vand.u32 4294901760, %v71_v58  ;;  %v181_v7 = vand.u32 4294901760, %v72_v59  ;;  %v4053_v60 = vld [vmem:[%s4736_s2 + $0x70] sm:$0xff] }
  0x38   :  { %4838 = vst [vmem:[#allocation17_spill] sm:$0xff] %v3820_v63  ;;  %v4747_v5 = vand.u32 4294901760, %v3820_v63  ;;  %3038 = vmatprep.subr.bf16.mxu1 %v3816_v61  ;;  %v4745_v9 = vand.u32 4294901760, %v3826_v3  ;;  %v3834_v10 = vsub.f32 %v54_v53, %v127_v2  ;;  %v3845_v28 = vpack.c.bf16 %v127_v2, %v124_v57  ;;  %v3883_v57 = vld [vmem:[%s4736_s2 + $0x40] sm:$0xff] }
  0x39   :  { %v300_v8 = vand.u32 4294901760, %v299_v1  ;;  %v418_v16 = vsub.f32 %v3818_v62, %v4748_v4  ;;  %v3847_v29 = vsub.f32 %v71_v58, %v178_v6  ;;  %v3858_v35 = vsub.f32 %v72_v59, %v181_v7  ;;  %v3948_v4 = vld [vmem:[%s4736_s2 + $0x58] sm:$0xff] }
  0x3a   :  { %4839 = vst [vmem:[#allocation18_spill] sm:$0xff] %v3834_v10  ;;  %v425_v17 = vsub.f32 %v3820_v63, %v4747_v5  ;;  %v306_v32 = vsub.f32 %v3826_v3, %v4745_v9  ;;  %v4744_v34 = vand.u32 4294901760, %v3834_v10  ;;  %v130_v42 = vand.u32 4294901760, %v55_v11 }
  0x3b   :  { %v3852_v31 = vpack.c.bf16 %v300_v8, %v293_v0  ;;  %4841 = vst [vmem:[#allocation20_spill] sm:$0xff] %v3858_v35  ;;  %v419_v39 = vand.u32 4294901760, %v418_v16  ;;  %v4741_v41 = vand.u32 4294901760, %v3847_v29  ;;  %v3867_v44 = vpack.c.bf16 %v181_v7, %v178_v6 }
  0x3c   :  { %v426_v40 = vand.u32 4294901760, %v425_v17  ;;  %v313_v43 = vsub.f32 %v3834_v10, %v4744_v34  ;;  %v4740_v45 = vand.u32 4294901760, %v3858_v35  ;;  %v133_v46 = vand.u32 4294901760, %v56_v30 }
  0x3d   :  { %4840 = vst [vmem:[#allocation19_spill] sm:$0xff] %v3852_v31  ;;  %4842 = vst [vmem:[#allocation21_spill] sm:$0xff] %v3867_v44  ;;  %v432_v52 = vsub.f32 %v3847_v29, %v4741_v41  ;;  %v3878_v53 = vsub.f32 %v55_v11, %v130_v42  ;;  %v184_v55 = vand.u32 4294901760, %v73_v38  ;;  %v307_v58 = vand.u32 4294901760, %v306_v32  ;;  %v58_v11 = vld [vmem:[%s4736_s2 + $0x48] sm:$0xff]  ;;  %v75_v32 = vld [vmem:[%s4736_s2 + $0xd0] sm:$0xff] }
  0x3e   :  { %v3873_v51 = vpack.c.bf16 %v426_v40, %v419_v39  ;;  %3068 = vmatpush3.bf16.xpose.msra.mxu0 %v3852_v31  ;;  %v314_v59 = vand.u32 4294901760, %v313_v43  ;;  %v439_v0 = vsub.f32 %v3858_v35, %v4740_v45  ;;  %v3889_v1 = vsub.f32 %v56_v30, %v133_v46 }
  0x3f   :  { %4844 = vst [vmem:[#allocation23_spill] sm:$0xff] %v3878_v53  ;;  %3040 = vmatpush3.bf16.xpose.msra.mxu1 %v3845_v28  ;;  %v433_v2 = vand.u32 4294901760, %v432_v52  ;;  %v4743_v6 = vand.u32 4294901760, %v3878_v53  ;;  %v187_v7 = vand.u32 4294901760, %v74_v50  ;;  %v3894_v8 = vsub.f32 %v73_v38, %v184_v55 }
  0x40   :  { %4843 = vst [vmem:[#allocation22_spill] sm:$0xff] %v3873_v51  ;;  %4845 = vst [vmem:[#allocation24_spill] sm:$0xff] %v3889_v1  ;;  %3070 = vmatprep.subr.bf16.mxu0 %v3873_v51  ;;  %3042 = vmatprep.subr.bf16.mxu1 %v3867_v44  ;;  %v440_v16 = vand.u32 4294901760, %v439_v0  ;;  %v4742_v17 = vand.u32 4294901760, %v3889_v1  ;;  %v136_v30 = vand.u32 4294901760, %v3883_v57  ;;  %v3905_v39 = vpack.c.bf16 %v133_v46, %v130_v42  ;;  %v76_v42 = vld [vmem:[%s4736_s2 + $0xd8] sm:$0xff] }
  0x41   :  { %4846 = vst [vmem:[#allocation25_spill] sm:$0xff] %v3894_v8  ;;  %v320_v38 = vsub.f32 %v3878_v53, %v4743_v6  ;;  %v4746_v40 = vand.u32 4294901760, %v3894_v8  ;;  %v3911_v43 = vsub.f32 %v74_v50, %v187_v7  ;;  %v3913_v52 = vpack.c.bf16 %v314_v59, %v307_v58 }
  0x42   :  { %4847 = vst [vmem:[#allocation26_spill] sm:$0xff] %v3905_v39  ;;  %v327_v0 = vsub.f32 %v3889_v1, %v4742_v17  ;;  %v139_v45 = vand.u32 4294901760, %v58_v11  ;;  %v3919_v41 = vsub.f32 %v3883_v57, %v136_v30  ;;  %v3924_v46 = vpack.c.bf16 %v440_v16, %v433_v2  ;;  %v3933_v17 = vld [vmem:[%s4736_s2 + $0x50] sm:$0xff] }
  0x43   :  { %4848 = vst [vmem:[#allocation27_spill] sm:$0xff] %v3911_v43  ;;  %4849 = vst [vmem:[#allocation28_spill] sm:$0xff] %v3913_v52  ;;  %v446_v50 = vsub.f32 %v3894_v8, %v4746_v40  ;;  %v4749_v58 = vand.u32 4294901760, %v3911_v43  ;;  %v190_v59 = vand.u32 4294901760, %v75_v32  ;;  %v321_v57 = vand.u32 4294901760, %v320_v38 }
  0x44   :  { %4850 = vst [vmem:[#allocation29_spill] sm:$0xff] %v3924_v46  ;;  %v328_v6 = vand.u32 4294901760, %v327_v0  ;;  %v3935_v34 = vpack.c.bf16 %v187_v7, %v184_v55  ;;  %v3937_v9 = vsub.f32 %v58_v11, %v139_v45  ;;  %v4755_v16 = vand.u32 4294901760, %v3919_v41  ;;  %v3956_v11 = vld [vmem:[%s4736_s2 + $0xe0] sm:$0xff] }
  0x45   :  { %v453_v2 = vsub.f32 %v3911_v43, %v4749_v58  ;;  %v193_v40 = vand.u32 4294901760, %v76_v42  ;;  %v3943_v5 = vsub.f32 %v75_v32, %v190_v59  ;;  %v142_v7 = vand.u32 4294901760, %v3933_v17 }
  0x46   :  { %4851 = vst [vmem:[#allocation30_spill] sm:$0xff] %v3935_v34  ;;  %4852 = vst [vmem:[#allocation31_spill] sm:$0xff] %v3937_v9  ;;  %3072 = vmatpush3.bf16.xpose.msra.mxu0 %v3913_v52  ;;  %v4760_v55 = vand.u32 4294901760, %v3937_v9  ;;  %v447_v32 = vand.u32 4294901760, %v446_v50  ;;  %v145_v56 = vand.u32 4294901760, %v3948_v4  ;;  %v3971_v27 = vpack.c.bf16 %v328_v6, %v321_v57 }
  0x47   :  { %3044 = vmatpush3.bf16.xpose.msra.mxu1 %v3905_v39  ;;  %3074 = vmatprep.subr.bf16.mxu0 %v3924_v46  ;;  %v454_v38 = vand.u32 4294901760, %v453_v2  ;;  %v4761_v0 = vand.u32 4294901760, %v3943_v5  ;;  %v3961_v58 = vsub.f32 %v76_v42, %v193_v40  ;;  %v3966_v47 = vsub.f32 %v3933_v17, %v142_v7 }
  0x48   :  { %3046 = vmatprep.subr.bf16.mxu1 %v3935_v34  ;;  %4854 = vst [vmem:[#allocation33_spill] sm:$0xff] %v3971_v27  ;;  %v334_v50 = vsub.f32 %v3919_v41, %v4755_v16  ;;  %v196_v2 = vand.u32 4294901760, %v3956_v11  ;;  %v341_v17 = vsub.f32 %v3937_v9, %v4760_v55  ;;  %v3991_v16 = vsub.f32 %v3948_v4, %v145_v56  ;;  %v4004_v55 = vld [vmem:[%s4736_s2 + $0x68] sm:$0xff] }
  0x49   :  { %4853 = vst [vmem:[#allocation32_spill] sm:$0xff] %v3961_v58  ;;  %v4762_v42 = vand.u32 4294901760, %v3961_v58  ;;  %v460_v6 = vsub.f32 %v3943_v5, %v4761_v0  ;;  %v3993_v24 = vpack.c.bf16 %v454_v38, %v447_v32  ;;  %v199_v22 = vand.u32 4294901760, %v78_v33  ;;  %v4013_v38 = vld [vmem:[%s4736_s2 + $0xf0] sm:$0xff] }
  0x4a   :  { %v3999_v46 = vsub.f32 %v3956_v11, %v196_v2  ;;  %v4006_v0 = vpack.c.bf16 %v139_v45, %v136_v30  ;;  %v4015_v57 = vpack.c.bf16 %v193_v40, %v190_v59  ;;  %v342_v45 = vand.u32 4294901760, %v341_v17 }
  0x4b   :  { %4855 = vst [vmem:[#allocation34_spill] sm:$0xff] %v3993_v24  ;;  %v467_v23 = vsub.f32 %v3961_v58, %v4762_v42  ;;  %v335_v42 = vand.u32 4294901760, %v334_v50  ;;  %v4018_v52 = vsub.f32 %v78_v33, %v199_v22  ;;  %v461_v30 = vand.u32 4294901760, %v460_v6  ;;  %v80_v50 = vld [vmem:[%s4736_s2 + $0xf8] sm:$0xff] }
  0x4c   :  { %4856 = vst [vmem:[#allocation35_spill] sm:$0xff] %v4006_v0  ;;  %4857 = vst [vmem:[#allocation36_spill] sm:$0xff] %v4015_v57  ;;  %v4858_v4 = vand.u32 4294901760, %v3966_v47  ;;  %v151_v51 = vand.u32 4294901760, %v4004_v55  ;;  %v4859_v40 = vand.u32 4294901760, %v3991_v16  ;;  %v202_v6 = vand.u32 4294901760, %v4013_v38 }
  0x4d   :  { %v468_v33 = vand.u32 4294901760, %v467_v23  ;;  %v4775_v17 = vand.u32 4294901760, %v4018_v52  ;;  %v4862_v23 = vand.u32 4294901760, %v3999_v46  ;;  %v205_v31 = vand.u32 4294901760, %v80_v50 }
  0x4e   :  { %3076 = vmatpush3.bf16.xpose.msra.mxu0 %v3971_v27  ;;  %v348_v32 = vsub.f32 %v3966_v47, %v4858_v4  ;;  %v355_v59 = vsub.f32 %v3991_v16, %v4859_v40  ;;  %v4860_v4 = vand.u32 4294901760, %v3981_v26  ;;  %v4042_v27 = vsub.f32 %v4004_v55, %v151_v51  ;;  %v4060_v55 = vld [vmem:[#allocation2] sm:$0xff] }
  0x4f   :  { %3048 = vmatpush3.bf16.xpose.msra.mxu1 %v4006_v0  ;;  %3078 = vmatprep.subr.bf16.mxu0 %v3993_v24  ;;  %v474_v24 = vsub.f32 %v3999_v46, %v4862_v23  ;;  %v481_v40 = vsub.f32 %v4018_v52, %v4775_v17  ;;  %v4055_v54 = vpack.c.bf16 %v342_v45, %v335_v42  ;;  %v64_v17 = vld [vmem:[%s4736_s2 + $0x78] sm:$0xff] }
  0x50   :  { %3050 = vmatprep.subr.bf16.mxu1 %v4015_v57  ;;  %v4039_v11 = vsub.f32 %v3981_v26, %v4860_v4  ;;  %4861 = vst [vmem:[#allocation37_spill] sm:$0xff] %v4042_v27  ;;  %v4058_v4 = vsub.f32 %v4013_v38, %v202_v6  ;;  %v4062_v49 = vpack.c.bf16 %v468_v33, %v461_v30  ;;  %v349_v23 = vand.u32 4294901760, %v348_v32 }
  0x51   :  { %4863 = vst [vmem:[#allocation38_spill] sm:$0xff] %v4055_v54  ;;  %v356_v57 = vand.u32 4294901760, %v355_v59  ;;  %v4064_v0 = vsub.f32 %v80_v50, %v205_v31  ;;  %v4069_v34 = vpack.c.bf16 %v145_v56, %v142_v7  ;;  %v4783_v45 = vand.u32 4294901760, %v4042_v27 }
  0x52   :  { %4864 = vst [vmem:[#allocation39_spill] sm:$0xff] %v4058_v4  ;;  %4865 = vst [vmem:[#allocation40_spill] sm:$0xff] %v4062_v49  ;;  %v4782_v42 = vand.u32 4294901760, %v4039_v11  ;;  %v154_v38 = vand.u32 4294901760, %v4053_v60  ;;  %v475_v39 = vand.u32 4294901760, %v474_v24  ;;  %v482_v44 = vand.u32 4294901760, %v481_v40 }
  0x53   :  { %4866 = vst [vmem:[#allocation41_spill] sm:$0xff] %v4064_v0  ;;  %v4075_v30 = vand.u32 4294901760, %v4060_v55  ;;  %v4078_v32 = vpack.c.bf16 %v199_v22, %v196_v2  ;;  %v4788_v50 = vand.u32 4294901760, %v4058_v4  ;;  %v157_v33 = vand.u32 4294901760, %v64_v17 }
  0x54   :  { %v4083_v56 = vpack.c.bf16 %v356_v57, %v349_v23  ;;  %v4089_v24 = vpack.c.bf16 %v3733_v14, %v3731_v13  ;;  %v4093_v22 = vpack.c.bf16 %v3745_v19, %v3735_v15  ;;  %v362_v2 = vsub.f32 %v4039_v11, %v4782_v42 }
  0x55   :  { %2541 = vmatprep.mubr.f32.mxu0 %v4075_v30  ;;  %v369_v57 = vsub.f32 %v4042_v27, %v4783_v45  ;;  %v4102_v59 = vsub.f32 %v4053_v60, %v154_v38  ;;  %v4106_v40 = vpack.c.bf16 %v3754_v25, %v3749_v21  ;;  %v4109_v23 = vpack.c.bf16 %v482_v44, %v475_v39 }
  0x56   :  { %3080 = vmatpush3.bf16.xpose.msra.mxu0 %v4055_v54  ;;  %4867 = vst [vmem:[#allocation42_spill] sm:$0xff] %v4083_v56  ;;  %v4113_v7 = vpack.c.bf16 %v3794_v48, %v3779_v37  ;;  %v4117_v42 = vpack.c.bf16 %v3820_v63, %v3818_v62  ;;  %v4121_v60 = vpack.c.bf16 %v3834_v10, %v3826_v3  ;;  %v4873_v54 = vand.u32 4294901760, %v4064_v0 }
  0x57   :  { %3052 = vmatpush3.bf16.xpose.msra.mxu1 %v4069_v34  ;;  %3082 = vmatprep.subr.bf16.mxu0 %v4062_v49  ;;  %v488_v45 = vsub.f32 %v4058_v4, %v4788_v50  ;;  %v4126_v49 = vsub.f32 %v64_v17, %v157_v33  ;;  %v4130_v44 = vpack.c.bf16 %v3858_v35, %v3847_v29  ;;  %v4877_v35 = vand.u32 4294901760, %v3981_v26 }
  0x58   :  { %3054 = vmatprep.subr.bf16.mxu1 %v4078_v32  ;;  %4868 = vst [vmem:[#allocation43_spill] sm:$0xff] %v4113_v7  ;;  %4869 = vst [vmem:[#allocation44_spill] sm:$0xff] %v4117_v42  ;;  %v4134_v39 = vpack.c.bf16 %v3889_v1, %v3878_v53  ;;  %v495_v63 = vsub.f32 %v4064_v0, %v4873_v54  ;;  %v4141_v10 = vpack.c.bf16 %v3911_v43, %v3894_v8 }
  0x59   :  { %4870 = vst [vmem:[#allocation45_spill] sm:$0xff] %v4121_v60  ;;  %4871 = vst [vmem:[#allocation46_spill] sm:$0xff] %v4130_v44  ;;  %v4145_v17 = vpack.c.bf16 %v3937_v9, %v3919_v41  ;;  %v4149_v50 = vpack.c.bf16 %v3961_v58, %v3943_v5  ;;  %v4153_v1 = vpack.c.bf16 %v151_v51, %v4877_v35  ;;  %v363_v43 = vand.u32 4294901760, %v362_v2 }
  0x5a   :  { %4872 = vst [vmem:[#allocation47_spill] sm:$0xff] %v4134_v39  ;;  %4874 = vst [vmem:[#allocation48_spill] sm:$0xff] %v4141_v10  ;;  %v4155_v53 = vpack.c.bf16 %v205_v31, %v202_v6  ;;  %v4159_v54 = vpack.c.bf16 %v3991_v16, %v3966_v47  ;;  %v370_v8 = vand.u32 4294901760, %v369_v57  ;;  %v4163_v9 = vpack.c.bf16 %v4018_v52, %v3999_v46 }
  0x5b   :  { %4875 = vst [vmem:[#allocation49_spill] sm:$0xff] %v4145_v17  ;;  %4876 = vst [vmem:[#allocation50_spill] sm:$0xff] %v4149_v50  ;;  %v4167_v58 = vpack.c.bf16 %v4042_v27, %v4039_v11  ;;  %v4800_v26 = vand.u32 4294901760, %v4102_v59  ;;  %v4174_v35 = vpack.c.bf16 %v4064_v0, %v4058_v4  ;;  %v4178_v51 = vpack.c.bf16 %v4126_v49, %v4102_v59 }
  0x5c   :  { %4878 = vst [vmem:[#allocation51_spill] sm:$0xff] %v4159_v54  ;;  %4879 = vst [vmem:[#allocation52_spill] sm:$0xff] %v4163_v9  ;;  %v489_v6 = vand.u32 4294901760, %v488_v45  ;;  %v496_v2 = vand.u32 4294901760, %v495_v63  ;;  %v4183_v57 = vpack.c.bf16 %v370_v8, %v363_v43  ;;  %v4193_v27 = vpack.c.bf16 %v157_v33, %v154_v38  ;;  %v82_v33 = vld [vmem:[#allocation2 + $0x8] sm:$0xff] }
  0x5d   :  { %4880 = vst [vmem:[#allocation53_spill] sm:$0xff] %v4167_v58  ;;  %4881 = vst [vmem:[#allocation54_spill] sm:$0xff] %v4174_v35  ;;  %v376_v31 = vsub.f32 %v4102_v59, %v4800_v26  ;;  %v4884_v43 = vand.u32 4294901760, %v3731_v13  ;;  %v84_v13 = vld [vmem:[#allocation2 + $0x18] sm:$0xff] }
  0x5e   :  { %3084 = vmatpush3.bf16.xpose.msra.mxu0 %v4083_v56  ;;  %4882 = vst [vmem:[#allocation55_spill] sm:$0xff] %v4178_v51  ;;  %v4883_v56 = vand.u32 4294901760, %v4126_v49  ;;  %v4191_v4 = vpack.c.bf16 %v496_v2, %v489_v6  ;;  %v85_v2 = vld [vmem:[#allocation2 + $0x20] sm:$0xff] }
  0x5f   :  { %3056 = vmatpush3.bf16.xpose.msra.mxu1 %v4153_v1  ;;  %3086 = vmatprep.subr.bf16.mxu0 %v4109_v23  ;;  %v377_v45 = vand.u32 4294901760, %v376_v31  ;;  %v83_v31 = vld [vmem:[#allocation2 + $0x10] sm:$0xff] }
  0x60   :  { %3058 = vmatprep.subr.bf16.mxu1 %v4155_v53  ;;  %v383_v0 = vsub.f32 %v4126_v49, %v4883_v56  ;;  %v4885_v56 = vand.u32 4294901760, %v3733_v14  ;;  %v4214_v6 = vand.u32 4294901760, %v83_v31  ;;  %v4219_v14 = vand.u32 4294901760, %v84_v13 }
  0x62   :  { %v384_v63 = vand.u32 4294901760, %v383_v0  ;;  %v4206_v38 = vpack.c.bf16 %v4885_v56, %v4884_v43  ;;  %v4209_v0 = vand.u32 4294901760, %v82_v33  ;;  %v209_v56 = vsub.f32 %v4060_v55, %v4075_v30 }
  0x63   :  { %v231_v26 = vsub.f32 %v83_v31, %v4214_v6 }
  0x64   :  { %v4199_v8 = vpack.c.bf16 %v384_v63, %v377_v45  ;;  %4886 = vst [vmem:[#allocation56_spill] sm:$0xff] %v4206_v38  ;;  %v4224_v45 = vand.u32 4294901760, %v85_v2  ;;  %v86_v63 = vld [vmem:[#allocation2 + $0x28] sm:$0xff]  ;;  %v220_v55 = vsub.f32 %v82_v33, %v4209_v0  ;;  %v210_v31 = vand.u32 4294901760, %v209_v56 }
  0x65   :  { %v4229_v43 = vand.u32 4294901760, %v86_v63 }
  0x66   :  { %3088 = vmatpush3.bf16.xpose.msra.mxu0 %v4183_v57 }
  0x67   :  { %3060 = vmatpush3.bf16.xpose.msra.mxu1 %v4193_v27  ;;  %3090 = vmatprep.subr.bf16.mxu0 %v4191_v4  ;;  %v4260_v33 = vsub.f32 %v86_v63, %v4229_v43  ;;  %v4891_v63 = vld [vmem:[#allocation36_spill] sm:$0xff] }
  0x68   :  { %3222 = vmatprep.subr.bf16.mxu1 %v3729_v12 }
  0x6e   :  { %3092 = vmatpush3.bf16.xpose.msra.mxu0 %v4199_v8 }
  0x6f   :  { %3094 = vmatprep.subr.bf16.mxu0 %v4089_v24 }
  0x75   :  { %2542 = vmatmul.mubr.f32.vlgmr.msra.gmra.mrb[0].mxu0 %v4075_v30 }
  0x76   :  { %3096 = vmatpush3.bf16.xpose.msra.mxu0 %v4093_v22  ;;  %2543 = vmatprep.mubr.f32.mxu0 %v4209_v0 }
  0x77   :  { %3098 = vmatprep.subr.bf16.mxu0 %v4106_v40 }
  0x79   :  { %2544 = vmatmul.mubr.f32.gmra.mrb[2].mxu0 %v4209_v0 }
  0x7a   :  { %2545 = vmatprep.mubr.f32.mxu0 %v4214_v6 }
  0x7d   :  { %2546 = vmatmul.mubr.f32.gmra.mrb[4].mxu0 %v4214_v6 }
  0x7e   :  { %3100 = vmatpush3.bf16.xpose.msra.mxu0 %v4113_v7  ;;  %2547 = vmatprep.mubr.f32.mxu0 %v4219_v14  ;;  %v4895_v7 = vand.u32 4294901760, %v3754_v25  ;;  %v4896_v25 = vand.u32 4294901760, %v3779_v37 }
  0x7f   :  { %3102 = vmatprep.subr.bf16.mxu0 %v4117_v42  ;;  %v4894_v42 = vand.u32 4294901760, %v3749_v21 }
  0x81   :  { %2548 = vmatmul.mubr.f32.gmra.mrb[6].mxu0 %v4219_v14 }
  0x82   :  { %2549 = vmatprep.mubr.f32.mxu0 %v4224_v45 }
  0x85   :  { %2550 = vmatmul.mubr.f32.gmra.mrb[8].mxu0 %v4224_v45 }
  0x86   :  { %3104 = vmatpush3.bf16.xpose.msra.mxu0 %v4121_v60  ;;  %2551 = vmatprep.mubr.f32.mxu0 %v4229_v43 }
  0x87   :  { %3106 = vmatprep.subr.bf16.mxu0 %v4130_v44 }
  0x89   :  { %2552 = vmatmul.mubr.f32.gmra.mrb[10].mxu0 %v4229_v43 }
  0x8a   :  { %2585 = vmatprep.mubr.f32.mxu0 %v209_v56 }
  0x8e   :  { %3108 = vmatpush3.bf16.xpose.msra.mxu0 %v4134_v39  ;;  %v4893_v39 = vand.u32 4294901760, %v3745_v19 }
  0x8f   :  { %3110 = vmatprep.subr.bf16.mxu0 %v4141_v10  ;;  %v4892_v10 = vand.u32 4294901760, %v3735_v15 }
  0x91   :  { %v4281_v44 = vpack.c.bf16 %v4893_v39, %v4892_v10  ;;  %v4897_v10 = vand.u32 4294901760, %v3794_v48  ;;  %v265_v48 = vand.u32 4294901760, %v4260_v33 }
  0x96   :  { %3112 = vmatpush3.bf16.xpose.msra.mxu0 %v4145_v17  ;;  %v221_v17 = vand.u32 4294901760, %v220_v55 }
  0x97   :  { %3114 = vmatprep.subr.bf16.mxu0 %v4149_v50 }
  0x98   :  { %v222_v60 = vsub.f32 %v220_v55, %v221_v17 }
  0x9e   :  { %3116 = vmatpush3.bf16.xpose.msra.mxu0 %v4159_v54  ;;  %v211_v54 = vsub.f32 %v209_v56, %v210_v31 }
  0x9f   :  { %3118 = vmatprep.subr.bf16.mxu0 %v4163_v9  ;;  %v4890_v9 = vld [vmem:[#allocation35_spill] sm:$0xff] }
  0xa0   :  { %v212_v50 = vand.u32 4294901760, %v211_v54  ;;  %v223_v54 = vand.u32 4294901760, %v222_v60  ;;  %v4899_v60 = vld [vmem:[#allocation17_spill] sm:$0xff] }
  0xa1   :  { %v4900_v39 = vand.u32 4294901760, %v4899_v60  ;;  %v4913_v60 = vld [vmem:[#allocation25_spill] sm:$0xff] }
  0xa2   :  { %2497 = vmatprep.mubr.f32.mxu1 %v212_v50 }
  0xa3   :  { %2498 = vmatmul.mubr.f32.vlgmr.msra.gmra.mrb[0].mxu1 %v212_v50 }
  0xa4   :  { %3224 = vmatpush3.bf16.msra.mxu1 %v3743_v18  ;;  %2499 = vmatprep.mubr.f32.mxu1 %v223_v54 }
  0xa5   :  { %3226 = vmatprep.subr.bf16.mxu1 %v3747_v20 }
  0xa6   :  { %3120 = vmatpush3.bf16.xpose.msra.mxu0 %v4167_v58  ;;  %v242_v58 = vsub.f32 %v84_v13, %v4219_v14  ;;  %v4887_v13 = vld [vmem:[#allocation21_spill] sm:$0xff] }
  0xa7   :  { %3122 = vmatprep.subr.bf16.mxu0 %v4174_v35  ;;  %v4889_v35 = vld [vmem:[#allocation30_spill] sm:$0xff]  ;;  %2500 = vmatmul.mubr.f32.gmra.mrb[2].mxu1 %v223_v54 }
  0xa8   :  { %v243_v19 = vand.u32 4294901760, %v242_v58  ;;  %3228 = vmatpush3.bf16.msra.mxu1 %v3777_v36 }
  0xa9   :  { %3230 = vmatprep.subr.bf16.mxu1 %v3816_v61 }
  0xaa   :  { %v244_v50 = vsub.f32 %v242_v58, %v243_v19 }
  0xac   :  { %3232 = vmatpush3.bf16.msra.mxu1 %v3845_v28 }
  0xad   :  { %3234 = vmatprep.subr.bf16.mxu1 %v4887_v13 }
  0xae   :  { %3124 = vmatpush3.bf16.xpose.msra.mxu0 %v4178_v51  ;;  %v4255_v51 = vsub.f32 %v85_v2, %v4224_v45  ;;  %v4888_v2 = vld [vmem:[#allocation26_spill] sm:$0xff] }
  0xaf   :  { %3126 = vmatprep.subr.bf16.mxu0 %v3729_v12 }
  0xb0   :  { %3236 = vmatpush3.bf16.msra.mxu1 %v4888_v2 }
  0xb1   :  { %3238 = vmatprep.subr.bf16.mxu1 %v4889_v35 }
  0xb4   :  { %3240 = vmatpush3.bf16.msra.mxu1 %v4890_v9 }
  0xb5   :  { %2586 = vmatmul.mubr.f32.vlgmr.msra.gmra.mrb[0].mxu0 %v209_v56  ;;  %v4287_v56 = vpack.c.bf16 %v4895_v7, %v4894_v42  ;;  %v4298_v42 = vpack.c.bf16 %v4897_v10, %v4896_v25  ;;  %v4898_v7 = vand.u32 4294901760, %v3818_v62  ;;  %3242 = vmatprep.subr.bf16.mxu1 %v4891_v63 }
  0xb6   :  { %3128 = vmatpush3.bf16.xpose.msra.mxu0 %v3743_v18  ;;  %2587 = vmatprep.mubr.f32.mxu0 %v220_v55 }
  0xb7   :  { %3130 = vmatprep.subr.bf16.mxu0 %v3747_v20 }
  0xb8   :  { %3244 = vmatpush3.bf16.msra.mxu1 %v4069_v34 }
  0xb9   :  { %2588 = vmatmul.mubr.f32.gmra.mrb[2].mxu0 %v220_v55  ;;  %v245_v55 = vand.u32 4294901760, %v244_v50  ;;  %3246 = vmatprep.subr.bf16.mxu1 %v4078_v32 }
  0xba   :  { %2589 = vmatprep.mubr.f32.mxu0 %v231_v26 }
  0xbc   :  { %3248 = vmatpush3.bf16.msra.mxu1 %v4153_v1 }
  0xbd   :  { %2590 = vmatmul.mubr.f32.gmra.mrb[4].mxu0 %v231_v26  ;;  %3250 = vmatprep.subr.bf16.mxu1 %v4155_v53 }
  0xbe   :  { %3132 = vmatpush3.bf16.xpose.msra.mxu0 %v3777_v36  ;;  %2591 = vmatprep.mubr.f32.mxu0 %v242_v58 }
  0xbf   :  { %3134 = vmatprep.subr.bf16.mxu0 %v3816_v61 }
  0xc0   :  { %3252 = vmatpush3.bf16.msra.mxu1 %v4193_v27 }
  0xc1   :  { %2592 = vmatmul.mubr.f32.gmra.mrb[6].mxu0 %v242_v58  ;;  %v4901_v58 = vand.u32 4294901760, %v3826_v3  ;;  %v4908_v3 = vld [vmem:[#allocation23_spill] sm:$0xff] }
  0xc2   :  { %2593 = vmatprep.mubr.f32.mxu0 %v4255_v51 }
  0xc5   :  { %2594 = vmatmul.mubr.f32.gmra.mrb[8].mxu0 %v4255_v51 }
  0xc6   :  { %3136 = vmatpush3.bf16.xpose.msra.mxu0 %v3845_v28  ;;  %2595 = vmatprep.mubr.f32.mxu0 %v4260_v33 }
  0xc7   :  { %3138 = vmatprep.subr.bf16.mxu0 %v4887_v13 }
  0xc9   :  { %2596 = vmatmul.mubr.f32.gmra.mrb[10].mxu0 %v4260_v33 }
  0xca   :  { %2629 = vmatprep.mubr.f32.mxu0 %v210_v31 }
  0xce   :  { %3140 = vmatpush3.bf16.xpose.msra.mxu0 %v4888_v2 }
  0xcf   :  { %3142 = vmatprep.subr.bf16.mxu0 %v4889_v35 }
  0xd6   :  { %3144 = vmatpush3.bf16.xpose.msra.mxu0 %v4890_v9 }
  0xd7   :  { %3146 = vmatprep.subr.bf16.mxu0 %v4891_v63 }
  0xde   :  { %3148 = vmatpush3.bf16.xpose.msra.mxu0 %v4069_v34 }
  0xdf   :  { %3150 = vmatprep.subr.bf16.mxu0 %v4078_v32 }
  0xe6   :  { %3152 = vmatpush3.bf16.xpose.msra.mxu0 %v4153_v1 }
  0xe7   :  { %3154 = vmatprep.subr.bf16.mxu0 %v4155_v53 }
  0xee   :  { %3156 = vmatpush3.bf16.xpose.msra.mxu0 %v4193_v27 }
  0xef   :  { %3158 = vmatprep.subr.bf16.mxu0 %v4206_v38  ;;  %v232_v38 = vand.u32 4294901760, %v231_v26 }
  0xf1   :  { %v233_v15 = vsub.f32 %v231_v26, %v232_v38  ;;  %v4304_v26 = vpack.c.bf16 %v4900_v39, %v4898_v7  ;;  %v4914_v39 = vand.u32 4294901760, %v4913_v60  ;;  %v4934_v60 = vld [vmem:[#allocation37_spill] sm:$0xff] }
  0xf3   :  { %v234_v21 = vand.u32 4294901760, %v233_v15  ;;  %v4904_v15 = vand.u32 4294901760, %v3847_v29  ;;  %v4909_v29 = vand.u32 4294901760, %v4908_v3 }
  0xf5   :  { %2630 = vmatmul.mubr.f32.vlgmr.msra.gmra.mrb[0].mxu0 %v210_v31  ;;  %2501 = vmatprep.mubr.f32.mxu1 %v234_v21 }
  0xf6   :  { %3160 = vmatpush3.bf16.xpose.msra.mxu0 %v4281_v44  ;;  %2631 = vmatprep.mubr.f32.mxu0 %v221_v17 }
  0xf7   :  { %3162 = vmatprep.subr.bf16.mxu0 %v4287_v56  ;;  %2502 = vmatmul.mubr.f32.gmra.mrb[4].mxu1 %v234_v21  ;;  %v4905_v21 = vld [vmem:[#allocation20_spill] sm:$0xff] }
  0xf8   :  { %2503 = vmatprep.mubr.f32.mxu1 %v245_v55  ;;  %v4906_v25 = vand.u32 4294901760, %v4905_v21 }
  0xf9   :  { %2632 = vmatmul.mubr.f32.gmra.mrb[2].mxu0 %v221_v17  ;;  %v254_v17 = vand.u32 4294901760, %v4255_v51 }
  0xfa   :  { %2633 = vmatprep.mubr.f32.mxu0 %v232_v38  ;;  %v4326_v10 = vpack.c.bf16 %v4906_v25, %v4904_v15  ;;  %v4924_v15 = vld [vmem:[#allocation32_spill] sm:$0xff] }
  0xfb   :  { %v255_v37 = vsub.f32 %v4255_v51, %v254_v17  ;;  %2504 = vmatmul.mubr.f32.gmra.mrb[6].mxu1 %v245_v55  ;;  %v266_v51 = vsub.f32 %v4260_v33, %v265_v48  ;;  %v4910_v33 = vld [vmem:[#allocation24_spill] sm:$0xff]  ;;  %v4925_v21 = vand.u32 4294901760, %v4924_v15 }
  0xfc   :  { %4907 = vst [vmem:[#allocation21_spill] sm:$0xff] %v4326_v10  ;;  %v4911_v50 = vand.u32 4294901760, %v4910_v33  ;;  %v4931_v33 = vand.u32 4294901760, %v4018_v52  ;;  %v4942_v52 = vand.u32 4294901760, %v4102_v59 }
  0xfd   :  { %2634 = vmatmul.mubr.f32.gmra.mrb[4].mxu0 %v232_v38  ;;  %v256_v62 = vand.u32 4294901760, %v255_v37  ;;  %v4902_v38 = vld [vmem:[#allocation18_spill] sm:$0xff] }
  0xfe   :  { %3164 = vmatpush3.bf16.xpose.msra.mxu0 %v4298_v42  ;;  %2635 = vmatprep.mubr.f32.mxu0 %v243_v19  ;;  %v4903_v31 = vand.u32 4294901760, %v4902_v38  ;;  %v4338_v7 = vpack.c.bf16 %v4911_v50, %v4909_v29  ;;  %v4930_v29 = vand.u32 4294901760, %v3999_v46  ;;  %v4943_v46 = vand.u32 4294901760, %v4126_v49 }
  0xff   :  { %3166 = vmatprep.subr.bf16.mxu0 %v4304_v26  ;;  %2505 = vmatprep.mubr.f32.mxu1 %v256_v62 }
 0x100   :  { %v4319_v54 = vpack.c.bf16 %v4903_v31, %v4901_v58  ;;  %2506 = vmatmul.mubr.f32.gmra.mrb[8].mxu1 %v256_v62  ;;  %4912 = vst [vmem:[#allocation26_spill] sm:$0xff] %v4338_v7  ;;  %v4919_v62 = vld [vmem:[#allocation31_spill] sm:$0xff]  ;;  %v4922_v31 = vld [vmem:[#allocation14_spill] sm:$0xff]  ;;  %v4378_v50 = vpack.c.bf16 %v4931_v33, %v4930_v29 }
 0x101   :  { %2636 = vmatmul.mubr.f32.gmra.mrb[6].mxu0 %v243_v19  ;;  %v267_v19 = vand.u32 4294901760, %v266_v51  ;;  %v4920_v58 = vand.u32 4294901760, %v4919_v62  ;;  %3254 = vmatprep.subr.bf16.mxu1 %v4922_v31  ;;  %v4923_v51 = vand.u32 4294901760, %v3943_v5  ;;  %v4933_v5 = vand.u32 4294901760, %v4039_v11 }
 0x102   :  { %2637 = vmatprep.mubr.f32.mxu0 %v254_v17  ;;  %4932 = vst [vmem:[#allocation18_spill] sm:$0xff] %v4378_v50 }
 0x103   :  { %2507 = vmatprep.mubr.f32.mxu1 %v267_v19  ;;  %v4364_v25 = vpack.c.bf16 %v4925_v21, %v4923_v51 }
 0x104   :  { %2508 = vmatmul.mubr.f32.gmra.mrb[10].mxu1 %v267_v19  ;;  %v4927_v19 = vand.u32 4294901760, %v3966_v47  ;;  %v4937_v47 = vld [vmem:[#allocation39_spill] sm:$0xff] }
 0x105   :  { %2638 = vmatmul.mubr.f32.gmra.mrb[8].mxu0 %v254_v17  ;;  %v4915_v17 = vld [vmem:[#allocation27_spill] sm:$0xff]  ;;  %4926 = vst [vmem:[#allocation36_spill] sm:$0xff] %v4364_v25 }
 0x106   :  { %3168 = vmatpush3.bf16.xpose.msra.mxu0 %v4319_v54  ;;  %2639 = vmatprep.mubr.f32.mxu0 %v265_v48  ;;  %v4916_v55 = vand.u32 4294901760, %v4915_v17 }
 0x107   :  { %3170 = vmatprep.subr.bf16.mxu0 %v4326_v10 }
 0x108   :  { %v4346_v37 = vpack.c.bf16 %v4916_v55, %v4914_v39  ;;  %v4935_v39 = vand.u32 4294901760, %v4934_v60  ;;  %v4939_v55 = vld [vmem:[#allocation41_spill] sm:$0xff] }
 0x109   :  { %2640 = vmatmul.mubr.f32.gmra.mrb[10].mxu0 %v265_v48  ;;  %v4918_v48 = vand.u32 4294901760, %v3919_v41  ;;  %v4928_v41 = vand.u32 4294901760, %v3991_v16  ;;  %v4938_v16 = vand.u32 4294901760, %v4937_v47 }
 0x10a   :  { %2673 = vmatprep.mubr.f32.mxu0 %v4075_v30  ;;  %4917 = vst [vmem:[#allocation30_spill] sm:$0xff] %v4346_v37  ;;  %v4386_v17 = vpack.c.bf16 %v4935_v39, %v4933_v5 }
 0x10b   :  { %v4357_v38 = vpack.c.bf16 %v4920_v58, %v4918_v48  ;;  %v4372_v3 = vpack.c.bf16 %v4928_v41, %v4927_v19  ;;  %v4940_v48 = vand.u32 4294901760, %v4939_v55  ;;  %v4400_v58 = vpack.c.bf16 %v4943_v46, %v4942_v52 }
 0x10c   :  { %4936 = vst [vmem:[#allocation20_spill] sm:$0xff] %v4386_v17  ;;  %v101_v41 = vlaneseq }
 0x10d   :  { %4921 = vst [vmem:[#allocation35_spill] sm:$0xff] %v4357_v38  ;;  %4929 = vst [vmem:[#allocation17_spill] sm:$0xff] %v4372_v3  ;;  %v4392_v62 = vpack.c.bf16 %v4940_v48, %v4938_v16 }
 0x10e   :  { %3172 = vmatpush3.bf16.xpose.msra.mxu0 %v4338_v7  ;;  %4944 = vst [vmem:[#allocation24_spill] sm:$0xff] %v4400_v58  ;;  %v102_v29 = vshrl.u32 %v101_v41, 7  ;;  %v4952_v7 = vld [vmem:[#allocation34_spill] sm:$0xff] }
 0x10f   :  { %3174 = vmatprep.subr.bf16.mxu0 %v4346_v37  ;;  %4941 = vst [vmem:[#allocation23_spill] sm:$0xff] %v4392_v62 }
 0x110   :  { %v103_v33 = vsub.s32 0, %v102_v29 }
 0x116   :  { %3176 = vmatpush3.bf16.xpose.msra.mxu0 %v4357_v38 }
 0x117   :  { %3178 = vmatprep.subr.bf16.mxu0 %v4364_v25 }
 0x11e   :  { %3180 = vmatpush3.bf16.xpose.msra.mxu0 %v4372_v3 }
 0x11f   :  { %3182 = vmatprep.subr.bf16.mxu0 %v4378_v50 }
 0x126   :  { %3184 = vmatpush3.bf16.xpose.msra.mxu0 %v4386_v17 }
 0x127   :  { %3186 = vmatprep.subr.bf16.mxu0 %v4392_v62 }
 0x12e   :  { %3188 = vmatpush3.bf16.xpose.msra.mxu0 %v4400_v58 }
 0x12f   :  { %3190 = vmatprep.subr.bf16.mxu0 %v3729_v12 }
 0x135   :  { %2674 = vmatmul.mubr.f32.vlgmr.msra.gmra.mrb[0].mxu0 %v4075_v30 }
 0x136   :  { %3192 = vmatpush3.bf16.xpose.msra.mxu0 %v3743_v18  ;;  %2675 = vmatprep.mubr.f32.mxu0 %v4209_v0 }
 0x137   :  { %3194 = vmatprep.subr.bf16.mxu0 %v3747_v20 }
 0x139   :  { %2676 = vmatmul.mubr.f32.gmra.mrb[2].mxu0 %v4209_v0 }
 0x13a   :  { %2677 = vmatprep.mubr.f32.mxu0 %v4214_v6 }
 0x13d   :  { %2678 = vmatmul.mubr.f32.gmra.mrb[4].mxu0 %v4214_v6 }
 0x13e   :  { %3196 = vmatpush3.bf16.xpose.msra.mxu0 %v3777_v36  ;;  %2679 = vmatprep.mubr.f32.mxu0 %v4219_v14 }
 0x13f   :  { %3198 = vmatprep.subr.bf16.mxu0 %v3816_v61 }
 0x141   :  { %2680 = vmatmul.mubr.f32.gmra.mrb[6].mxu0 %v4219_v14 }
 0x142   :  { %2681 = vmatprep.mubr.f32.mxu0 %v4224_v45 }
 0x145   :  { %2682 = vmatmul.mubr.f32.gmra.mrb[8].mxu0 %v4224_v45 }
 0x146   :  { %3200 = vmatpush3.bf16.xpose.msra.mxu0 %v3845_v28  ;;  %2683 = vmatprep.mubr.f32.mxu0 %v4229_v43 }
 0x147   :  { %3202 = vmatprep.subr.bf16.mxu0 %v4887_v13 }
 0x149   :  { %2684 = vmatmul.mubr.f32.gmra.mrb[10].mxu0 %v4229_v43 }
 0x14a   :  { %2717 = vmatprep.mubr.f32.mxu0 %v4075_v30 }
 0x14e   :  { %3204 = vmatpush3.bf16.xpose.msra.mxu0 %v4888_v2 }
 0x14f   :  { %3206 = vmatprep.subr.bf16.mxu0 %v4889_v35 }
 0x156   :  { %3208 = vmatpush3.bf16.xpose.msra.mxu0 %v4890_v9 }
 0x157   :  { %3210 = vmatprep.subr.bf16.mxu0 %v4891_v63 }
 0x15e   :  { %3212 = vmatpush3.bf16.xpose.msra.mxu0 %v4069_v34 }
 0x15f   :  { %3214 = vmatprep.subr.bf16.mxu0 %v4078_v32 }
 0x166   :  { %3216 = vmatpush3.bf16.xpose.msra.mxu0 %v4153_v1 }
 0x167   :  { %3218 = vmatprep.subr.bf16.mxu0 %v4155_v53 }
 0x16e   :  { %3220 = vmatpush3.bf16.xpose.msra.mxu0 %v4193_v27 }
 0x175   :  { %2718 = vmatmul.mubr.f32.vlgmr.msra.gmra.mrb[0].mxu0 %v4075_v30 }
 0x176   :  { %2719 = vmatprep.mubr.f32.mxu0 %v4209_v0  ;;  %v214_v49 = vpop.f32.mrb[0].mxu1 }
 0x177   :  { %v216_v11 = vpop.f32.mrb[1].mxu1 }
 0x179   :  { %2720 = vmatmul.mubr.f32.gmra.mrb[2].mxu0 %v4209_v0 }
 0x17a   :  { %2721 = vmatprep.mubr.f32.mxu0 %v4214_v6  ;;  %v225_v30 = vpop.f32.mrb[2].mxu1 }
 0x17b   :  { %v227_v59 = vpop.f32.mrb[3].mxu1 }
 0x17d   :  { %2722 = vmatmul.mubr.f32.gmra.mrb[4].mxu0 %v4214_v6 }
 0x17e   :  { %2723 = vmatprep.mubr.f32.mxu0 %v4219_v14 }
 0x181   :  { %2724 = vmatmul.mubr.f32.gmra.mrb[6].mxu0 %v4219_v14 }
 0x182   :  { %2725 = vmatprep.mubr.f32.mxu0 %v4224_v45 }
 0x185   :  { %2726 = vmatmul.mubr.f32.gmra.mrb[8].mxu0 %v4224_v45  ;;  %v99_v45 = vld [vmem:[%s4737_s3] sm:$0x3]  ;;  %s3649_s3 = smov [#allocation8]  }
 0x186   :  { %2727 = vmatprep.mubr.f32.mxu0 %v4229_v43  ;;  %v104_v5 = vrot.slane %v99_v45, %v103_v33  ;;  %s2448_s15 = sshll.u32 %s3649_s3, 4  ;;  %s2449_s15 = int_to_ptr.vmem [resolvable:$true] %s2448_s15 }
 0x187   :  { %s3591_s16 = scalar_lea.vmem %s2449_s15, 1536  ;;  %p3596_p3 = scmp.lt.s32.totalorder %s2449_s15, %s2449_s15 }
 0x188   :  { %v215_v39 = vadd.f32 %v214_v49, %v104_v5  ;;  %v226_v52 = vadd.f32 %v225_v30, %v104_v5  ;;  %p3592_p2 = scmp.ne.s32.totalorder %s2449_s15, %s3591_s16  ;;  %p3597_p4 = scmp.lt.s32.totalorder %s3591_s16, %s3591_s16 }
 0x189   :  { %2728 = vmatmul.mubr.f32.gmra.mrb[10].mxu0 %v4229_v43  ;;  %v107_v43 = vsub.s32 1, %v102_v29 }
 0x18a   :  { %p3598_p5 = por %p3597_p4, %p3596_p3 }
 0x18b   :  { %v108_v60 = vrot.slane %v99_v45, %v107_v43 }
 0x18c   :  { %p3599_p6 = pnand %p3598_p5, %p3592_p2 }
 0x18d   :  { %v217_v47 = vadd.f32 %v216_v11, %v108_v60  ;;  %v228_v58 = vadd.f32 %v227_v59, %v108_v60 }
 0x1ca   :  { %v236_v0 = vpop.f32.mrb[4].mxu1 }
 0x1cb   :  { %v238_v31 = vpop.f32.mrb[5].mxu1  ;;  %v237_v50 = vadd.f32 %v236_v0, %v104_v5 }
 0x1cc   :  { %v239_v25 = vadd.f32 %v238_v31, %v108_v60 }
 0x1ce   :  { %v247_v51 = vpop.f32.mrb[6].mxu1 }
 0x1cf   :  { %v249_v6 = vpop.f32.mrb[7].mxu1  ;;  %v248_v11 = vadd.f32 %v247_v51, %v104_v5 }
 0x1d0   :  { %v250_v43 = vadd.f32 %v249_v6, %v108_v60 }
 0x1d3   :  { %v258_v15 = vpop.f32.mrb[8].mxu1 }
 0x1d4   :  { %v260_v21 = vpop.f32.mrb[9].mxu1 }
 0x1d5   :  { %v261_v31 = vadd.f32 %v260_v21, %v108_v60 }
 0x1d7   :  { %v269_v19 = vpop.f32.mrb[10].mxu1 }
 0x1d8   :  { %v271_v14 = vpop.f32.mrb[11].mxu1 }
 0x248   :  { %v1171_v16 = vpop.f32.mrb[0].mxu0 }
 0x249   :  { %v3414_v55 = vadd.f32 %v1171_v16, %v215_v39  ;;  %v1173_v48 = vpop.f32.mrb[1].mxu0  ;;  %v87_v39 = vld [vmem:[#allocation5] sm:$0xff] }
 0x24a   :  { %v3416_v46 = vadd.f32 %v1173_v48, %v217_v47  ;;  %v89_v48 = vld [vmem:[#allocation5 + $0x10] sm:$0xff] }
 0x24b   :  { %3493 = vtanh.f32 %v3414_v55 }
 0x24c   :  { %3495 = vtanh.f32 %v3416_v46  ;;  %v1178_v62 = vpop.f32.mrb[2].mxu0 }
 0x24d   :  { %v3418_v41 = vadd.f32 %v1178_v62, %v226_v52  ;;  %v1180_v17 = vpop.f32.mrb[3].mxu0  ;;  %v259_v62 = vadd.f32 %v258_v15, %v104_v5 }
 0x24e   :  { %v3420_v3 = vadd.f32 %v1180_v17, %v228_v58  ;;  %v88_v17 = vld [vmem:[#allocation5 + $0x8] sm:$0xff] }
 0x24f   :  { %3497 = vtanh.f32 %v3418_v41  ;;  %v270_v41 = vadd.f32 %v269_v19, %v104_v5 }
 0x250   :  { %3499 = vtanh.f32 %v3420_v3  ;;  %v1185_v29 = vpop.f32.mrb[4].mxu0 }
 0x251   :  { %v3422_v33 = vadd.f32 %v1185_v29, %v237_v50  ;;  %v1187_v49 = vpop.f32.mrb[5].mxu0 }
 0x252   :  { %v3424_v45 = vadd.f32 %v1187_v49, %v239_v25 }
 0x253   :  { %3501 = vtanh.f32 %v3422_v33  ;;  %v90_v33 = vld [vmem:[#allocation5 + $0x18] sm:$0xff] }
 0x254   :  { %3503 = vtanh.f32 %v3424_v45  ;;  %v1192_v30 = vpop.f32.mrb[6].mxu0 }
 0x255   :  { %v3494_v59 = vpop.eup %3493  ;;  %v3426_v47 = vadd.f32 %v1192_v30, %v248_v11  ;;  %v1194_v16 = vpop.f32.mrb[7].mxu0  ;;  %v272_v11 = vadd.f32 %v271_v14, %v108_v60 }
 0x256   :  { %v3496_v55 = vpop.eup %3495  ;;  %v1223_v0 = vmul.f32 0.5, %v3494_v59  ;;  %v3428_v58 = vadd.f32 %v1194_v16, %v250_v43 }
 0x257   :  { %v1224_v3 = vmul.f32 0.5, %v3496_v55  ;;  %3505 = vtanh.f32 %v3426_v47 }
 0x258   :  { %v1235_v50 = vadd.f32 %v1223_v0, %v87_v39  ;;  %3507 = vtanh.f32 %v3428_v58  ;;  %v1199_v51 = vpop.f32.mrb[8].mxu0  ;;  %v91_v39 = vld [vmem:[#allocation5 + $0x20] sm:$0xff]  ;;  %v93_v58 = vld [vmem:[#allocation5 + $0x30] sm:$0xff] }
 0x259   :  { %v3498_v25 = vpop.eup %3497  ;;  %v1236_v6 = vadd.f32 %v1224_v3, %v88_v17  ;;  %v3430_v52 = vadd.f32 %v1199_v51, %v259_v62  ;;  %v1201_v46 = vpop.f32.mrb[9].mxu0  ;;  %v92_v62 = vld [vmem:[#allocation5 + $0x28] sm:$0xff] }
 0x25a   :  { %v3500_v29 = vpop.eup %3499  ;;  %3509 = vtanh.f32 %v1235_v50  ;;  %2413 = vst [vmem:[#allocation8] sm:$0xff] %v1235_v50  ;;  %v1225_v15 = vmul.f32 0.5, %v3498_v25  ;;  %v3432_v49 = vadd.f32 %v1201_v46, %v261_v31  ;;  %v94_v50 = vld [vmem:[#allocation5 + $0x38] sm:$0xff] }
 0x25b   :  { %3511 = vtanh.f32 %v1236_v6  ;;  %2414 = vst [vmem:[#allocation8 + $0x8] sm:$0xff] %v1236_v6  ;;  %v1226_v21 = vmul.f32 0.5, %v3500_v29  ;;  %v95_v29 = vld [vmem:[#allocation5 + $0x40] sm:$0xff] }
 0x25c   :  { %v1237_v45 = vadd.f32 %v1225_v15, %v89_v48  ;;  %3513 = vtanh.f32 %v3430_v52  ;;  %v1206_v43 = vpop.f32.mrb[10].mxu0 }
 0x25d   :  { %v3502_v30 = vpop.eup %3501  ;;  %v1238_v59 = vadd.f32 %v1226_v21, %v90_v33  ;;  %3515 = vtanh.f32 %v3432_v49  ;;  %v3434_v47 = vadd.f32 %v1206_v43, %v270_v41  ;;  %v1208_v16 = vpop.f32.mrb[11].mxu0 }
 0x25e   :  { %v3504_v19 = vpop.eup %3503  ;;  %3517 = vtanh.f32 %v1237_v45  ;;  %2415 = vst [vmem:[#allocation8 + $0x10] sm:$0xff] %v1237_v45  ;;  %v1227_v5 = vmul.f32 0.5, %v3502_v30  ;;  %v3436_v55 = vadd.f32 %v1208_v16, %v272_v11  ;;  %v96_v11 = vld [vmem:[#allocation5 + $0x48] sm:$0xff] }
 0x25f   :  { %3519 = vtanh.f32 %v1238_v59  ;;  %2416 = vst [vmem:[#allocation8 + $0x18] sm:$0xff] %v1238_v59  ;;  %v1228_v14 = vmul.f32 0.5, %v3504_v19 }
 0x260   :  { %v1239_v60 = vadd.f32 %v1227_v5, %v91_v39  ;;  %3521 = vtanh.f32 %v3434_v47 }
 0x261   :  { %v3506_v0 = vpop.eup %3505  ;;  %v1240_v17 = vadd.f32 %v1228_v14, %v92_v62  ;;  %3523 = vtanh.f32 %v3436_v55  ;;  %v97_v62 = vld [vmem:[#allocation5 + $0x50] sm:$0xff] }
 0x262   :  { %v3508_v31 = vpop.eup %3507  ;;  %3525 = vtanh.f32 %v1239_v60  ;;  %2417 = vst [vmem:[#allocation8 + $0x20] sm:$0xff] %v1239_v60  ;;  %v1229_v3 = vmul.f32 0.5, %v3506_v0 }
 0x263   :  { %3527 = vtanh.f32 %v1240_v17  ;;  %2418 = vst [vmem:[#allocation8 + $0x28] sm:$0xff] %v1240_v17  ;;  %v1230_v51 = vmul.f32 0.5, %v3508_v31  ;;  %v98_v17 = vld [vmem:[#allocation5 + $0x58] sm:$0xff] }
 0x264   :  { %v3510_v25 = vpop.eup %3509  ;;  %v1241_v6 = vadd.f32 %v1229_v3, %v93_v58 }
 0x265   :  { %v3512_v48 = vpop.eup %3511  ;;  %v4445_v52 = vand.u32 4294901760, %v3510_v25  ;;  %v1242_v46 = vadd.f32 %v1230_v51, %v94_v50 }
 0x266   :  { %v3514_v41 = vpop.eup %3513  ;;  %3529 = vtanh.f32 %v1241_v6  ;;  %2419 = vst [vmem:[#allocation8 + $0x30] sm:$0xff] %v1241_v6  ;;  %v4447_v15 = vand.u32 4294901760, %v3512_v48 }
 0x267   :  { %v3516_v33 = vpop.eup %3515  ;;  %3531 = vtanh.f32 %v1242_v46  ;;  %2420 = vst [vmem:[#allocation8 + $0x38] sm:$0xff] %v1242_v46  ;;  %v1231_v49 = vmul.f32 0.5, %v3514_v41  ;;  %v4450_v21 = vsub.f32 %v3510_v25, %v4445_v52 }
 0x268   :  { %v3518_v45 = vpop.eup %3517  ;;  %v1232_v43 = vmul.f32 0.5, %v3516_v33  ;;  %v4453_v30 = vsub.f32 %v3512_v48, %v4447_v15 }
 0x269   :  { %v3520_v59 = vpop.eup %3519  ;;  %v1243_v39 = vadd.f32 %v1231_v49, %v95_v29  ;;  %v4825_v47 = vand.u32 4294901760, %v4450_v21  ;;  %v4456_v16 = vand.u32 4294901760, %v3518_v45 }
 0x26a   :  { %v3522_v19 = vpop.eup %3521  ;;  %v1244_v5 = vadd.f32 %v1232_v43, %v96_v11  ;;  %v4826_v55 = vand.u32 4294901760, %v4453_v30  ;;  %v4459_v14 = vand.u32 4294901760, %v3520_v59 }
 0x26b   :  { %v3524_v60 = vpop.eup %3523  ;;  %3533 = vtanh.f32 %v1243_v39  ;;  %2421 = vst [vmem:[#allocation8 + $0x40] sm:$0xff] %v1243_v39  ;;  %v1233_v0 = vmul.f32 0.5, %v3522_v19  ;;  %v1364_v58 = vsub.f32 %v4450_v21, %v4825_v47  ;;  %v4465_v31 = vsub.f32 %v3518_v45, %v4456_v16 }
 0x26c   :  { %v3526_v3 = vpop.eup %3525  ;;  %3535 = vtanh.f32 %v1244_v5  ;;  %2422 = vst [vmem:[#allocation8 + $0x48] sm:$0xff] %v1244_v5  ;;  %v1234_v50 = vmul.f32 0.5, %v3524_v60  ;;  %v1358_v51 = vsub.f32 %v4453_v30, %v4826_v55  ;;  %v4471_v25 = vsub.f32 %v3520_v59, %v4459_v14 }
 0x26d   :  { %v3528_v6 = vpop.eup %3527  ;;  %v1245_v48 = vadd.f32 %v1233_v0, %v97_v62  ;;  %v4821_v46 = vand.u32 4294901760, %v4465_v31  ;;  %v4474_v41 = vand.u32 4294901760, %v3526_v3  ;;  %v1365_v45 = vand.u32 4294901760, %v1364_v58 }
 0x26e   :  { %v1246_v29 = vadd.f32 %v1234_v50, %v98_v17  ;;  %v1359_v33 = vand.u32 4294901760, %v1358_v51  ;;  %v4823_v49 = vand.u32 4294901760, %v4471_v25  ;;  %v4477_v11 = vand.u32 4294901760, %v3528_v6  ;;  %v4945_v17 = vld [vmem:[#allocation15_spill] sm:$0xff]  ;;  %v4946_v51 = vld [vmem:[#allocation16_spill] sm:$0xff] }
 0x26f   :  { %3537 = vtanh.f32 %v1245_v48  ;;  %2423 = vst [vmem:[#allocation8 + $0x50] sm:$0xff] %v1245_v48  ;;  %v1379_v43 = vsub.f32 %v4465_v31, %v4821_v46  ;;  %v4483_v59 = vsub.f32 %v3526_v3, %v4474_v41 }
 0x270   :  { %v3530_v39 = vpop.eup %3529  ;;  %3539 = vtanh.f32 %v1246_v29  ;;  %2424 = vst [vmem:[#allocation8 + $0x58] sm:$0xff] %v1246_v29  ;;  %1360 = vmatprep.mubr.f32.mxu1 %v1359_v33  ;;  %v1373_v19 = vsub.f32 %v4471_v25, %v4823_v49  ;;  %v4489_v5 = vsub.f32 %v3528_v6, %v4477_v11 }
 0x271   :  { %v3532_v62 = vpop.eup %3531  ;;  %1366 = vmatmul.mubr.f32.vlgmr.msra.gmra.mrb[12].mxu1 %v1365_v45  ;;  %v4822_v60 = vand.u32 4294901760, %v4483_v59  ;;  %v4492_v0 = vand.u32 4294901760, %v3530_v39  ;;  %v1380_v48 = vand.u32 4294901760, %v1379_v43 }
 0x272   :  { %3256 = vmatpush3.bf16.msra.mxu1 %v4945_v17  ;;  %v1374_v58 = vand.u32 4294901760, %v1373_v19  ;;  %v4824_v3 = vand.u32 4294901760, %v4489_v5  ;;  %v4496_v50 = vand.u32 4294901760, %v3532_v62 }
 0x273   :  { %3258 = vmatprep.subr.bf16.mxu1 %v4946_v51  ;;  %v1394_v6 = vsub.f32 %v4483_v59, %v4822_v60  ;;  %v4503_v29 = vsub.f32 %v3530_v39, %v4492_v0  ;;  %v4947_v51 = vld [vmem:[#allocation19_spill] sm:$0xff] }
 0x274   :  { %1375 = vmatprep.mubr.f32.mxu1 %v1374_v58  ;;  %v1388_v33 = vsub.f32 %v4489_v5, %v4824_v3  ;;  %v4509_v45 = vsub.f32 %v3532_v62, %v4496_v50  ;;  %v4948_v58 = vld [vmem:[#allocation22_spill] sm:$0xff] }
 0x275   :  { %v3534_v19 = vpop.eup %3533  ;;  %1381 = vmatmul.mubr.f32.gmra.mrb[14].mxu1 %v1380_v48  ;;  %v4827_v17 = vand.u32 4294901760, %v4503_v29  ;;  %v1395_v49 = vand.u32 4294901760, %v1394_v6 }
 0x276   :  { %v3536_v43 = vpop.eup %3535  ;;  %3260 = vmatpush3.bf16.msra.mxu1 %v4947_v51  ;;  %v1389_v46 = vand.u32 4294901760, %v1388_v33  ;;  %v4830_v60 = vand.u32 4294901760, %v4509_v45  ;;  %v4514_v39 = vand.u32 4294901760, %v3534_v19 }
 0x277   :  { %3262 = vmatprep.subr.bf16.mxu1 %v4948_v58  ;;  %v1409_v62 = vsub.f32 %v4503_v29, %v4827_v17  ;;  %v4520_v3 = vand.u32 4294901760, %v3536_v43  ;;  %v4949_v58 = vld [vmem:[#allocation28_spill] sm:$0xff] }
 0x278   :  { %1390 = vmatprep.mubr.f32.mxu1 %v1389_v46  ;;  %v1403_v48 = vsub.f32 %v4509_v45, %v4830_v60  ;;  %v4526_v33 = vsub.f32 %v3534_v19, %v4514_v39  ;;  %v4950_v46 = vld [vmem:[#allocation29_spill] sm:$0xff] }
 0x279   :  { %v3538_v51 = vpop.eup %3537  ;;  %1396 = vmatmul.mubr.f32.gmra.mrb[16].mxu1 %v1395_v49  ;;  %v4529_v47 = vsub.f32 %v3536_v43, %v4520_v3  ;;  %v1410_v37 = vand.u32 4294901760, %v1409_v62  ;;  %v4951_v62 = vld [vmem:[#allocation33_spill] sm:$0xff] }
 0x27a   :  { %v3540_v6 = vpop.eup %3539  ;;  %3264 = vmatpush3.bf16.msra.mxu1 %v4949_v58  ;;  %v1404_v55 = vand.u32 4294901760, %v1403_v48  ;;  %v4832_v17 = vand.u32 4294901760, %v4526_v33  ;;  %v4533_v38 = vand.u32 4294901760, %v3538_v51 }
 0x27b   :  { %3266 = vmatprep.subr.bf16.mxu1 %v4950_v46  ;;  %v4834_v60 = vand.u32 4294901760, %v4529_v47  ;;  %v4537_v19 = vand.u32 4294901760, %v3540_v6 }
 0x27c   :  { %1405 = vmatprep.mubr.f32.mxu1 %v1404_v55  ;;  %v1424_v49 = vsub.f32 %v4526_v33, %v4832_v17  ;;  %v4543_v43 = vsub.f32 %v3538_v51, %v4533_v38 }
 0x27d   :  { %1411 = vmatmul.mubr.f32.gmra.mrb[18].mxu1 %v1410_v37  ;;  %v1418_v48 = vsub.f32 %v4529_v47, %v4834_v60  ;;  %v4549_v58 = vsub.f32 %v3540_v6, %v4537_v19  ;;  %v4953_v6 = vld [vmem:[#allocation38_spill] sm:$0xff]  ;;  %v4954_v60 = vld [vmem:[#allocation40_spill] sm:$0xff] }
 0x27e   :  { %3268 = vmatpush3.bf16.msra.mxu1 %v4951_v62  ;;  %v1438_v46 = vand.u32 4294901760, %v4543_v43  ;;  %v1425_v10 = vand.u32 4294901760, %v1424_v49  ;;  %v4965_v49 = vld [vmem:[#allocation52_spill] sm:$0xff] }
 0x27f   :  { %v1419_v55 = vand.u32 4294901760, %v1418_v48  ;;  %3270 = vmatprep.subr.bf16.mxu1 %v4952_v7  ;;  %v1432_v17 = vand.u32 4294901760, %v4549_v58  ;;  %v4955_v7 = vld [vmem:[#allocation42_spill] sm:$0xff] }
 0x280   :  { %v1439_v37 = vsub.f32 %v4543_v43, %v1438_v46 }
 0x281   :  { %1420 = vmatprep.mubr.f32.mxu1 %v1419_v55  ;;  %v1433_v51 = vsub.f32 %v4549_v58, %v1432_v17  ;;  %v4966_v55 = vld [vmem:[#allocation53_spill] sm:$0xff] }
 0x282   :  { %1426 = vmatmul.mubr.f32.gmra.mrb[20].mxu1 %v1425_v10  ;;  %v1440_v48 = vand.u32 4294901760, %v1439_v37  ;;  %v4963_v10 = vld [vmem:[#allocation50_spill] sm:$0xff] }
 0x283   :  { %3272 = vmatpush3.bf16.msra.mxu1 %v4953_v6  ;;  %v1434_v62 = vand.u32 4294901760, %v1433_v51  ;;  %v4967_v37 = vld [vmem:[#allocation54_spill] sm:$0xff]  ;;  %v4968_v51 = vld [vmem:[#allocation55_spill] sm:$0xff]  ;;  %v4969_v6 = vand.u32 4294901760, %v4453_v30 }
 0x284   :  { %3274 = vmatprep.subr.bf16.mxu1 %v4954_v60  ;;  %v4964_v60 = vld [vmem:[#allocation51_spill] sm:$0xff] }
 0x285   :  { %1435 = vmatprep.mubr.f32.mxu1 %v1434_v62  ;;  %v4970_v62 = vld [vmem:[#allocation56_spill] sm:$0xff] }
 0x286   :  { %1441 = vmatmul.mubr.f32.gmra.mrb[22].mxu1 %v1440_v48  ;;  %v4971_v48 = vand.u32 4294901760, %v4450_v21 }
 0x287   :  { %3276 = vmatpush3.bf16.msra.mxu1 %v4955_v7  ;;  %1671 = vmatprep.mubr.f32.mxu1 %v4447_v15  ;;  %v4972_v7 = vand.u32 4294901760, %v4471_v25 }
 0x288   :  { %3278 = vmatprep.subr.bf16.mxu1 %v4109_v23  ;;  %v4956_v23 = vld [vmem:[#allocation43_spill] sm:$0xff] }
 0x28b   :  { %3280 = vmatpush3.bf16.msra.mxu1 %v4183_v57  ;;  %v4957_v57 = vld [vmem:[#allocation44_spill] sm:$0xff] }
 0x28c   :  { %3282 = vmatprep.subr.bf16.mxu1 %v4191_v4  ;;  %v4958_v4 = vld [vmem:[#allocation45_spill] sm:$0xff] }
 0x28f   :  { %3284 = vmatpush3.bf16.msra.mxu1 %v4199_v8  ;;  %v4962_v8 = vld [vmem:[#allocation49_spill] sm:$0xff] }
 0x290   :  { %3286 = vmatprep.subr.bf16.mxu1 %v4089_v24  ;;  %v4959_v24 = vld [vmem:[#allocation46_spill] sm:$0xff] }
 0x292   :  { %1673 = vmatmul.mubr.f32.vlgmr.msra.gmra.mrb[24].mxu1 %v4445_v52 }
 0x293   :  { %1678 = vmatprep.mubr.f32.mxu1 %v4459_v14  ;;  %3288 = vmatpush3.bf16.msra.mxu1 %v4093_v22  ;;  %v4960_v22 = vld [vmem:[#allocation47_spill] sm:$0xff] }
 0x294   :  { %3290 = vmatprep.subr.bf16.mxu1 %v4106_v40  ;;  %v4961_v40 = vld [vmem:[#allocation48_spill] sm:$0xff] }
 0x296   :  { %1680 = vmatmul.mubr.f32.gmra.mrb[26].mxu1 %v4456_v16 }
 0x297   :  { %1685 = vmatprep.mubr.f32.mxu1 %v4477_v11  ;;  %3292 = vmatpush3.bf16.msra.mxu1 %v4956_v23  ;;  %v4974_v23 = vand.u32 4294901760, %v4489_v5 }
 0x298   :  { %3294 = vmatprep.subr.bf16.mxu1 %v4957_v57  ;;  %v4989_v57 = vld [vmem:[#allocation24_spill] sm:$0xff] }
 0x29a   :  { %1687 = vmatmul.mubr.f32.gmra.mrb[28].mxu1 %v4474_v41 }
 0x29b   :  { %1692 = vmatprep.mubr.f32.mxu1 %v4496_v50  ;;  %3296 = vmatpush3.bf16.msra.mxu1 %v4958_v4 }
 0x29c   :  { %3298 = vmatprep.subr.bf16.mxu1 %v4959_v24 }
 0x29e   :  { %1694 = vmatmul.mubr.f32.gmra.mrb[30].mxu1 %v4492_v0 }
 0x29f   :  { %1699 = vmatprep.mubr.f32.mxu1 %v4520_v3  ;;  %3300 = vmatpush3.bf16.msra.mxu1 %v4960_v22 }
 0x2a0   :  { %3302 = vmatprep.subr.bf16.mxu1 %v4961_v40 }
 0x2a2   :  { %1701 = vmatmul.mubr.f32.gmra.mrb[32].mxu1 %v4514_v39 }
 0x2a3   :  { %1706 = vmatprep.mubr.f32.mxu1 %v4537_v19  ;;  %3304 = vmatpush3.bf16.msra.mxu1 %v4962_v8 }
 0x2a4   :  { %3306 = vmatprep.subr.bf16.mxu1 %v4963_v10 }
 0x2a6   :  { %1708 = vmatmul.mubr.f32.gmra.mrb[34].mxu1 %v4533_v38 }
 0x2a7   :  { %3308 = vmatpush3.bf16.msra.mxu1 %v4964_v60  ;;  %1843 = vmatprep.mubr.f32.mxu1 %v4453_v30  ;;  %v4973_v30 = vand.u32 4294901760, %v4465_v31 }
 0x2a8   :  { %3310 = vmatprep.subr.bf16.mxu1 %v4965_v49 }
 0x2ab   :  { %3312 = vmatpush3.bf16.msra.mxu1 %v4966_v55 }
 0x2ac   :  { %3314 = vmatprep.subr.bf16.mxu1 %v4967_v37 }
 0x2af   :  { %3316 = vmatpush3.bf16.msra.mxu1 %v4968_v51 }
 0x2b0   :  { %3318 = vmatprep.subr.bf16.mxu1 %v3729_v12 }
 0x2b2   :  { %1846 = vmatmul.mubr.f32.vlgmr.msra.gmra.mrb[36].mxu1 %v4450_v21  ;;  %v4975_v21 = vand.u32 4294901760, %v4483_v59 }
 0x2b3   :  { %1852 = vmatprep.mubr.f32.mxu1 %v4471_v25  ;;  %3320 = vmatpush3.bf16.msra.mxu1 %v3743_v18  ;;  %v4976_v25 = vand.u32 4294901760, %v4509_v45 }
 0x2b4   :  { %3322 = vmatprep.subr.bf16.mxu1 %v3747_v20 }
 0x2b6   :  { %1855 = vmatmul.mubr.f32.gmra.mrb[38].mxu1 %v4465_v31  ;;  %v4979_v31 = vand.u32 4294901760, %v4529_v47 }
 0x2b7   :  { %1861 = vmatprep.mubr.f32.mxu1 %v4489_v5  ;;  %3324 = vmatpush3.bf16.msra.mxu1 %v3777_v36  ;;  %v4980_v5 = vld [vmem:[#allocation26_spill] sm:$0xff] }
 0x2b8   :  { %3326 = vmatprep.subr.bf16.mxu1 %v3816_v61 }
 0x2ba   :  { %1864 = vmatmul.mubr.f32.gmra.mrb[40].mxu1 %v4483_v59  ;;  %v4983_v59 = vld [vmem:[#allocation35_spill] sm:$0xff] }
 0x2bb   :  { %1870 = vmatprep.mubr.f32.mxu1 %v4509_v45  ;;  %3328 = vmatpush3.bf16.msra.mxu1 %v3845_v28  ;;  %v4987_v45 = vld [vmem:[#allocation20_spill] sm:$0xff] }
 0x2bc   :  { %3330 = vmatprep.subr.bf16.mxu1 %v4887_v13 }
 0x2be   :  { %1873 = vmatmul.mubr.f32.gmra.mrb[42].mxu1 %v4503_v29 }
 0x2bf   :  { %1879 = vmatprep.mubr.f32.mxu1 %v4529_v47  ;;  %3332 = vmatpush3.bf16.msra.mxu1 %v4888_v2  ;;  %v4986_v47 = vld [vmem:[#allocation18_spill] sm:$0xff] }
 0x2c0   :  { %3334 = vmatprep.subr.bf16.mxu1 %v4889_v35 }
 0x2c2   :  { %1882 = vmatmul.mubr.f32.gmra.mrb[44].mxu1 %v4526_v33 }
 0x2c3   :  { %1888 = vmatprep.mubr.f32.mxu1 %v4549_v58  ;;  %3336 = vmatpush3.bf16.msra.mxu1 %v4890_v9 }
 0x2c4   :  { %3338 = vmatprep.subr.bf16.mxu1 %v4891_v63 }
 0x2c6   :  { %1891 = vmatmul.mubr.f32.gmra.mrb[46].mxu1 %v4543_v43 }
 0x2c7   :  { %3340 = vmatpush3.bf16.msra.mxu1 %v4069_v34  ;;  %1995 = vmatprep.mubr.f32.mxu1 %v4969_v6 }
 0x2c8   :  { %3342 = vmatprep.subr.bf16.mxu1 %v4078_v32 }
 0x2cb   :  { %3344 = vmatpush3.bf16.msra.mxu1 %v4153_v1 }
 0x2cc   :  { %3346 = vmatprep.subr.bf16.mxu1 %v4155_v53 }
 0x2cf   :  { %3348 = vmatpush3.bf16.msra.mxu1 %v4193_v27 }
 0x2d0   :  { %3350 = vmatprep.subr.bf16.mxu1 %v4970_v62 }
 0x2d2   :  { %1999 = vmatmul.mubr.f32.vlgmr.msra.gmra.mrb[48].mxu1 %v4971_v48 }
 0x2d3   :  { %2006 = vmatprep.mubr.f32.mxu1 %v4972_v7  ;;  %3352 = vmatpush3.bf16.msra.mxu1 %v4281_v44  ;;  %v4977_v44 = vld [vmem:[#allocation21_spill] sm:$0xff] }
 0x2d4   :  { %3354 = vmatprep.subr.bf16.mxu1 %v4287_v56  ;;  %v4978_v56 = vand.u32 4294901760, %v4503_v29  ;;  %v4985_v29 = vld [vmem:[#allocation17_spill] sm:$0xff] }
 0x2d6   :  { %2010 = vmatmul.mubr.f32.gmra.mrb[50].mxu1 %v4973_v30 }
 0x2d7   :  { %2017 = vmatprep.mubr.f32.mxu1 %v4974_v23  ;;  %3356 = vmatpush3.bf16.msra.mxu1 %v4298_v42  ;;  %v4981_v42 = vld [vmem:[#allocation30_spill] sm:$0xff] }
 0x2d8   :  { %3358 = vmatprep.subr.bf16.mxu1 %v4304_v26  ;;  %v4982_v26 = vand.u32 4294901760, %v4526_v33  ;;  %v4988_v33 = vld [vmem:[#allocation23_spill] sm:$0xff] }
 0x2da   :  { %2021 = vmatmul.mubr.f32.gmra.mrb[52].mxu1 %v4975_v21 }
 0x2db   :  { %2028 = vmatprep.mubr.f32.mxu1 %v4976_v25  ;;  %3360 = vmatpush3.bf16.msra.mxu1 %v4319_v54  ;;  %v4984_v54 = vld [vmem:[#allocation36_spill] sm:$0xff] }
 0x2dc   :  { %3362 = vmatprep.subr.bf16.mxu1 %v4977_v44 }
 0x2de   :  { %2032 = vmatmul.mubr.f32.gmra.mrb[54].mxu1 %v4978_v56 }
 0x2df   :  { %2039 = vmatprep.mubr.f32.mxu1 %v4979_v31  ;;  %3364 = vmatpush3.bf16.msra.mxu1 %v4980_v5 }
 0x2e0   :  { %3366 = vmatprep.subr.bf16.mxu1 %v4981_v42 }
 0x2e2   :  { %2043 = vmatmul.mubr.f32.gmra.mrb[56].mxu1 %v4982_v26 }
 0x2e3   :  { %2050 = vmatprep.mubr.f32.mxu1 %v1432_v17  ;;  %3368 = vmatpush3.bf16.msra.mxu1 %v4983_v59 }
 0x2e4   :  { %3370 = vmatprep.subr.bf16.mxu1 %v4984_v54 }
 0x2e6   :  { %2054 = vmatmul.mubr.f32.gmra.mrb[58].mxu1 %v1438_v46 }
 0x2e7   :  { %3372 = vmatpush3.bf16.msra.mxu1 %v4985_v29  ;;  %2220 = vmatprep.mubr.f32.mxu1 %v4447_v15 }
 0x2e8   :  { %3374 = vmatprep.subr.bf16.mxu1 %v4986_v47 }
 0x2eb   :  { %3376 = vmatpush3.bf16.msra.mxu1 %v4987_v45 }
 0x2ec   :  { %3378 = vmatprep.subr.bf16.mxu1 %v4988_v33 }
 0x2ef   :  { %3380 = vmatpush3.bf16.msra.mxu1 %v4989_v57 }
 0x2f0   :  { %3382 = vmatprep.subr.bf16.mxu1 %v3729_v12 }
 0x2f2   :  { %2222 = vmatmul.mubr.f32.vlgmr.msra.gmra.mrb[60].mxu1 %v4445_v52 }
 0x2f3   :  { %2227 = vmatprep.mubr.f32.mxu1 %v4459_v14  ;;  %3384 = vmatpush3.bf16.msra.mxu1 %v3743_v18 }
 0x2f4   :  { %3386 = vmatprep.subr.bf16.mxu1 %v3747_v20 }
 0x2f6   :  { %2229 = vmatmul.mubr.f32.gmra.mrb[62].mxu1 %v4456_v16 }
 0x2f7   :  { %2234 = vmatprep.mubr.f32.mxu1 %v4477_v11  ;;  %3388 = vmatpush3.bf16.msra.mxu1 %v3777_v36 }
 0x2f8   :  { %3390 = vmatprep.subr.bf16.mxu1 %v3816_v61 }
 0x2fa   :  { %2236 = vmatmul.mubr.f32.gmra.mrb[64].mxu1 %v4474_v41 }
 0x2fb   :  { %2241 = vmatprep.mubr.f32.mxu1 %v4496_v50  ;;  %3392 = vmatpush3.bf16.msra.mxu1 %v3845_v28 }
 0x2fc   :  { %3394 = vmatprep.subr.bf16.mxu1 %v4887_v13 }
 0x2fe   :  { %2243 = vmatmul.mubr.f32.gmra.mrb[66].mxu1 %v4492_v0 }
 0x2ff   :  { %2248 = vmatprep.mubr.f32.mxu1 %v4520_v3  ;;  %3396 = vmatpush3.bf16.msra.mxu1 %v4888_v2 }
 0x300   :  { %3398 = vmatprep.subr.bf16.mxu1 %v4889_v35 }
 0x302   :  { %2250 = vmatmul.mubr.f32.gmra.mrb[68].mxu1 %v4514_v39 }
 0x303   :  { %2255 = vmatprep.mubr.f32.mxu1 %v4537_v19  ;;  %3400 = vmatpush3.bf16.msra.mxu1 %v4890_v9 }
 0x304   :  { %3402 = vmatprep.subr.bf16.mxu1 %v4891_v63 }
 0x306   :  { %2257 = vmatmul.mubr.f32.gmra.mrb[70].mxu1 %v4533_v38 }
 0x307   :  { %3404 = vmatpush3.bf16.msra.mxu1 %v4069_v34  ;;  %2359 = vmatprep.mubr.f32.mxu1 %v4447_v15 }
 0x308   :  { %3406 = vmatprep.subr.bf16.mxu1 %v4078_v32 }
 0x30b   :  { %3408 = vmatpush3.bf16.msra.mxu1 %v4153_v1 }
 0x30c   :  { %3410 = vmatprep.subr.bf16.mxu1 %v4155_v53 }
 0x30f   :  { %3412 = vmatpush3.bf16.msra.mxu1 %v4193_v27 }
 0x312   :  { %2361 = vmatmul.mubr.f32.vlgmr.msra.gmra.mrb[72].mxu1 %v4445_v52 }
 0x313   :  { %2366 = vmatprep.mubr.f32.mxu1 %v4459_v14 }
 0x316   :  { %2368 = vmatmul.mubr.f32.gmra.mrb[74].mxu1 %v4456_v16 }
 0x317   :  { %2373 = vmatprep.mubr.f32.mxu1 %v4477_v11 }
 0x31a   :  { %2375 = vmatmul.mubr.f32.gmra.mrb[76].mxu1 %v4474_v41 }
 0x31b   :  { %2380 = vmatprep.mubr.f32.mxu1 %v4496_v50 }
 0x31e   :  { %2382 = vmatmul.mubr.f32.gmra.mrb[78].mxu1 %v4492_v0 }
 0x31f   :  { %2387 = vmatprep.mubr.f32.mxu1 %v4520_v3 }
 0x322   :  { %2389 = vmatmul.mubr.f32.gmra.mrb[80].mxu1 %v4514_v39 }
 0x323   :  { %2394 = vmatprep.mubr.f32.mxu1 %v4537_v19 }
 0x326   :  { %2396 = vmatmul.mubr.f32.gmra.mrb[82].mxu1 %v4533_v38 }
 0x344   :  { %v2761_v12 = vpop.f32.mrb[12].mxu1 }
 0x345   :  { %v2762_v18 = vpop.f32.mrb[13].mxu1 }
 0x346   :  { %v2763_v20 = vadd.f32 %v2762_v18, %v2761_v12 }
 0x348   :  { %v2764_v27 = vpop.f32.mrb[14].mxu1 }
 0x349   :  { %v2765_v36 = vpop.f32.mrb[15].mxu1 }
 0x34a   :  { %v2766_v61 = vadd.f32 %v2765_v36, %v2764_v27 }
 0x34c   :  { %v2767_v9 = vpop.f32.mrb[16].mxu1 }
 0x34d   :  { %v2768_v28 = vpop.f32.mrb[17].mxu1 }
 0x34e   :  { %v2769_v34 = vadd.f32 %v2768_v28, %v2767_v9 }
 0x350   :  { %v2770_v53 = vpop.f32.mrb[18].mxu1 }
 0x351   :  { %v2771_v1 = vpop.f32.mrb[19].mxu1 }
 0x352   :  { %v2772_v32 = vadd.f32 %v2771_v1, %v2770_v53 }
 0x355   :  { %v2773_v35 = vpop.f32.mrb[20].mxu1 }
 0x356   :  { %v2774_v13 = vpop.f32.mrb[21].mxu1 }
 0x357   :  { %v2775_v2 = vadd.f32 %v2774_v13, %v2773_v35 }
 0x359   :  { %v2776_v63 = vpop.f32.mrb[22].mxu1 }
 0x35a   :  { %v2777_v52 = vpop.f32.mrb[23].mxu1 }
 0x35b   :  { %v2778_v15 = vadd.f32 %v2777_v52, %v2776_v63 }
 0x365   :  { %v2811_v16 = vpop.f32.mrb[24].mxu1 }
 0x366   :  { %v2812_v38 = vpop.f32.mrb[25].mxu1 }
 0x367   :  { %v2813_v14 = vadd.f32 %v2812_v38, %v2811_v16 }
 0x369   :  { %v1675_v41 = vadd.f32 %v2813_v14, %v2763_v20  ;;  %v2814_v11 = vpop.f32.mrb[26].mxu1 }
 0x36a   :  { %v2815_v0 = vpop.f32.mrb[27].mxu1 }
 0x36b   :  { %v2816_v3 = vadd.f32 %v2815_v0, %v2814_v11 }
 0x36d   :  { %v1682_v50 = vadd.f32 %v2816_v3, %v2766_v61  ;;  %v2817_v17 = vpop.f32.mrb[28].mxu1 }
 0x36e   :  { %v2818_v39 = vpop.f32.mrb[29].mxu1 }
 0x36f   :  { %v2819_v19 = vadd.f32 %v2818_v39, %v2817_v17 }
 0x371   :  { %v1689_v43 = vadd.f32 %v2819_v19, %v2769_v34  ;;  %v2820_v58 = vpop.f32.mrb[30].mxu1 }
 0x372   :  { %v2821_v46 = vpop.f32.mrb[31].mxu1 }
 0x373   :  { %v2822_v4 = vadd.f32 %v2821_v46, %v2820_v58 }
 0x375   :  { %v1696_v24 = vadd.f32 %v2822_v4, %v2772_v32  ;;  %v2823_v22 = vpop.f32.mrb[32].mxu1 }
 0x376   :  { %v2824_v40 = vpop.f32.mrb[33].mxu1 }
 0x377   :  { %v2825_v8 = vadd.f32 %v2824_v40, %v2823_v22 }
 0x379   :  { %v1703_v10 = vadd.f32 %v2825_v8, %v2775_v2  ;;  %v2826_v60 = vpop.f32.mrb[34].mxu1 }
 0x37a   :  { %v2827_v49 = vpop.f32.mrb[35].mxu1 }
 0x37b   :  { %v2828_v55 = vadd.f32 %v2827_v49, %v2826_v60 }
 0x37d   :  { %v1710_v37 = vadd.f32 %v2828_v55, %v2778_v15 }
 0x37e   :  { %3602 = shalt.err (!%p3599_p6)
}
 0x37f   :  { %s3603_s20 = scalar_lea.hbm %s4739_s5, 1536 }
 0x380   :  { %p3604_p7 = scmp.ne.s32.totalorder %s4739_s5, %s3603_s20  ;;  %p3607_p8 = scmp.lt.u32.totalorder %s3603_s20, %s4739_s5 }
 0x382   :  { %p3609_p9 = pnand %p3607_p8, %p3604_p7 }
 0x384   :  { %3612 = shalt.err (!%p3609_p9)
}
 0x385   :  { %2454 = dma.vmem_to_hbm [thread:$0]  %s2449_s15, 1536, %s4739_s5, [#allocation9], %s3647_s0, %s3647_s0, %s3648_s17   ;;  %v2861_v51 = vpop.f32.mrb[36].mxu1 }
 0x386   :  { %v2862_v6 = vpop.f32.mrb[37].mxu1  ;;  %s3650_s5 = smov [#allocation7]  }
 0x387   :  { %v2863_v62 = vadd.f32 %v2862_v6, %v2861_v51  ;;  %s2436_s0 = sshll.u32 %s3650_s5, 4  ;;  %s2437_s0 = int_to_ptr.vmem [resolvable:$true] %s2436_s0 }
 0x388   :  { %s3613_s17 = scalar_lea.vmem %s2437_s0, 768  ;;  %p3618_p11 = scmp.lt.s32.totalorder %s2437_s0, %s2437_s0 }
 0x389   :  { %v1848_v48 = vadd.f32 %v2863_v62, %v1675_v41  ;;  %v2864_v7 = vpop.f32.mrb[38].mxu1  ;;  %p3614_p10 = scmp.ne.s32.totalorder %s2437_s0, %s3613_s17  ;;  %p3619_p12 = scmp.lt.s32.totalorder %s3613_s17, %s3613_s17 }
 0x38a   :  { %v2865_v30 = vpop.f32.mrb[39].mxu1 }
 0x38b   :  { %v2866_v23 = vadd.f32 %v2865_v30, %v2864_v7  ;;  %p3620_p13 = por %p3619_p12, %p3618_p11 }
 0x38d   :  { %v1857_v21 = vadd.f32 %v2866_v23, %v1682_v50  ;;  %v2867_v25 = vpop.f32.mrb[40].mxu1  ;;  %p3621_p0 = pnand %p3620_p13, %p3614_p10 }
 0x38e   :  { %v2868_v44 = vpop.f32.mrb[41].mxu1 }
 0x38f   :  { %v2869_v56 = vadd.f32 %v2868_v44, %v2867_v25 }
 0x391   :  { %v1866_v31 = vadd.f32 %v2869_v56, %v1689_v43  ;;  %v2870_v5 = vpop.f32.mrb[42].mxu1 }
 0x392   :  { %v2871_v42 = vpop.f32.mrb[43].mxu1 }
 0x393   :  { %v2872_v26 = vadd.f32 %v2871_v42, %v2870_v5 }
 0x395   :  { %v1875_v59 = vadd.f32 %v2872_v26, %v1696_v24  ;;  %v2873_v54 = vpop.f32.mrb[44].mxu1 }
 0x396   :  { %v2874_v29 = vpop.f32.mrb[45].mxu1 }
 0x397   :  { %v2875_v47 = vadd.f32 %v2874_v29, %v2873_v54  ;;  %v3541_v54 = vld [vmem:[#allocation2] sm:$0xff] }
 0x399   :  { %v1884_v45 = vadd.f32 %v2875_v47, %v1703_v10  ;;  %v2876_v33 = vpop.f32.mrb[46].mxu1 }
 0x39a   :  { %v2877_v57 = vpop.f32.mrb[47].mxu1 }
 0x39b   :  { %v2878_v12 = vadd.f32 %v2877_v57, %v2876_v33 }
 0x39d   :  { %v1893_v18 = vadd.f32 %v2878_v12, %v1710_v37 }
 0x3a5   :  { %v2911_v20 = vpop.f32.mrb[48].mxu1 }
 0x3a6   :  { %v2912_v27 = vpop.f32.mrb[49].mxu1 }
 0x3a7   :  { %v2913_v36 = vadd.f32 %v2912_v27, %v2911_v20 }
 0x3a9   :  { %v2001_v61 = vadd.f32 %v2913_v36, %v1848_v48  ;;  %v2914_v9 = vpop.f32.mrb[50].mxu1 }
 0x3aa   :  { %v2915_v28 = vpop.f32.mrb[51].mxu1 }
 0x3ab   :  { %v2916_v34 = vadd.f32 %v2915_v28, %v2914_v9 }
 0x3ad   :  { %v2012_v53 = vadd.f32 %v2916_v34, %v1857_v21  ;;  %v2917_v1 = vpop.f32.mrb[52].mxu1  ;;  %v3543_v34 = vld [vmem:[#allocation2 + $0x10] sm:$0xff] }
 0x3ae   :  { %v2918_v32 = vpop.f32.mrb[53].mxu1 }
 0x3af   :  { %v2919_v35 = vadd.f32 %v2918_v32, %v2917_v1 }
 0x3b1   :  { %v2023_v13 = vadd.f32 %v2919_v35, %v1866_v31  ;;  %v2920_v2 = vpop.f32.mrb[54].mxu1 }
 0x3b2   :  { %v2921_v63 = vpop.f32.mrb[55].mxu1 }
 0x3b3   :  { %v2922_v52 = vadd.f32 %v2921_v63, %v2920_v2  ;;  %v3544_v63 = vld [vmem:[#allocation2 + $0x18] sm:$0xff] }
 0x3b5   :  { %v2034_v15 = vadd.f32 %v2922_v52, %v1875_v59  ;;  %v2923_v16 = vpop.f32.mrb[56].mxu1 }
 0x3b6   :  { %v2924_v38 = vpop.f32.mrb[57].mxu1 }
 0x3b7   :  { %v2925_v14 = vadd.f32 %v2924_v38, %v2923_v16 }
 0x3b9   :  { %v2045_v41 = vadd.f32 %v2925_v14, %v1884_v45  ;;  %v2926_v11 = vpop.f32.mrb[58].mxu1 }
 0x3ba   :  { %v2927_v0 = vpop.f32.mrb[59].mxu1 }
 0x3bb   :  { %v2928_v3 = vadd.f32 %v2927_v0, %v2926_v11  ;;  %v3545_v11 = vld [vmem:[#allocation2 + $0x20] sm:$0xff] }
 0x3bd   :  { %v2056_v50 = vadd.f32 %v2928_v3, %v1893_v18  ;;  %v3542_v18 = vld [vmem:[#allocation2 + $0x8] sm:$0xff] }
 0x3c5   :  { %v2961_v17 = vpop.f32.mrb[60].mxu1 }
 0x3c6   :  { %v2962_v39 = vpop.f32.mrb[61].mxu1 }
 0x3c7   :  { %v2963_v19 = vadd.f32 %v2962_v39, %v2961_v17  ;;  %v3546_v17 = vld [vmem:[#allocation2 + $0x28] sm:$0xff] }
 0x3c9   :  { %v2224_v43 = vadd.f32 %v2963_v19, %v2001_v61  ;;  %v2964_v58 = vpop.f32.mrb[62].mxu1 }
 0x3ca   :  { %v2965_v46 = vpop.f32.mrb[63].mxu1 }
 0x3cb   :  { %v2966_v4 = vadd.f32 %v2965_v46, %v2964_v58 }
 0x3cd   :  { %v2231_v24 = vadd.f32 %v2966_v4, %v2012_v53  ;;  %v2967_v22 = vpop.f32.mrb[64].mxu1 }
 0x3ce   :  { %v2968_v40 = vpop.f32.mrb[65].mxu1 }
 0x3cf   :  { %v2969_v8 = vadd.f32 %v2968_v40, %v2967_v22 }
 0x3d1   :  { %v2238_v10 = vadd.f32 %v2969_v8, %v2023_v13  ;;  %v2970_v60 = vpop.f32.mrb[66].mxu1 }
 0x3d2   :  { %v2971_v49 = vpop.f32.mrb[67].mxu1 }
 0x3d3   :  { %v2972_v55 = vadd.f32 %v2971_v49, %v2970_v60 }
 0x3d5   :  { %v2245_v37 = vadd.f32 %v2972_v55, %v2034_v15  ;;  %v2973_v51 = vpop.f32.mrb[68].mxu1 }
 0x3d6   :  { %v2974_v6 = vpop.f32.mrb[69].mxu1 }
 0x3d7   :  { %v2975_v62 = vadd.f32 %v2974_v6, %v2973_v51 }
 0x3d9   :  { %v2252_v48 = vadd.f32 %v2975_v62, %v2045_v41  ;;  %v2976_v7 = vpop.f32.mrb[70].mxu1 }
 0x3da   :  { %v2977_v30 = vpop.f32.mrb[71].mxu1 }
 0x3db   :  { %v2978_v23 = vadd.f32 %v2977_v30, %v2976_v7 }
 0x3dd   :  { %v2259_v21 = vadd.f32 %v2978_v23, %v2056_v50 }
 0x3e5   :  { %v3011_v25 = vpop.f32.mrb[72].mxu1 }
 0x3e6   :  { %v3012_v44 = vpop.f32.mrb[73].mxu1 }
 0x3e7   :  { %v3013_v56 = vadd.f32 %v3012_v44, %v3011_v25 }
 0x3e9   :  { %v2363_v31 = vadd.f32 %v3013_v56, %v2224_v43  ;;  %v3014_v5 = vpop.f32.mrb[74].mxu1 }
 0x3ea   :  { %v3015_v42 = vpop.f32.mrb[75].mxu1 }
 0x3eb   :  { %v2401_v26 = vmul.f32 0.5, %v2363_v31  ;;  %v3016_v59 = vadd.f32 %v3015_v42, %v3014_v5 }
 0x3ed   :  { %v2407_v29 = vsub.f32 %v3541_v54, %v2401_v26  ;;  %v2370_v47 = vadd.f32 %v3016_v59, %v2231_v24  ;;  %v3017_v45 = vpop.f32.mrb[76].mxu1 }
 0x3ee   :  { %v3018_v33 = vpop.f32.mrb[77].mxu1 }
 0x3ef   :  { %2425 = vst [vmem:[#allocation7] sm:$0xff] %v2407_v29  ;;  %v2402_v57 = vmul.f32 0.5, %v2370_v47  ;;  %v3019_v12 = vadd.f32 %v3018_v33, %v3017_v45 }
 0x3f1   :  { %v2408_v20 = vsub.f32 %v3542_v18, %v2402_v57  ;;  %v2377_v27 = vadd.f32 %v3019_v12, %v2238_v10  ;;  %v3020_v36 = vpop.f32.mrb[78].mxu1 }
 0x3f2   :  { %v3021_v61 = vpop.f32.mrb[79].mxu1 }
 0x3f3   :  { %2426 = vst [vmem:[#allocation7 + $0x8] sm:$0xff] %v2408_v20  ;;  %v2403_v9 = vmul.f32 0.5, %v2377_v27  ;;  %v3022_v28 = vadd.f32 %v3021_v61, %v3020_v36 }
 0x3f5   :  { %v2409_v53 = vsub.f32 %v3543_v34, %v2403_v9  ;;  %v2384_v1 = vadd.f32 %v3022_v28, %v2245_v37  ;;  %v3023_v32 = vpop.f32.mrb[80].mxu1 }
 0x3f6   :  { %v3024_v35 = vpop.f32.mrb[81].mxu1 }
 0x3f7   :  { %2427 = vst [vmem:[#allocation7 + $0x10] sm:$0xff] %v2409_v53  ;;  %v2404_v13 = vmul.f32 0.5, %v2384_v1  ;;  %v3025_v2 = vadd.f32 %v3024_v35, %v3023_v32 }
 0x3f9   :  { %v2410_v52 = vsub.f32 %v3544_v63, %v2404_v13  ;;  %v2391_v15 = vadd.f32 %v3025_v2, %v2252_v48  ;;  %v3026_v16 = vpop.f32.mrb[82].mxu1 }
 0x3fa   :  { %v3027_v38 = vpop.f32.mrb[83].mxu1 }
 0x3fb   :  { %2428 = vst [vmem:[#allocation7 + $0x18] sm:$0xff] %v2410_v52  ;;  %v2405_v14 = vmul.f32 0.5, %v2391_v15  ;;  %v3028_v41 = vadd.f32 %v3027_v38, %v3026_v16 }
 0x3fd   :  { %v2411_v0 = vsub.f32 %v3545_v11, %v2405_v14  ;;  %v2398_v3 = vadd.f32 %v3028_v41, %v2259_v21 }
 0x3ff   :  { %2429 = vst [vmem:[#allocation7 + $0x20] sm:$0xff] %v2411_v0  ;;  %v2406_v50 = vmul.f32 0.5, %v2398_v3 }
 0x401   :  { %v2412_v39 = vsub.f32 %v3546_v17, %v2406_v50 }
 0x403   :  { %2430 = vst [vmem:[#allocation7 + $0x28] sm:$0xff] %v2412_v39 }
 0x404   :  { %3624 = shalt.err (!%p3621_p0)
}
 0x405   :  { %s3625_s30 = scalar_lea.hbm %s4738_s4, 768 }
 0x406   :  { %p3626_p1 = scmp.ne.s32.totalorder %s4738_s4, %s3625_s30  ;;  %p3629_p2 = scmp.lt.u32.totalorder %s3625_s30, %s4738_s4 }
 0x408   :  { %p3631_p3 = pnand %p3629_p2, %p3626_p1 }
 0x40a   :  { %3634 = shalt.err (!%p3631_p3)
}
 0x40b   :  { %2442 = dma.vmem_to_hbm [thread:$0]  %s2437_s0, 768, %s4738_s4, [#allocation4], %s3644_s28, %s3644_s28, %s3645_s29  }
 0x40c   :  { %3639 = dma.done.wait [#allocation4], 768  }
 0x40d   :  { %3640 = vsyncadd [#allocation4], 4294966528 }
 0x40e   :  { %3641 = dma.done.wait [#allocation9], 1536  }
 0x40f   :  { %3642 = vsyncadd [#allocation9], 4294965760 }
 0x410   :  { %2461 = vsyncpa [#allocation3], 1 }
 0x411   :  { %2462 = vsyncpa [#allocation6], 1 }
 0x412   :  { %2463 = vsyncpa [#allocation4], 1 }
 0x413   :  { %2464 = vsyncpa [#allocation9], 1 }

</bundles_post_ra>
